<compile_context>
chip_gen: v7x
topology: tpu7x:2x2x1
jax: 0.10.0
libtpu: 0.0.40
codegen_flags: <defaults>
</compile_context>

<pallas_src>
import jax
import jax.numpy as jnp
from jax import lax
from jax.experimental import pallas as pl
from jax.experimental.pallas import tpu as pltpu


# Fixed-step RK4 substeps standing in for adaptive dopri5 over self.t=[0,1].
# TODO(synk): adaptive-step odeint (atol=rtol=1e-7) has no clean Pallas
# equivalent (data-dependent step count); fixed-step RK4 is used instead.
RK4_STEPS = 2


def ode_rnn_kernel(scal_ref, t_ref, xv_ref, w_ref, bdf_ref, u_ref,
                   out_ref, state_ref):
    """One grid step = one outer RNN/ODE time step for one batch block.

    Grid = (batch_blocks, n_t).  `state_ref` (VMEM scratch, [2*BB, D] with rows
    0..BB-1 = h and BB..2BB-1 = m) carries the ODE state across the sequential
    ("arbitrary") time axis; W / U / b_df stay resident in VMEM (constant
    index_maps).  All matmuls use bf16 operands with f32 accumulation.
    """
    ti = pl.program_id(1)

    @pl.when(ti == 0)
    def _():
        # h_ode[0] = zeros  (ic is None in this configuration)
        state_ref[...] = jnp.zeros_like(state_ref)

    # per-trajectory scalars (sigmoid/softplus applied once in the wrapper)
    sig_gamma = scal_ref[0]
    beta = scal_ref[1]
    sp_corr = scal_ref[2]
    sign = scal_ref[3]

    two_bb, d = state_ref.shape
    bb = two_bb // 2

    s = state_ref[...]            # [2BB, D] f32   (h ; m)
    xv_i = xv_ref[0]              # [BB, 2D] f32   (precomputed x[i] @ V + b_rnn)
    elem = t_ref[0]               # [BB, 1]  f32   (ode.update(t[i]))

    # ---- RNN cell: h_rnn[i] = rnn(h_ode[i], x[i]) ---------------------------
    # Recurrent weight U is shared by the h and m slabs -> ONE bf16 MXU pass on
    # the stacked state; the input projection was hoisted to the wrapper.
    su = jnp.dot(s.astype(jnp.bfloat16), u_ref[...],
                 preferred_element_type=jnp.float32)                     # [2BB, D]
    hr = jnp.tanh(su[:bb] + xv_i[:, :d])
    mr = jnp.tanh(su[bb:] + xv_i[:, d:])
    s = jnp.concatenate([hr, mr], axis=0)                                # [2BB, D]

    # ---- h_ode[i+1] = odeint(ode, h_rnn[i], [0, 1])[-1]  (fixed-step RK4) ----
    w = w_ref[...]
    bdf = bdf_ref[...]

    # elem_t is folded into the RK4 step-size columns ONCE per grid step
    # (one lane-broadcast multiply per stage, none inside the derivative).
    dt = 1.0 / RK4_STEPS
    col = jnp.concatenate([elem, elem], axis=0) * dt                     # [2BB, 1]
    col_h = 0.5 * col
    col_3 = col * (1.0 / 3.0)
    col_6 = col * (1.0 / 6.0)

    def g(st):
        # HessianDampingNODE derivative WITHOUT the elem_t scale (folded above).
        # h and m share the same RHS W -> single stacked bf16 matmul per eval.
        hwmw = jnp.dot(st.astype(jnp.bfloat16), w,
                       preferred_element_type=jnp.float32)               # [2BB, D]
        z = jnp.tanh(hwmw[:bb] + bdf)                                    # df
        ddf = (1.0 - z * z) * hwmw[bb:]                                  # analytic JVP
        h = st[:bb]
        m = st[bb:]
        dh = -m                                                          # actv_h = Id
        dm = sign * z - sig_gamma * m - beta * ddf + sp_corr * h
        return jnp.concatenate([dh, dm], axis=0)

    # Incremental RK4: keep only {s, acc, current g, stage input} live so the
    # larger batch block fits the 64-vreg file without spilling.
    for _ in range(RK4_STEPS):
        g1 = g(s)
        acc = s + col_6 * g1
        g2 = g(s + col_h * g1)
        acc = acc + col_3 * g2
        g3 = g(s + col_h * g2)
        acc = acc + col_3 * g3
        g4 = g(s + col * g3)
        s = acc + col_6 * g4

    state_ref[...] = s
    # Consumer-layout output block (1, BB, 2, D): two static-slice stores
    # (2 sublane rows each), no wrapper-side transpose needed.
    out_ref[0, :, 0, :] = s[:bb].astype(out_ref.dtype)
    out_ref[0, :, 1, :] = s[bb:].astype(out_ref.dtype)


def _pick_batch_block(n_b):
    """Largest multiple of 8 dividing n_b, capped at 128 (2*BB = 256 rows fills
    the v6e/v7x MXU; 2*BB = 128 fills v5e).  If that leaves a single block and
    the block is large, halve it so v7x can split the 'parallel' grid axis
    across both TensorCores."""
    bb = 0
    cap = (min(n_b, 128) // 8) * 8
    for cand in range(cap, 0, -8):
        if n_b % cand == 0:
            bb = cand
            break
    if bb == 0:
        bb = n_b                      # tiny batches: single (unaligned) block
    if n_b // bb == 1 and bb >= 128 and bb % 16 == 0:
        bb //= 2                      # give v7x two parallel batch blocks
    return bb


def ode_rnn_forward(t, x, w, b_df, u, v, b_rnn, gamma, beta, corr, sign=1.0,
                    batch_block=None):
    """JAX/Pallas equivalent of ODE_RNN_with_Grad_Listener.forward(t, x) for the
    default path.  Returns a 1-tuple with the stacked h_ode trajectory of shape
    [n_t + 1, n_b, 2, dim]  (time, batch, *nhid)."""
    n_t, n_b = t.shape
    d = w.shape[0]
    bb = _pick_batch_block(n_b) if batch_block is None else batch_block
    assert n_b % bb == 0
    n_bb = n_b // bb

    # Per-call (per-trajectory) scalar transforms — amortized over all steps.
    scalars = jnp.array(
        [jax.nn.sigmoid(gamma), beta, jax.nn.softplus(corr), sign],
        dtype=jnp.float32)

    # ode.update(t[i]): per-(step, batch) scale, broadcast to lanes in-kernel.
    t_col = t.astype(jnp.float32)[:, :, None]                      # (n_t, n_b, 1)

    # State-independent input projection hoisted out of the recurrence:
    # one big [n_t*n_b, C] x [C, 2D] matmul, with the RNN bias folded in.
    xv = jnp.einsum('tbc,cd->tbd', x.astype(jnp.float32), v.astype(jnp.float32),
                    preferred_element_type=jnp.float32)
    xv = xv + b_rnn.astype(jnp.float32)[None, None, :]             # (n_t, n_b, 2D)

    # bf16 weights for the MXU-native path (f32 accumulation in-kernel).
    w_bf = w.astype(jnp.bfloat16)
    u_bf = u.astype(jnp.bfloat16)
    bdf2d = b_df.astype(jnp.float32).reshape(1, d)

    # Explicit VMEM budget sized to the real working set (v7x headroom).
    # NOTE: at very large d, additionally mark the resident weight specs with
    # pipeline_mode=pl.Buffered(1) to avoid double-buffering them.
    weights_bytes = 2 * (w_bf.size * 2 + u_bf.size * 2 + d * 4)
    step_bytes = 2 * (bb * 2 * d * 4 + bb * 4) + 2 * (bb * 2 * d * 4)
    scratch_bytes = 2 * bb * d * 4
    vmem_limit = int(min(64 * 1024 * 1024,
                         max(8 * 1024 * 1024,
                             2 * (weights_bytes + step_bytes + scratch_bytes))))

    traj = pl.pallas_call(
        ode_rnn_kernel,
        out_shape=jax.ShapeDtypeStruct((n_t, n_b, 2, d), jnp.float32),
        grid_spec=pltpu.PrefetchScalarGridSpec(
            num_scalar_prefetch=0,
            grid=(n_bb, n_t),
            in_specs=[
                pl.BlockSpec(memory_space=pltpu.MemorySpace.SMEM),        # scalars
                pl.BlockSpec((1, bb, 1), lambda bi, ti: (ti, bi, 0)),     # t[i] column
                pl.BlockSpec((1, bb, 2 * d), lambda bi, ti: (ti, bi, 0)), # x[i]@V + b
                pl.BlockSpec((d, d), lambda bi, ti: (0, 0)),              # W  (resident, bf16)
                pl.BlockSpec((1, d), lambda bi, ti: (0, 0)),              # b_df
                pl.BlockSpec((d, d), lambda bi, ti: (0, 0)),              # U  (resident, bf16)
            ],
            out_specs=pl.BlockSpec((1, bb, 2, d), lambda bi, ti: (ti, bi, 0, 0)),
            scratch_shapes=[pltpu.VMEM((2 * bb, d), jnp.float32)],
        ),
        compiler_params=pltpu.CompilerParams(
            dimension_semantics=("parallel", "arbitrary"),
            vmem_limit_bytes=vmem_limit),
    )(scalars, t_col, xv, w_bf, bdf2d, u_bf)

    # h_ode[0] = zeros; module output contract is [time, batch, *nhid].
    h_ode = jnp.zeros((n_t + 1, n_b, 2, d), jnp.float32)
    h_ode = lax.dynamic_update_slice(h_ode, traj, (1, 0, 0, 0))

    # TODO(synk): ic / rnn_out / both / multiforecast / retain_grad branches of
    # the module are not reproduced (defaults None/False path implemented).
    return (h_ode,)


def _reference_forward(t, x, w, b_df, u, v, b_rnn, gamma, beta, corr, sign):
    """Pure-JAX reference of the same forward (f32, HIGHEST precision)."""
    n_t, n_b = t.shape
    d = w.shape[0]
    hp = lax.Precision.HIGHEST
    sig_g = jax.nn.sigmoid(gamma)
    sp_c = jax.nn.softplus(corr)

    h = jnp.zeros((n_b, d), jnp.float32)
    m = jnp.zeros((n_b, d), jnp.float32)
    outs = [jnp.zeros((n_b, 2, d), jnp.float32)]
    for i in range(n_t):
        elem = t[i][:, None]
        xv = jnp.dot(x[i], v, precision=hp)
        h_new = jnp.tanh(jnp.dot(h, u, precision=hp) + xv[:, :d] + b_rnn[:d])
        m_new = jnp.tanh(jnp.dot(m, u, precision=hp) + xv[:, d:] + b_rnn[d:])
        h, m = h_new, m_new

        def deriv(hh, mm):
            z = jnp.tanh(jnp.dot(hh, w, precision=hp) + b_df)
            ddf = (1.0 - z * z) * jnp.dot(mm, w, precision=hp)
            dh = -mm
            dm = sign * z - sig_g * mm - beta * ddf + sp_c * hh
            return elem * dh, elem * dm

        dt = 1.0 / RK4_STEPS
        for _ in range(RK4_STEPS):
            k1h, k1m = deriv(h, m)
            k2h, k2m = deriv(h + 0.5 * dt * k1h, m + 0.5 * dt * k1m)
            k3h, k3m = deriv(h + 0.5 * dt * k2h, m + 0.5 * dt * k2m)
            k4h, k4m = deriv(h + dt * k3h, m + dt * k3m)
            h = h + (dt / 6.0) * (k1h + 2.0 * k2h + 2.0 * k3h + k4h)
            m = m + (dt / 6.0) * (k1m + 2.0 * k2m + 2.0 * k3m + k4m)
        outs.append(jnp.stack([h, m], axis=1))
    return jnp.stack(outs, axis=0)


if __name__ == "__main__":
    # Small but MXU-relevant shapes: n_b=128 -> batch_block=64 (2 parallel
    # blocks, 2*BB = 128 rows per stacked matmul), hidden dim 128, channels 64.
    n_t, n_b, d, c = 5, 128, 128, 64

    key = jax.random.PRNGKey(0)
    kt, kx, kw, kb, ku, kv, kr = jax.random.split(key, 7)

    t = 0.1 + 0.2 * jax.random.uniform(kt, (n_t, n_b), dtype=jnp.float32)
    x = 0.5 * jax.random.normal(kx, (n_t, n_b, c), dtype=jnp.float32)
    w = 0.04 * jax.random.normal(kw, (d, d), dtype=jnp.float32)
    b_df = 0.05 * jax.random.normal(kb, (d,), dtype=jnp.float32)
    u = 0.04 * jax.random.normal(ku, (d, d), dtype=jnp.float32)
    v = 0.05 * jax.random.normal(kv, (c, 2 * d), dtype=jnp.float32)
    b_rnn = 0.05 * jax.random.normal(kr, (2 * d,), dtype=jnp.float32)

    # HessianDampingNODE defaults: gamma=-3.0, beta=-2.0, corr=-100 (frozen), sign=1
    gamma = jnp.float32(-3.0)
    beta = jnp.float32(-2.0)
    corr = jnp.float32(-100.0)
    sign = 1.0

    (out,) = ode_rnn_forward(t, x, w, b_df, u, v, b_rnn, gamma, beta, corr, sign)
    out = jax.block_until_ready(out)

    ref = _reference_forward(t, x, w, b_df, u, v, b_rnn, gamma, beta, corr, sign)

    assert out.shape == (n_t + 1, n_b, 2, d)
    # Kernel uses bf16 MXU matmuls (f32 accumulation) vs the f32 HIGHEST
    # reference -> tolerance loosened accordingly.
    err = float(jnp.max(jnp.abs(out - ref)))
    assert jnp.allclose(out, ref, atol=1e-2, rtol=1e-2), f"max abs err {err}"

    print("KERNEL_OK")
</pallas_src>

<mosaic_0001>
module attributes {stable_mosaic.version = 11 : i64} {
  func.func @ode_rnn_kernel(%arg0: i32, %arg1: i32, %arg2: memref<4xf32, #tpu.memory_space<smem>>, %arg3: memref<1x64x1xf32, #tpu.memory_space<vmem>>, %arg4: memref<1x64x256xf32, #tpu.memory_space<vmem>>, %arg5: memref<128x128xbf16, #tpu.memory_space<vmem>>, %arg6: memref<1x128xf32, #tpu.memory_space<vmem>>, %arg7: memref<128x128xbf16, #tpu.memory_space<vmem>>, %arg8: memref<1x64x2x128xf32, #tpu.memory_space<vmem>>, %arg9: memref<128x128xf32, #tpu.memory_space<vmem>>) attributes {dimension_semantics = [#tpu.dimension_semantics<parallel>, #tpu.dimension_semantics<arbitrary>], iteration_bounds = array<i64: 2, 5>, scalar_prefetch = 0 : i64, scratch_operands = 1 : i64, tpu.core_type = #tpu.core_type<tc>, window_params = [{transform_indices = @transform_0, window_bounds = array<i64: 4>}, {transform_indices = @transform_1, window_bounds = array<i64: 1, 64, 1>}, {transform_indices = @transform_2, window_bounds = array<i64: 1, 64, 256>}, {pipeline_mode = #tpu.pipeline_mode<synchronous>, transform_indices = @transform_3, window_bounds = array<i64: 128, 128>}, {pipeline_mode = #tpu.pipeline_mode<synchronous>, transform_indices = @transform_4, window_bounds = array<i64: 1, 128>}, {pipeline_mode = #tpu.pipeline_mode<synchronous>, transform_indices = @transform_5, window_bounds = array<i64: 128, 128>}, {transform_indices = @transform_6, window_bounds = array<i64: 1, 64, 2, 128>}]} {
    %c0_i32 = arith.constant 0 : i32
    %0 = arith.cmpi eq, %arg1, %c0_i32 : i32
    %1 = arith.extui %0 : i1 to i32
    %c0_i32_0 = arith.constant 0 : i32
    %2 = arith.cmpi ne, %1, %c0_i32_0 : i32
    scf.if %2 {
      %cst_53 = arith.constant 0.000000e+00 : f32
      %302 = vector.broadcast %cst_53 : f32 to vector<128x128xf32>
      %c0_54 = arith.constant 0 : index
      %c0_55 = arith.constant 0 : index
      %303 = vector.load %arg9[%c0_54, %c0_55] : memref<128x128xf32, #tpu.memory_space<vmem>>, vector<128x128xf32>
      tpu.vector_store %arg9[%c0_54, %c0_55], %302 {strides = array<i32>} : memref<128x128xf32, #tpu.memory_space<vmem>>, vector<128x128xf32>,
    } else {
    }
    %c0 = arith.constant 0 : index
    %3 = memref.load %arg2[%c0] : memref<4xf32, #tpu.memory_space<smem>>
    %c1 = arith.constant 1 : index
    %4 = memref.load %arg2[%c1] : memref<4xf32, #tpu.memory_space<smem>>
    %c2 = arith.constant 2 : index
    %5 = memref.load %arg2[%c2] : memref<4xf32, #tpu.memory_space<smem>>
    %c3 = arith.constant 3 : index
    %6 = memref.load %arg2[%c3] : memref<4xf32, #tpu.memory_space<smem>>
    %c0_1 = arith.constant 0 : index
    %c0_2 = arith.constant 0 : index
    %7 = vector.load %arg9[%c0_1, %c0_2] : memref<128x128xf32, #tpu.memory_space<vmem>>, vector<128x128xf32>
    %c0_3 = arith.constant 0 : index
    %c0_4 = arith.constant 0 : index
    %c0_5 = arith.constant 0 : index
    %8 = vector.load %arg4[%c0_3, %c0_4, %c0_5] : memref<1x64x256xf32, #tpu.memory_space<vmem>>, vector<1x64x256xf32>
    %9 = vector.shape_cast %8 : vector<1x64x256xf32> to vector<64x256xf32>
    %c0_6 = arith.constant 0 : index
    %c0_7 = arith.constant 0 : index
    %c0_8 = arith.constant 0 : index
    %10 = vector.load %arg3[%c0_6, %c0_7, %c0_8] : memref<1x64x1xf32, #tpu.memory_space<vmem>>, vector<1x64x1xf32>
    %11 = vector.shape_cast %10 : vector<1x64x1xf32> to vector<64x1xf32>
    %12 = arith.truncf %7 : vector<128x128xf32> to vector<128x128xbf16>
    %c0_9 = arith.constant 0 : index
    %c0_10 = arith.constant 0 : index
    %13 = vector.load %arg7[%c0_9, %c0_10] : memref<128x128xbf16, #tpu.memory_space<vmem>>, vector<128x128xbf16>
    %cst = arith.constant dense<0.000000e+00> : vector<128x128xf32>
    %14 = tpu.matmul %12, %13, %cst {dimension_numbers = #tpu.dot_dimension_numbers<[1], [0], [0], [1], [0, 0, 1, 1], [], []>} : vector<128x128xbf16>, vector<128x128xbf16>, vector<128x128xf32> -> vector<128x128xf32>
    %15 = vector.extract_strided_slice %14 {offsets = [0, 0], sizes = [64, 128], strides = [1, 1]} : vector<128x128xf32> to vector<64x128xf32>
    %16 = vector.extract_strided_slice %9 {offsets = [0, 0], sizes = [64, 128], strides = [1, 1]} : vector<64x256xf32> to vector<64x128xf32>
    %17 = arith.addf %15, %16 : vector<64x128xf32>
    %18 = math.tanh %17 : vector<64x128xf32>
    %19 = vector.extract_strided_slice %14 {offsets = [64, 0], sizes = [64, 128], strides = [1, 1]} : vector<128x128xf32> to vector<64x128xf32>
    %20 = vector.extract_strided_slice %9 {offsets = [0, 128], sizes = [64, 128], strides = [1, 1]} : vector<64x256xf32> to vector<64x128xf32>
    %21 = arith.addf %19, %20 : vector<64x128xf32>
    %22 = math.tanh %21 : vector<64x128xf32>
    %23 = tpu.concatenate %18, %22 in 0 : vector<64x128xf32>, vector<64x128xf32> -> vector<128x128xf32>
    %c0_11 = arith.constant 0 : index
    %c0_12 = arith.constant 0 : index
    %24 = vector.load %arg5[%c0_11, %c0_12] : memref<128x128xbf16, #tpu.memory_space<vmem>>, vector<128x128xbf16>
    %c0_13 = arith.constant 0 : index
    %c0_14 = arith.constant 0 : index
    %25 = vector.load %arg6[%c0_13, %c0_14] : memref<1x128xf32, #tpu.memory_space<vmem>>, vector<1x128xf32>
    %26 = tpu.concatenate %11, %11 in 0 : vector<64x1xf32>, vector<64x1xf32> -> vector<128x1xf32>
    %cst_15 = arith.constant 5.000000e-01 : f32
    %27 = vector.broadcast %cst_15 : f32 to vector<128x1xf32>
    %28 = arith.mulf %26, %27 : vector<128x1xf32>
    %cst_16 = arith.constant 5.000000e-01 : f32
    %29 = vector.broadcast %cst_16 : f32 to vector<128x1xf32>
    %30 = arith.mulf %29, %28 : vector<128x1xf32>
    %cst_17 = arith.constant 0.333333343 : f32
    %31 = vector.broadcast %cst_17 : f32 to vector<128x1xf32>
    %32 = arith.mulf %28, %31 : vector<128x1xf32>
    %cst_18 = arith.constant 0.166666672 : f32
    %33 = vector.broadcast %cst_18 : f32 to vector<128x1xf32>
    %34 = arith.mulf %28, %33 : vector<128x1xf32>
    %35 = arith.truncf %23 : vector<128x128xf32> to vector<128x128xbf16>
    %cst_19 = arith.constant dense<0.000000e+00> : vector<128x128xf32>
    %36 = tpu.matmul %35, %24, %cst_19 {dimension_numbers = #tpu.dot_dimension_numbers<[1], [0], [0], [1], [0, 0, 1, 1], [], []>} : vector<128x128xbf16>, vector<128x128xbf16>, vector<128x128xf32> -> vector<128x128xf32>
    %37 = vector.extract_strided_slice %36 {offsets = [0, 0], sizes = [64, 128], strides = [1, 1]} : vector<128x128xf32> to vector<64x128xf32>
    %38 = vector.broadcast %25 : vector<1x128xf32> to vector<64x128xf32>
    %39 = arith.addf %37, %38 : vector<64x128xf32>
    %40 = math.tanh %39 : vector<64x128xf32>
    %41 = arith.mulf %40, %40 : vector<64x128xf32>
    %cst_20 = arith.constant 1.000000e+00 : f32
    %42 = vector.broadcast %cst_20 : f32 to vector<64x128xf32>
    %43 = arith.subf %42, %41 : vector<64x128xf32>
    %44 = vector.extract_strided_slice %36 {offsets = [64, 0], sizes = [64, 128], strides = [1, 1]} : vector<128x128xf32> to vector<64x128xf32>
    %45 = arith.mulf %43, %44 : vector<64x128xf32>
    %46 = vector.extract_strided_slice %23 {offsets = [0, 0], sizes = [64, 128], strides = [1, 1]} : vector<128x128xf32> to vector<64x128xf32>
    %47 = vector.extract_strided_slice %23 {offsets = [64, 0], sizes = [64, 128], strides = [1, 1]} : vector<128x128xf32> to vector<64x128xf32>
    %cst_21 = arith.constant 0.000000e+00 : f32
    %48 = vector.broadcast %cst_21 : f32 to vector<64x128xf32>
    %49 = arith.subf %48, %47 : vector<64x128xf32>
    %50 = vector.broadcast %6 : f32 to vector<64x128xf32>
    %51 = arith.mulf %50, %40 : vector<64x128xf32>
    %52 = vector.broadcast %3 : f32 to vector<64x128xf32>
    %53 = arith.mulf %52, %47 : vector<64x128xf32>
    %54 = arith.subf %51, %53 : vector<64x128xf32>
    %55 = vector.broadcast %4 : f32 to vector<64x128xf32>
    %56 = arith.mulf %55, %45 : vector<64x128xf32>
    %57 = arith.subf %54, %56 : vector<64x128xf32>
    %58 = vector.broadcast %5 : f32 to vector<64x128xf32>
    %59 = arith.mulf %58, %46 : vector<64x128xf32>
    %60 = arith.addf %57, %59 : vector<64x128xf32>
    %61 = tpu.concatenate %49, %60 in 0 : vector<64x128xf32>, vector<64x128xf32> -> vector<128x128xf32>
    %62 = vector.broadcast %34 : vector<128x1xf32> to vector<128x128xf32>
    %63 = arith.mulf %62, %61 : vector<128x128xf32>
    %64 = arith.addf %23, %63 : vector<128x128xf32>
    %65 = vector.broadcast %30 : vector<128x1xf32> to vector<128x128xf32>
    %66 = arith.mulf %65, %61 : vector<128x128xf32>
    %67 = arith.addf %23, %66 : vector<128x128xf32>
    %68 = arith.truncf %67 : vector<128x128xf32> to vector<128x128xbf16>
    %cst_22 = arith.constant dense<0.000000e+00> : vector<128x128xf32>
    %69 = tpu.matmul %68, %24, %cst_22 {dimension_numbers = #tpu.dot_dimension_numbers<[1], [0], [0], [1], [0, 0, 1, 1], [], []>} : vector<128x128xbf16>, vector<128x128xbf16>, vector<128x128xf32> -> vector<128x128xf32>
    %70 = vector.extract_strided_slice %69 {offsets = [0, 0], sizes = [64, 128], strides = [1, 1]} : vector<128x128xf32> to vector<64x128xf32>
    %71 = vector.broadcast %25 : vector<1x128xf32> to vector<64x128xf32>
    %72 = arith.addf %70, %71 : vector<64x128xf32>
    %73 = math.tanh %72 : vector<64x128xf32>
    %74 = arith.mulf %73, %73 : vector<64x128xf32>
    %cst_23 = arith.constant 1.000000e+00 : f32
    %75 = vector.broadcast %cst_23 : f32 to vector<64x128xf32>
    %76 = arith.subf %75, %74 : vector<64x128xf32>
    %77 = vector.extract_strided_slice %69 {offsets = [64, 0], sizes = [64, 128], strides = [1, 1]} : vector<128x128xf32> to vector<64x128xf32>
    %78 = arith.mulf %76, %77 : vector<64x128xf32>
    %79 = vector.extract_strided_slice %67 {offsets = [0, 0], sizes = [64, 128], strides = [1, 1]} : vector<128x128xf32> to vector<64x128xf32>
    %80 = vector.extract_strided_slice %67 {offsets = [64, 0], sizes = [64, 128], strides = [1, 1]} : vector<128x128xf32> to vector<64x128xf32>
    %cst_24 = arith.constant 0.000000e+00 : f32
    %81 = vector.broadcast %cst_24 : f32 to vector<64x128xf32>
    %82 = arith.subf %81, %80 : vector<64x128xf32>
    %83 = vector.broadcast %6 : f32 to vector<64x128xf32>
    %84 = arith.mulf %83, %73 : vector<64x128xf32>
    %85 = vector.broadcast %3 : f32 to vector<64x128xf32>
    %86 = arith.mulf %85, %80 : vector<64x128xf32>
    %87 = arith.subf %84, %86 : vector<64x128xf32>
    %88 = vector.broadcast %4 : f32 to vector<64x128xf32>
    %89 = arith.mulf %88, %78 : vector<64x128xf32>
    %90 = arith.subf %87, %89 : vector<64x128xf32>
    %91 = vector.broadcast %5 : f32 to vector<64x128xf32>
    %92 = arith.mulf %91, %79 : vector<64x128xf32>
    %93 = arith.addf %90, %92 : vector<64x128xf32>
    %94 = tpu.concatenate %82, %93 in 0 : vector<64x128xf32>, vector<64x128xf32> -> vector<128x128xf32>
    %95 = vector.broadcast %32 : vector<128x1xf32> to vector<128x128xf32>
    %96 = arith.mulf %95, %94 : vector<128x128xf32>
    %97 = arith.addf %64, %96 : vector<128x128xf32>
    %98 = vector.broadcast %30 : vector<128x1xf32> to vector<128x128xf32>
    %99 = arith.mulf %98, %94 : vector<128x128xf32>
    %100 = arith.addf %23, %99 : vector<128x128xf32>
    %101 = arith.truncf %100 : vector<128x128xf32> to vector<128x128xbf16>
    %cst_25 = arith.constant dense<0.000000e+00> : vector<128x128xf32>
    %102 = tpu.matmul %101, %24, %cst_25 {dimension_numbers = #tpu.dot_dimension_numbers<[1], [0], [0], [1], [0, 0, 1, 1], [], []>} : vector<128x128xbf16>, vector<128x128xbf16>, vector<128x128xf32> -> vector<128x128xf32>
    %103 = vector.extract_strided_slice %102 {offsets = [0, 0], sizes = [64, 128], strides = [1, 1]} : vector<128x128xf32> to vector<64x128xf32>
    %104 = vector.broadcast %25 : vector<1x128xf32> to vector<64x128xf32>
    %105 = arith.addf %103, %104 : vector<64x128xf32>
    %106 = math.tanh %105 : vector<64x128xf32>
    %107 = arith.mulf %106, %106 : vector<64x128xf32>
    %cst_26 = arith.constant 1.000000e+00 : f32
    %108 = vector.broadcast %cst_26 : f32 to vector<64x128xf32>
    %109 = arith.subf %108, %107 : vector<64x128xf32>
    %110 = vector.extract_strided_slice %102 {offsets = [64, 0], sizes = [64, 128], strides = [1, 1]} : vector<128x128xf32> to vector<64x128xf32>
    %111 = arith.mulf %109, %110 : vector<64x128xf32>
    %112 = vector.extract_strided_slice %100 {offsets = [0, 0], sizes = [64, 128], strides = [1, 1]} : vector<128x128xf32> to vector<64x128xf32>
    %113 = vector.extract_strided_slice %100 {offsets = [64, 0], sizes = [64, 128], strides = [1, 1]} : vector<128x128xf32> to vector<64x128xf32>
    %cst_27 = arith.constant 0.000000e+00 : f32
    %114 = vector.broadcast %cst_27 : f32 to vector<64x128xf32>
    %115 = arith.subf %114, %113 : vector<64x128xf32>
    %116 = vector.broadcast %6 : f32 to vector<64x128xf32>
    %117 = arith.mulf %116, %106 : vector<64x128xf32>
    %118 = vector.broadcast %3 : f32 to vector<64x128xf32>
    %119 = arith.mulf %118, %113 : vector<64x128xf32>
    %120 = arith.subf %117, %119 : vector<64x128xf32>
    %121 = vector.broadcast %4 : f32 to vector<64x128xf32>
    %122 = arith.mulf %121, %111 : vector<64x128xf32>
    %123 = arith.subf %120, %122 : vector<64x128xf32>
    %124 = vector.broadcast %5 : f32 to vector<64x128xf32>
    %125 = arith.mulf %124, %112 : vector<64x128xf32>
    %126 = arith.addf %123, %125 : vector<64x128xf32>
    %127 = tpu.concatenate %115, %126 in 0 : vector<64x128xf32>, vector<64x128xf32> -> vector<128x128xf32>
    %128 = vector.broadcast %32 : vector<128x1xf32> to vector<128x128xf32>
    %129 = arith.mulf %128, %127 : vector<128x128xf32>
    %130 = arith.addf %97, %129 : vector<128x128xf32>
    %131 = vector.broadcast %28 : vector<128x1xf32> to vector<128x128xf32>
    %132 = arith.mulf %131, %127 : vector<128x128xf32>
    %133 = arith.addf %23, %132 : vector<128x128xf32>
    %134 = arith.truncf %133 : vector<128x128xf32> to vector<128x128xbf16>
    %cst_28 = arith.constant dense<0.000000e+00> : vector<128x128xf32>
    %135 = tpu.matmul %134, %24, %cst_28 {dimension_numbers = #tpu.dot_dimension_numbers<[1], [0], [0], [1], [0, 0, 1, 1], [], []>} : vector<128x128xbf16>, vector<128x128xbf16>, vector<128x128xf32> -> vector<128x128xf32>
    %136 = vector.extract_strided_slice %135 {offsets = [0, 0], sizes = [64, 128], strides = [1, 1]} : vector<128x128xf32> to vector<64x128xf32>
    %137 = vector.broadcast %25 : vector<1x128xf32> to vector<64x128xf32>
    %138 = arith.addf %136, %137 : vector<64x128xf32>
    %139 = math.tanh %138 : vector<64x128xf32>
    %140 = arith.mulf %139, %139 : vector<64x128xf32>
    %cst_29 = arith.constant 1.000000e+00 : f32
    %141 = vector.broadcast %cst_29 : f32 to vector<64x128xf32>
    %142 = arith.subf %141, %140 : vector<64x128xf32>
    %143 = vector.extract_strided_slice %135 {offsets = [64, 0], sizes = [64, 128], strides = [1, 1]} : vector<128x128xf32> to vector<64x128xf32>
    %144 = arith.mulf %142, %143 : vector<64x128xf32>
    %145 = vector.extract_strided_slice %133 {offsets = [0, 0], sizes = [64, 128], strides = [1, 1]} : vector<128x128xf32> to vector<64x128xf32>
    %146 = vector.extract_strided_slice %133 {offsets = [64, 0], sizes = [64, 128], strides = [1, 1]} : vector<128x128xf32> to vector<64x128xf32>
    %cst_30 = arith.constant 0.000000e+00 : f32
    %147 = vector.broadcast %cst_30 : f32 to vector<64x128xf32>
    %148 = arith.subf %147, %146 : vector<64x128xf32>
    %149 = vector.broadcast %6 : f32 to vector<64x128xf32>
    %150 = arith.mulf %149, %139 : vector<64x128xf32>
    %151 = vector.broadcast %3 : f32 to vector<64x128xf32>
    %152 = arith.mulf %151, %146 : vector<64x128xf32>
    %153 = arith.subf %150, %152 : vector<64x128xf32>
    %154 = vector.broadcast %4 : f32 to vector<64x128xf32>
    %155 = arith.mulf %154, %144 : vector<64x128xf32>
    %156 = arith.subf %153, %155 : vector<64x128xf32>
    %157 = vector.broadcast %5 : f32 to vector<64x128xf32>
    %158 = arith.mulf %157, %145 : vector<64x128xf32>
    %159 = arith.addf %156, %158 : vector<64x128xf32>
    %160 = tpu.concatenate %148, %159 in 0 : vector<64x128xf32>, vector<64x128xf32> -> vector<128x128xf32>
    %161 = vector.broadcast %34 : vector<128x1xf32> to vector<128x128xf32>
    %162 = arith.mulf %161, %160 : vector<128x128xf32>
    %163 = arith.addf %130, %162 : vector<128x128xf32>
    %164 = arith.truncf %163 : vector<128x128xf32> to vector<128x128xbf16>
    %cst_31 = arith.constant dense<0.000000e+00> : vector<128x128xf32>
    %165 = tpu.matmul %164, %24, %cst_31 {dimension_numbers = #tpu.dot_dimension_numbers<[1], [0], [0], [1], [0, 0, 1, 1], [], []>} : vector<128x128xbf16>, vector<128x128xbf16>, vector<128x128xf32> -> vector<128x128xf32>
    %166 = vector.extract_strided_slice %165 {offsets = [0, 0], sizes = [64, 128], strides = [1, 1]} : vector<128x128xf32> to vector<64x128xf32>
    %167 = vector.broadcast %25 : vector<1x128xf32> to vector<64x128xf32>
    %168 = arith.addf %166, %167 : vector<64x128xf32>
    %169 = math.tanh %168 : vector<64x128xf32>
    %170 = arith.mulf %169, %169 : vector<64x128xf32>
    %cst_32 = arith.constant 1.000000e+00 : f32
    %171 = vector.broadcast %cst_32 : f32 to vector<64x128xf32>
    %172 = arith.subf %171, %170 : vector<64x128xf32>
    %173 = vector.extract_strided_slice %165 {offsets = [64, 0], sizes = [64, 128], strides = [1, 1]} : vector<128x128xf32> to vector<64x128xf32>
    %174 = arith.mulf %172, %173 : vector<64x128xf32>
    %175 = vector.extract_strided_slice %163 {offsets = [0, 0], sizes = [64, 128], strides = [1, 1]} : vector<128x128xf32> to vector<64x128xf32>
    %176 = vector.extract_strided_slice %163 {offsets = [64, 0], sizes = [64, 128], strides = [1, 1]} : vector<128x128xf32> to vector<64x128xf32>
    %cst_33 = arith.constant 0.000000e+00 : f32
    %177 = vector.broadcast %cst_33 : f32 to vector<64x128xf32>
    %178 = arith.subf %177, %176 : vector<64x128xf32>
    %179 = vector.broadcast %6 : f32 to vector<64x128xf32>
    %180 = arith.mulf %179, %169 : vector<64x128xf32>
    %181 = vector.broadcast %3 : f32 to vector<64x128xf32>
    %182 = arith.mulf %181, %176 : vector<64x128xf32>
    %183 = arith.subf %180, %182 : vector<64x128xf32>
    %184 = vector.broadcast %4 : f32 to vector<64x128xf32>
    %185 = arith.mulf %184, %174 : vector<64x128xf32>
    %186 = arith.subf %183, %185 : vector<64x128xf32>
    %187 = vector.broadcast %5 : f32 to vector<64x128xf32>
    %188 = arith.mulf %187, %175 : vector<64x128xf32>
    %189 = arith.addf %186, %188 : vector<64x128xf32>
    %190 = tpu.concatenate %178, %189 in 0 : vector<64x128xf32>, vector<64x128xf32> -> vector<128x128xf32>
    %191 = vector.broadcast %34 : vector<128x1xf32> to vector<128x128xf32>
    %192 = arith.mulf %191, %190 : vector<128x128xf32>
    %193 = arith.addf %163, %192 : vector<128x128xf32>
    %194 = vector.broadcast %30 : vector<128x1xf32> to vector<128x128xf32>
    %195 = arith.mulf %194, %190 : vector<128x128xf32>
    %196 = arith.addf %163, %195 : vector<128x128xf32>
    %197 = arith.truncf %196 : vector<128x128xf32> to vector<128x128xbf16>
    %cst_34 = arith.constant dense<0.000000e+00> : vector<128x128xf32>
    %198 = tpu.matmul %197, %24, %cst_34 {dimension_numbers = #tpu.dot_dimension_numbers<[1], [0], [0], [1], [0, 0, 1, 1], [], []>} : vector<128x128xbf16>, vector<128x128xbf16>, vector<128x128xf32> -> vector<128x128xf32>
    %199 = vector.extract_strided_slice %198 {offsets = [0, 0], sizes = [64, 128], strides = [1, 1]} : vector<128x128xf32> to vector<64x128xf32>
    %200 = vector.broadcast %25 : vector<1x128xf32> to vector<64x128xf32>
    %201 = arith.addf %199, %200 : vector<64x128xf32>
    %202 = math.tanh %201 : vector<64x128xf32>
    %203 = arith.mulf %202, %202 : vector<64x128xf32>
    %cst_35 = arith.constant 1.000000e+00 : f32
    %204 = vector.broadcast %cst_35 : f32 to vector<64x128xf32>
    %205 = arith.subf %204, %203 : vector<64x128xf32>
    %206 = vector.extract_strided_slice %198 {offsets = [64, 0], sizes = [64, 128], strides = [1, 1]} : vector<128x128xf32> to vector<64x128xf32>
    %207 = arith.mulf %205, %206 : vector<64x128xf32>
    %208 = vector.extract_strided_slice %196 {offsets = [0, 0], sizes = [64, 128], strides = [1, 1]} : vector<128x128xf32> to vector<64x128xf32>
    %209 = vector.extract_strided_slice %196 {offsets = [64, 0], sizes = [64, 128], strides = [1, 1]} : vector<128x128xf32> to vector<64x128xf32>
    %cst_36 = arith.constant 0.000000e+00 : f32
    %210 = vector.broadcast %cst_36 : f32 to vector<64x128xf32>
    %211 = arith.subf %210, %209 : vector<64x128xf32>
    %212 = vector.broadcast %6 : f32 to vector<64x128xf32>
    %213 = arith.mulf %212, %202 : vector<64x128xf32>
    %214 = vector.broadcast %3 : f32 to vector<64x128xf32>
    %215 = arith.mulf %214, %209 : vector<64x128xf32>
    %216 = arith.subf %213, %215 : vector<64x128xf32>
    %217 = vector.broadcast %4 : f32 to vector<64x128xf32>
    %218 = arith.mulf %217, %207 : vector<64x128xf32>
    %219 = arith.subf %216, %218 : vector<64x128xf32>
    %220 = vector.broadcast %5 : f32 to vector<64x128xf32>
    %221 = arith.mulf %220, %208 : vector<64x128xf32>
    %222 = arith.addf %219, %221 : vector<64x128xf32>
    %223 = tpu.concatenate %211, %222 in 0 : vector<64x128xf32>, vector<64x128xf32> -> vector<128x128xf32>
    %224 = vector.broadcast %32 : vector<128x1xf32> to vector<128x128xf32>
    %225 = arith.mulf %224, %223 : vector<128x128xf32>
    %226 = arith.addf %193, %225 : vector<128x128xf32>
    %227 = vector.broadcast %30 : vector<128x1xf32> to vector<128x128xf32>
    %228 = arith.mulf %227, %223 : vector<128x128xf32>
    %229 = arith.addf %163, %228 : vector<128x128xf32>
    %230 = arith.truncf %229 : vector<128x128xf32> to vector<128x128xbf16>
    %cst_37 = arith.constant dense<0.000000e+00> : vector<128x128xf32>
    %231 = tpu.matmul %230, %24, %cst_37 {dimension_numbers = #tpu.dot_dimension_numbers<[1], [0], [0], [1], [0, 0, 1, 1], [], []>} : vector<128x128xbf16>, vector<128x128xbf16>, vector<128x128xf32> -> vector<128x128xf32>
    %232 = vector.extract_strided_slice %231 {offsets = [0, 0], sizes = [64, 128], strides = [1, 1]} : vector<128x128xf32> to vector<64x128xf32>
    %233 = vector.broadcast %25 : vector<1x128xf32> to vector<64x128xf32>
    %234 = arith.addf %232, %233 : vector<64x128xf32>
    %235 = math.tanh %234 : vector<64x128xf32>
    %236 = arith.mulf %235, %235 : vector<64x128xf32>
    %cst_38 = arith.constant 1.000000e+00 : f32
    %237 = vector.broadcast %cst_38 : f32 to vector<64x128xf32>
    %238 = arith.subf %237, %236 : vector<64x128xf32>
    %239 = vector.extract_strided_slice %231 {offsets = [64, 0], sizes = [64, 128], strides = [1, 1]} : vector<128x128xf32> to vector<64x128xf32>
    %240 = arith.mulf %238, %239 : vector<64x128xf32>
    %241 = vector.extract_strided_slice %229 {offsets = [0, 0], sizes = [64, 128], strides = [1, 1]} : vector<128x128xf32> to vector<64x128xf32>
    %242 = vector.extract_strided_slice %229 {offsets = [64, 0], sizes = [64, 128], strides = [1, 1]} : vector<128x128xf32> to vector<64x128xf32>
    %cst_39 = arith.constant 0.000000e+00 : f32
    %243 = vector.broadcast %cst_39 : f32 to vector<64x128xf32>
    %244 = arith.subf %243, %242 : vector<64x128xf32>
    %245 = vector.broadcast %6 : f32 to vector<64x128xf32>
    %246 = arith.mulf %245, %235 : vector<64x128xf32>
    %247 = vector.broadcast %3 : f32 to vector<64x128xf32>
    %248 = arith.mulf %247, %242 : vector<64x128xf32>
    %249 = arith.subf %246, %248 : vector<64x128xf32>
    %250 = vector.broadcast %4 : f32 to vector<64x128xf32>
    %251 = arith.mulf %250, %240 : vector<64x128xf32>
    %252 = arith.subf %249, %251 : vector<64x128xf32>
    %253 = vector.broadcast %5 : f32 to vector<64x128xf32>
    %254 = arith.mulf %253, %241 : vector<64x128xf32>
    %255 = arith.addf %252, %254 : vector<64x128xf32>
    %256 = tpu.concatenate %244, %255 in 0 : vector<64x128xf32>, vector<64x128xf32> -> vector<128x128xf32>
    %257 = vector.broadcast %32 : vector<128x1xf32> to vector<128x128xf32>
    %258 = arith.mulf %257, %256 : vector<128x128xf32>
    %259 = arith.addf %226, %258 : vector<128x128xf32>
    %260 = vector.broadcast %28 : vector<128x1xf32> to vector<128x128xf32>
    %261 = arith.mulf %260, %256 : vector<128x128xf32>
    %262 = arith.addf %163, %261 : vector<128x128xf32>
    %263 = arith.truncf %262 : vector<128x128xf32> to vector<128x128xbf16>
    %cst_40 = arith.constant dense<0.000000e+00> : vector<128x128xf32>
    %264 = tpu.matmul %263, %24, %cst_40 {dimension_numbers = #tpu.dot_dimension_numbers<[1], [0], [0], [1], [0, 0, 1, 1], [], []>} : vector<128x128xbf16>, vector<128x128xbf16>, vector<128x128xf32> -> vector<128x128xf32>
    %265 = vector.extract_strided_slice %264 {offsets = [0, 0], sizes = [64, 128], strides = [1, 1]} : vector<128x128xf32> to vector<64x128xf32>
    %266 = vector.broadcast %25 : vector<1x128xf32> to vector<64x128xf32>
    %267 = arith.addf %265, %266 : vector<64x128xf32>
    %268 = math.tanh %267 : vector<64x128xf32>
    %269 = arith.mulf %268, %268 : vector<64x128xf32>
    %cst_41 = arith.constant 1.000000e+00 : f32
    %270 = vector.broadcast %cst_41 : f32 to vector<64x128xf32>
    %271 = arith.subf %270, %269 : vector<64x128xf32>
    %272 = vector.extract_strided_slice %264 {offsets = [64, 0], sizes = [64, 128], strides = [1, 1]} : vector<128x128xf32> to vector<64x128xf32>
    %273 = arith.mulf %271, %272 : vector<64x128xf32>
    %274 = vector.extract_strided_slice %262 {offsets = [0, 0], sizes = [64, 128], strides = [1, 1]} : vector<128x128xf32> to vector<64x128xf32>
    %275 = vector.extract_strided_slice %262 {offsets = [64, 0], sizes = [64, 128], strides = [1, 1]} : vector<128x128xf32> to vector<64x128xf32>
    %cst_42 = arith.constant 0.000000e+00 : f32
    %276 = vector.broadcast %cst_42 : f32 to vector<64x128xf32>
    %277 = arith.subf %276, %275 : vector<64x128xf32>
    %278 = vector.broadcast %6 : f32 to vector<64x128xf32>
    %279 = arith.mulf %278, %268 : vector<64x128xf32>
    %280 = vector.broadcast %3 : f32 to vector<64x128xf32>
    %281 = arith.mulf %280, %275 : vector<64x128xf32>
    %282 = arith.subf %279, %281 : vector<64x128xf32>
    %283 = vector.broadcast %4 : f32 to vector<64x128xf32>
    %284 = arith.mulf %283, %273 : vector<64x128xf32>
    %285 = arith.subf %282, %284 : vector<64x128xf32>
    %286 = vector.broadcast %5 : f32 to vector<64x128xf32>
    %287 = arith.mulf %286, %274 : vector<64x128xf32>
    %288 = arith.addf %285, %287 : vector<64x128xf32>
    %289 = tpu.concatenate %277, %288 in 0 : vector<64x128xf32>, vector<64x128xf32> -> vector<128x128xf32>
    %290 = vector.broadcast %34 : vector<128x1xf32> to vector<128x128xf32>
    %291 = arith.mulf %290, %289 : vector<128x128xf32>
    %292 = arith.addf %259, %291 : vector<128x128xf32>
    %c0_43 = arith.constant 0 : index
    %c0_44 = arith.constant 0 : index
    %293 = vector.load %arg9[%c0_43, %c0_44] : memref<128x128xf32, #tpu.memory_space<vmem>>, vector<128x128xf32>
    tpu.vector_store %arg9[%c0_43, %c0_44], %292 {strides = array<i32>} : memref<128x128xf32, #tpu.memory_space<vmem>>, vector<128x128xf32>,
    %294 = vector.extract_strided_slice %292 {offsets = [0, 0], sizes = [64, 128], strides = [1, 1]} : vector<128x128xf32> to vector<64x128xf32>
    %c0_45 = arith.constant 0 : index
    %c0_46 = arith.constant 0 : index
    %c0_47 = arith.constant 0 : index
    %c0_48 = arith.constant 0 : index
    %295 = vector.load %arg8[%c0_45, %c0_46, %c0_47, %c0_48] : memref<1x64x2x128xf32, #tpu.memory_space<vmem>>, vector<1x64x1x128xf32>
    %296 = vector.shape_cast %295 : vector<1x64x1x128xf32> to vector<64x128xf32>
    %297 = vector.shape_cast %294 : vector<64x128xf32> to vector<1x64x1x128xf32>
    tpu.vector_store %arg8[%c0_45, %c0_46, %c0_47, %c0_48], %297 {strides = array<i32>} : memref<1x64x2x128xf32, #tpu.memory_space<vmem>>, vector<1x64x1x128xf32>,
    %298 = vector.extract_strided_slice %292 {offsets = [64, 0], sizes = [64, 128], strides = [1, 1]} : vector<128x128xf32> to vector<64x128xf32>
    %c0_49 = arith.constant 0 : index
    %c0_50 = arith.constant 0 : index
    %c1_51 = arith.constant 1 : index
    %c0_52 = arith.constant 0 : index
    %299 = vector.load %arg8[%c0_49, %c0_50, %c1_51, %c0_52] : memref<1x64x2x128xf32, #tpu.memory_space<vmem>>, vector<1x64x1x128xf32>
    %300 = vector.shape_cast %299 : vector<1x64x1x128xf32> to vector<64x128xf32>
    %301 = vector.shape_cast %298 : vector<64x128xf32> to vector<1x64x1x128xf32>
    tpu.vector_store %arg8[%c0_49, %c0_50, %c1_51, %c0_52], %301 {strides = array<i32>} : memref<1x64x2x128xf32, #tpu.memory_space<vmem>>, vector<1x64x1x128xf32>,
    return
  }
  func.func @transform_0(%arg0: i32, %arg1: i32) -> i32 {
    %c0_i32 = arith.constant 0 : i32
    %c0_i32_0 = arith.constant 0 : i32
    return %c0_i32 : i32
  }
  func.func @transform_1(%arg0: i32, %arg1: i32) -> (i32, i32, i32) {
    %c0_i32 = arith.constant 0 : i32
    %c0_i32_0 = arith.constant 0 : i32
    return %arg1, %arg0, %c0_i32 : i32, i32, i32
  }
  func.func @transform_2(%arg0: i32, %arg1: i32) -> (i32, i32, i32) {
    %c0_i32 = arith.constant 0 : i32
    %c0_i32_0 = arith.constant 0 : i32
    return %arg1, %arg0, %c0_i32 : i32, i32, i32
  }
  func.func @transform_3(%arg0: i32, %arg1: i32) -> (i32, i32) {
    %c0_i32 = arith.constant 0 : i32
    %c0_i32_0 = arith.constant 0 : i32
    %c0_i32_1 = arith.constant 0 : i32
    return %c0_i32, %c0_i32_0 : i32, i32
  }
  func.func @transform_4(%arg0: i32, %arg1: i32) -> (i32, i32) {
    %c0_i32 = arith.constant 0 : i32
    %c0_i32_0 = arith.constant 0 : i32
    %c0_i32_1 = arith.constant 0 : i32
    return %c0_i32, %c0_i32_0 : i32, i32
  }
  func.func @transform_5(%arg0: i32, %arg1: i32) -> (i32, i32) {
    %c0_i32 = arith.constant 0 : i32
    %c0_i32_0 = arith.constant 0 : i32
    %c0_i32_1 = arith.constant 0 : i32
    return %c0_i32, %c0_i32_0 : i32, i32
  }
  func.func @transform_6(%arg0: i32, %arg1: i32) -> (i32, i32, i32, i32) {
    %c0_i32 = arith.constant 0 : i32
    %c0_i32_0 = arith.constant 0 : i32
    %c0_i32_1 = arith.constant 0 : i32
    return %arg1, %arg0, %c0_i32, %c0_i32_0 : i32, i32, i32, i32
  }
}

</mosaic_0001>

<bundles_post_ra>
// kernel: tpu_custom_call.1
= control target key start
LH: loop header
LB: loop body
LE: loop exit
PB: predicated region body
PF: predicated region fallthrough
CT: control target
= control target key end

     0   :  { %s8465_s0 = inlined_call_operand.vmem [shape: f32[4], index: 0, kind: input, shape index: {}]   ;;  %s8466_s1 = inlined_call_operand.vmem [shape: f32[5,128,1], index: 1, kind: input, shape index: {}]   ;;  %s8467_s2 = inlined_call_operand.hbm [shape: f32[5,128,256], index: 2, kind: input, shape index: {}]   ;;  %s8468_s3 = inlined_call_operand.vmem [shape: bf16[128,128], index: 3, kind: input, shape index: {}]   ;;  %s8469_s4 = inlined_call_operand.vmem [shape: f32[1,128], index: 4, kind: input, shape index: {}]   ;;  %s8470_s5 = inlined_call_operand.vmem [shape: bf16[128,128], index: 5, kind: input, shape index: {}]   ;;  %s8471_s6 = inlined_call_operand.hbm [shape: f32[5,128,2,128], index: 6, kind: output, shape index: {}]  }
   0x1   :  { %8758 = sst [smem:[#allocation103_spill]] %s8465_s0 }
   0x2   :  { %8759 = sst [smem:[#allocation104_spill]] %s8471_s6 }
   0x3   :  { %11 = vsyncpa [#allocation6], 0 }
   0x4   :  { %12 = vsyncpa [#allocation4], 0 }
   0x5   :  { %14 = vsyncpa [#allocation4 + $0x1], 0 }
   0x6   :  { %15 = vsyncpa [#allocation5], 0 }
   0x7   :  { %17 = vsyncpa [#allocation5 + $0x1], 0  ;;  %s5245_s21 = smov 0   ;;  %s5247_s22 = smov 0  }
   0x8   :  { %s5249_s23 = smov 0   ;;  %s5251_s24 = smov 0  }
   0x9   :  { %s5253_s25 = smov 0   ;;  %s5255_s26 = smov 0  }
   0xa   :  { %s5257_s27 = smov 0   ;;  %s5259_s28 = smov 0  }
   0xb LB: > { %8760 = sst [smem:[#allocation12_spill]] %s5170_s21  ;;  %s4202_s29 = sadd.s32 4294967295, %s5198_s28   ;;  %s5198_s28 = sphi %s5259_s28, %s23_s28   ;;  %s5194_s27 = sphi %s5257_s27, %s9320_s27   ;;  %s5190_s26 = sphi %s5255_s26, %s9319_s26   ;;  %s5186_s25 = sphi %s5253_s25, %s9318_s25   ;;  %s5182_s24 = sphi %s5251_s24, %s9313_s24   ;;  %s5178_s23 = sphi %s5249_s23, %s9317_s23   ;;  %s5174_s22 = sphi %s5247_s22, %s9316_s22   ;;  %s5170_s21 = sphi %s5245_s21, %s9315_s21  }
   0xc   : > { %8761 = sst [smem:[#allocation13_spill]] %s5190_s26  ;;  %s4203_s30 = sadd.s32 4294967294, %s5198_s28  }
   0xd   : > { %8762 = sst [smem:[#allocation14_spill]] %s5198_s28  ;;  %p100_p0 = scmp.ne.s32.totalorder %s5178_s23, %s5174_s22 }
   0xe   : > { %p101_p1 = scmp.eq.s32.totalorder %s5198_s28, 0  ;;  %p106_p2 = scmp.ne.s32.totalorder %s5174_s22, %s5170_s21 }
   0xf   : > { %p5293_p3 = scmp.eq.s32.totalorder %s4202_s29, 0  ;;  %p195_p4 = scmp.eq.s32.totalorder %s4202_s29, 9 }
  0x10   : > { %p102_p5 = por %p101_p1, %p100_p0  ;;  %p201_p6 = scmp.eq.s32.totalorder %s4203_s30, 9 }
  0x11   : > { %p5299_p7 = por %p5293_p3, %p106_p2  ;;  %p5303_p8 = por %p195_p4, %p100_p0 }
  0x12   : > { %p5307_p9 = por %p201_p6, %p106_p2  ;;  %p4204_p10 = scmp.ge.s32.totalorder %s5198_s28, 1 }
  0x13   : > { %s8764_s9 = scalar_select %p5299_p7, 1, 0 }
  0x14   : > { %s8765_s10 = scalar_select %p5303_p8, 1, 0 }
  0x15   : > { %s8767_s11 = scalar_select %p5307_p9, 1, 0 }
  0x16   : > { %8766 = sst [smem:[#allocation15_spill]] %s8765_s10  ;;  %p208_p11 = scmp.lt.s32.totalorder %s5198_s28, 11 }
  0x17   : > { %8768 = sst [smem:[#allocation16_spill]] %s8767_s11  ;;  %s8769_s0 = sld [smem:[#allocation103_spill]] }
  0x18   : > { %p5316_p12 = pnand %p4204_p10, %p208_p11  ;;  %p4780_p13 = scmp.lt.s32.totalorder %s5198_s28, 10 }
  0x19   : > { %s32_s17 = sadd.s32 1, %s5190_s26 }
  0x1a   : > { %s8770_s15 = scalar_select %p5316_p12, 1, 0 }
  0x1b   : > { %p4767_p0 = pneg %p5316_p12  ;;  %p5323_p1 = pnand %p4780_p13, %p102_p5 }
  0x1d   : > { %s221_s14 = sshll.u32 %s8769_s0, 4  ;;  %p4768_p2 = pnand %p4767_p0, %p5293_p3  ;;  %s222_s14 = int_to_ptr.vmem [resolvable:$true] %s221_s14 }
  0x1e   : > { %s5051_s18 = scalar_lea.vmem %s222_s14, 16  ;;  %p5059_p11 = scmp.lt.s32.totalorder %s222_s14, %s222_s14 }
  0x1f   : > { %p5052_p4 = scmp.ne.s32.totalorder %s222_s14, %s5051_s18  ;;  %p5053_p6 = pneg %p4768_p2 }
  0x20   : > { %p5060_p8 = scmp.lt.s32.totalorder %s5051_s18, %s5051_s18 }
  0x21   : > { %p5054_p9 = pnand %p5053_p6, %p5052_p4 }
  0x22   : > { %p5061_p7 = por %p5060_p8, %p5059_p11 }
  0x23   : > { %p5055_p10 = pneg %p5054_p9 }
  0x25   : > { %p5062_p12 = pnand %p5061_p7, %p5055_p10 }
  0x27   : > { %5065 = shalt.err (!%p5062_p12)
}
  0x28   : > { %s5200_s19 = smov [#allocation3]   ;;  %p33_p5 = scmp.ge.s32.totalorder %s32_s17, 5 }
  0x29   : > { %4770 = dma.vmem_to_smem (!%p4768_p2), %s222_s14, 16, %s5200_s19, [#allocation6]  }
  0x2a   : > { %s35_s20 = sadd.s32 1, %s5194_s27  ;;  %s254_s29 = sand.u32 1, %s5178_s23  }
  0x2b   : > { %s4310_s30 = sshll.u32 %s5194_s27, 4  ;;  %s9322_s17 = smov (%p33_p5, %s32_s17), 0 }
  0x2c   : > { %8772 = sst [smem:[#allocation17_spill]] %s9322_s17  ;;  %s9324_s20 = smov (!%p33_p5, %s35_s20), %s5194_s27 }
  0x2d   : > { %s88_s12 = ssub.s32 %s5190_s26, %s9322_s17  ;;  %p37_p7 = scmp.ge.s32.totalorder %s9324_s20, 2 }
  0x2e   : > { %s4207_s13 = sshll.u32 %s254_s29, 7  ;;  %s4210_s18 = sshll.u32 %s5190_s26, 5 }
  0x2f   : > { %s9326_s20 = smov (%p37_p7, %s9324_s20), 0  ;;  %s265_s14 = sadd.s32 %s4310_s30, %s4210_s18 }
  0x30   : > { %s258_s19 = scalar_lea.vmem [#allocation7], %s4207_s13  ;;  %s89_s0 = ssub.s32 %s5194_s27, %s9326_s20 }
  0x31   : > { %s268_s7 = sshll.u32 %s258_s19, 4  ;;  %s4211_s11 = sshll.u32 %s265_s14, 7  ;;  %s5348_s7 = int_to_ptr.vmem [resolvable:$true] %s268_s7 }
  0x32   : > { %s90_s21 = sor.u32 %s89_s0, %s88_s12  ;;  %s5346_s10 = scalar_lea.hbm %s8467_s2, %s4211_s11 }
  0x33   : > { %p91_p8 = scmp.eq.s32.totalorder %s90_s21, 0  ;;  %s8773_s17 = sadd.s32 1, %s5178_s23 }
  0x34   : > { %s5355_s30 = scalar_lea.sflag [#allocation4], %s254_s29  ;;  %s5066_s13 = scalar_lea.hbm %s5346_s10, 2048 }
  0x35   : > { %s5353_s26 = scalar_select %p91_p8, %s5178_s23, %s8773_s17  }
  0x36   : > { %p5067_p9 = scmp.ne.s32.totalorder %s5346_s10, %s5066_s13  ;;  %p5068_p12 = pneg %p5323_p1 }
  0x37   : > { %s5071_s28 = scalar_lea.hbm %s8467_s2, 20480  ;;  %p5072_p2 = scmp.lt.u32.totalorder %s5346_s10, %s8467_s2 }
  0x38   : > { %p5069_p13 = pnand %p5068_p12, %p5067_p9  ;;  %p5073_p4 = scmp.lt.u32.totalorder %s5071_s28, %s5066_s13 }
  0x39   : > { %p5075_p10 = scmp.lt.u32.totalorder %s5066_s13, %s5346_s10 }
  0x3a   : > { %p5070_p0 = pneg %p5069_p13  ;;  %p5074_p6 = por %p5073_p4, %p5072_p2 }
  0x3c   : > { %p5076_p11 = por %p5075_p10, %p5074_p6 }
  0x3e   : > { %p5077_p5 = pnand %p5076_p11, %p5070_p0 }
  0x40   : > { %5080 = shalt.err (!%p5077_p5)
}
  0x41   : > { %s5081_s17 = scalar_lea.vmem %s5348_s7, 2048  ;;  %s5201_s29 = smov [#allocation7]  }
  0x42   : > { %p5082_p7 = scmp.ne.s32.totalorder %s5348_s7, %s5081_s17  ;;  %s5086_s12 = sshll.u32 %s5201_s29, 4  ;;  %s5087_s12 = int_to_ptr.vmem [resolvable:$false] %s5086_s12 }
  0x43   : > { %s5088_s18 = scalar_lea.vmem %s5087_s12, 4096  ;;  %p5089_p13 = scmp.lt.s32.totalorder %s5348_s7, %s5087_s12 }
  0x44   : > { %p5084_p8 = pnand %p5082_p7, %p5068_p12  ;;  %p5090_p2 = scmp.lt.s32.totalorder %s5088_s18, %s5081_s17 }
  0x46   : > { %p5085_p9 = pneg %p5084_p8  ;;  %p5091_p4 = por %p5090_p2, %p5089_p13 }
  0x48   : > { %p5092_p6 = pnand %p5091_p4, %p5085_p9 }
  0x4a   : > { %5095 = shalt.err (!%p5092_p6)
}
  0x4b   : > { %s5202_s14 = smov 256   ;;  %s5203_s19 = smov 16  }
  0x4c   : > { %4774 = dma.hbm_to_vmem [thread:$0]  (!%p5323_p1), %s5346_s10, 2048, %s5348_s7, %s5355_s30, %s5202_s14, %s5202_s14, %s5203_s19  }
  0x4d   : > { %p8774_p12 = scmp.ne.s32.totalorder %s8770_s15, 0 }
  0x4f   : > { %280 = sbr.rel (%p8774_p12) target bundleno = 2301 (0x8fd), region = 44 }
  0x56   : > { %5157 = dma.done.wait (%p5293_p3), [#allocation6], 16  }
  0x57   : > { %5159 = vsyncadd (%p5293_p3), [#allocation6], 4294967280  ;;  %s5390_s13 = sand.u32 1, %s5174_s22   ;;  %p8775_p1 = scmp.ne.s32.totalorder %s8764_s9, 0 }
  0x58   : > { %s4214_s0 = sshll.u32 %s5390_s13, 7  ;;  %s287_s6 = scalar_lea.sflag [#allocation4], %s5390_s13 }
  0x59   : > { %s5394_s28 = scalar_lea.vmem [#allocation7], %s4214_s0 }
  0x5a   : > { %5161 = dma.done.wait (%p8775_p1), %s287_s6, 2048  }
  0x5b   : > { %5163 = vsyncadd (%p8775_p1), %s287_s6, 4294965248 }
  0x5c   : > { %295 = sfence }
  0x5d   : > { %s4216_s7 = sshll.u32 %s5186_s25, 3  ;;  %p330_p3 = scmp.lt.s32.totalorder %s5182_s24, 4 }
  0x5e   : > { %p332_p0 = scmp.lt.s32.totalorder %s4216_s7, 15  ;;  %s5408_s17 = scalar_lea.vmem [#allocation8], %s4214_s0 }
  0x5f   : > { %s331_s8 = scalar_select %p330_p3, %s5182_s24, 4 }
  0x60   : > { %s9328_s7 = smov (!%p332_p0, %s4216_s7), 15  ;;  %p4219_p10 = scmp.ne.s32.totalorder %s5182_s24, 0 }
  0x61   : > { %s4217_s10 = sshll.u32 %s331_s8, 4  ;;  %v5204_v0 = vmov (!%p4219_p10), 0.0  }
  0x62   : > { %s335_s15 = sadd.s32 %s4217_s10, %s9328_s7  ;;  %345 = sbr.rel (%p4219_p10) target bundleno = 106 (0x6a), region = 56  ;;  %346 = vst [vmem:[#allocation2] sm:$0xff] (!%p4219_p10), %v5204_v0  ;;  %347 = vst [vmem:[#allocation2 + $0x8] sm:$0xff] (!%p4219_p10), %v5204_v0 }
  0x63   : > { %s4218_s16 = sshll.u32 %s335_s15, 3  ;;  %348 = vst [vmem:[#allocation2 + $0x10] sm:$0xff] (!%p4219_p10), %v5204_v0  ;;  %349 = vst [vmem:[#allocation2 + $0x18] sm:$0xff] (!%p4219_p10), %v5204_v0 }
  0x64   : > { %s5406_s11 = scalar_lea.vmem %s8466_s1, %s4218_s16  ;;  %350 = vst [vmem:[#allocation2 + $0x20] sm:$0xff] (!%p4219_p10), %v5204_v0  ;;  %351 = vst [vmem:[#allocation2 + $0x28] sm:$0xff] (!%p4219_p10), %v5204_v0 }
  0x65   : > { %352 = vst [vmem:[#allocation2 + $0x30] sm:$0xff] (!%p4219_p10), %v5204_v0  ;;  %353 = vst [vmem:[#allocation2 + $0x38] sm:$0xff] (!%p4219_p10), %v5204_v0 }
  0x66   : > { %354 = vst [vmem:[#allocation2 + $0x40] sm:$0xff] (!%p4219_p10), %v5204_v0  ;;  %355 = vst [vmem:[#allocation2 + $0x48] sm:$0xff] (!%p4219_p10), %v5204_v0 }
  0x67   : > { %356 = vst [vmem:[#allocation2 + $0x50] sm:$0xff] (!%p4219_p10), %v5204_v0  ;;  %357 = vst [vmem:[#allocation2 + $0x58] sm:$0xff] (!%p4219_p10), %v5204_v0 }
  0x68   : > { %358 = vst [vmem:[#allocation2 + $0x60] sm:$0xff] (!%p4219_p10), %v5204_v0  ;;  %359 = vst [vmem:[#allocation2 + $0x68] sm:$0xff] (!%p4219_p10), %v5204_v0 }
  0x69   : > { %360 = vst [vmem:[#allocation2 + $0x70] sm:$0xff] %v5204_v0  ;;  %361 = vst [vmem:[#allocation2 + $0x78] sm:$0xff] %v5204_v0 }
  0x6a PF: > { %v4857_v1 = vld [vmem:[%s8470_s5] sm:$0xff]   ;;  %v4858_v2 = vld [vmem:[%s8470_s5 + $0x8] sm:$0xff]   ;;  %v5205_v3 = vmov 0   ;;  %v4859_v4 = vld [vmem:[%s8470_s5 + $0x10] sm:$0xff]   ;;  %s4221_s12 = sld [smem:[#allocation3 + $0x2]]  ;;  %s4222_s18 = sld [smem:[#allocation3 + $0x3]] }
  0x6b   : > { %4855 = vset.pattern.permute.xlu0 %v5205_v3  ;;  %4856 = vset.pattern.permute.xlu1 %v5205_v3  ;;  %v4860_v5 = vld [vmem:[%s8470_s5 + $0x18] sm:$0xff]   ;;  %v366_v6 = vld [vmem:[#allocation2] sm:$0xff]  ;;  %v367_v7 = vld [vmem:[#allocation2 + $0x8] sm:$0xff]  ;;  %s5783_s14 = sld [smem:[#allocation3 + $0x1]]  ;;  %s4305_s6 = sshll.u32 %s5186_s25, 6 }
  0x6c   : > { %4455 = vmatprep.subr.bf16.mxu0 %v4857_v1  ;;  %v406_v8 = vpack.c.bf16 %v367_v7, %v366_v6  ;;  %v4861_v9 = vld [vmem:[%s8470_s5 + $0x20] sm:$0xff]   ;;  %v400_v11 = vld [vmem:[%s5406_s11 + $0x10] sm:$0xff]  ;;  %v399_v14 = vld [vmem:[%s5406_s11 + $0x8] sm:$0xff]  ;;  %s4306_s7 = sshll.u32 %s5182_s24, 7  ;;  %s4082_s25 = sshll.u32 %s5408_s17, 4  ;;  %s8403_s25 = int_to_ptr.vmem [resolvable:$true] %s4082_s25 }
  0x6d   : > { %4456 = vmatpush3.bf16.msra.mxu0 %v4857_v1  ;;  %v398_v10 = vld [vmem:[%s5406_s11] sm:$0xff]  ;;  %v5430_v13 = vmul.f32 0.5, %v400_v11  ;;  %v401_v15 = vld [vmem:[%s5406_s11 + $0x18] sm:$0xff]  ;;  %v5434_v16 = vmul.f32 0.5, %v399_v14  ;;  %v403_v19 = vld [vmem:[%s5406_s11 + $0x28] sm:$0xff]  ;;  %s4079_s24 = sadd.s32 %s4306_s7, %s4305_s6  ;;  %s9306_s8 = sld [smem:[#allocation15_spill]] }
  0x6e   : > { %4457 = vmatprep.subr.bf16.mxu0 %v4858_v2  ;;  %4471 = vmatprep.mubr.bf16.mxu0 %v406_v8  ;;  %v5428_v12 = vmul.f32 0.5, %v398_v10  ;;  %v5436_v17 = vmul.f32 0.5, %v401_v15  ;;  %v402_v18 = vld [vmem:[%s5406_s11 + $0x20] sm:$0xff]  ;;  %v4862_v20 = vld [vmem:[%s8470_s5 + $0x28] sm:$0xff]   ;;  %v404_v23 = vld [vmem:[%s5406_s11 + $0x30] sm:$0xff]  ;;  %v5450_v27 = vmul.f32 0.5, %v403_v19 }
  0x6f   : > { %v634_v22 = vmul.f32 0.5, %v5430_v13  ;;  %v633_v24 = vmul.f32 0.5, %v5434_v16  ;;  %v5448_v26 = vmul.f32 0.5, %v402_v18  ;;  %v405_v28 = vld [vmem:[%s5406_s11 + $0x38] sm:$0xff]  ;;  %v5453_v29 = vmul.f32 0.5, %v404_v23  ;;  %v5458_v30 = vld [vmem:[%s8468_s3] sm:$0xff]  }
  0x70   : > { %v632_v21 = vmul.f32 0.5, %v5428_v12  ;;  %v635_v25 = vmul.f32 0.5, %v5436_v17  ;;  %v4863_v31 = vld [vmem:[%s8470_s5 + $0x30] sm:$0xff]   ;;  %v5463_v32 = vmul.f32 0.5, %v405_v28  ;;  %4487 = vmatprep.subr.bf16.mxu1 %v5458_v30  ;;  %v4864_v33 = vld [vmem:[%s8470_s5 + $0x38] sm:$0xff]   ;;  %v637_v35 = vmul.f32 0.5, %v5450_v27 }
  0x71   : > { %4458 = vmatpush3.bf16.msra.mxu0 %v4858_v2  ;;  %1007 = vperm.xlu1 %4856, %v634_v22   ;;  %v636_v34 = vmul.f32 0.5, %v5448_v26  ;;  %v638_v36 = vmul.f32 0.5, %v5453_v29  ;;  %v5476_v37 = vld [vmem:[%s8468_s3 + $0x8] sm:$0xff]   ;;  %v368_v38 = vld [vmem:[#allocation2 + $0x10] sm:$0xff]  ;;  %v369_v39 = vld [vmem:[#allocation2 + $0x18] sm:$0xff]  ;;  %s362_s11 = sld [smem:[#allocation3]] }
  0x72   : > { %4459 = vmatprep.subr.bf16.mxu0 %v4859_v4  ;;  %997 = vperm.xlu0 %4855, %v632_v21   ;;  %v639_v40 = vmul.f32 0.5, %v5463_v32  ;;  %v5483_v41 = vld [vmem:[%s8468_s3 + $0x10] sm:$0xff]   ;;  %v370_v42 = vld [vmem:[#allocation2 + $0x20] sm:$0xff]  ;;  %v371_v43 = vld [vmem:[#allocation2 + $0x28] sm:$0xff]  ;;  %v407_v44 = vpack.c.bf16 %v369_v39, %v368_v38  ;;  %v648_v57 = vmul.f32 0.16666667, %v5428_v12 }
  0x73   : > { %4488 = vmatpush3.bf16.msra.mxu1 %v5458_v30  ;;  %v408_v45 = vpack.c.bf16 %v371_v43, %v370_v42  ;;  %v372_v46 = vld [vmem:[#allocation2 + $0x30] sm:$0xff]  ;;  %v373_v47 = vld [vmem:[#allocation2 + $0x38] sm:$0xff]  ;;  %v374_v48 = vld [vmem:[#allocation2 + $0x40] sm:$0xff]  ;;  %v649_v59 = vmul.f32 0.16666667, %v5434_v16  ;;  %s4307_s10 = sshll.u32 %s4079_s24, 5 }
  0x74   : > { %4489 = vmatprep.subr.bf16.mxu1 %v5476_v37  ;;  %v375_v49 = vld [vmem:[#allocation2 + $0x48] sm:$0xff]  ;;  %v409_v50 = vpack.c.bf16 %v373_v47, %v372_v46  ;;  %v376_v52 = vld [vmem:[#allocation2 + $0x50] sm:$0xff]  ;;  %v377_v53 = vld [vmem:[#allocation2 + $0x58] sm:$0xff]  ;;  %v650_v60 = vmul.f32 0.16666667, %v5430_v13  ;;  %s9307_s30 = sld [smem:[#allocation104_spill]] }
  0x75   : > { %4460 = vmatpush3.bf16.msra.mxu0 %v4859_v4  ;;  %1012 = vperm.xlu1 %4856, %v635_v25   ;;  %v410_v51 = vpack.c.bf16 %v375_v49, %v374_v48  ;;  %v378_v54 = vld [vmem:[#allocation2 + $0x60] sm:$0xff]  ;;  %v379_v55 = vld [vmem:[#allocation2 + $0x68] sm:$0xff]  ;;  %v411_v56 = vpack.c.bf16 %v377_v53, %v376_v52  ;;  %v380_v61 = vld [vmem:[#allocation2 + $0x70] sm:$0xff]  ;;  %v651_v63 = vmul.f32 0.16666667, %v5436_v17  ;;  %s4067_s9 = scalar_lea.sflag [#allocation5], %s5390_s13 }
  0x76   : > { %4461 = vmatprep.subr.bf16.mxu0 %v4860_v5  ;;  %1002 = vperm.xlu0 %4855, %v633_v24   ;;  %v412_v58 = vpack.c.bf16 %v379_v55, %v378_v54  ;;  %v381_v62 = vld [vmem:[#allocation2 + $0x78] sm:$0xff]  ;;  %v640_v1 = vmul.f32 0.33333334, %v5428_v12  ;;  %v641_v2 = vmul.f32 0.33333334, %v5434_v16  ;;  %v5526_v10 = vld [vmem:[%s8468_s3 + $0x20] sm:$0xff]  }
  0x77   : > { %4490 = vmatpush3.bf16.msra.mxu1 %v5476_v37  ;;  %v413_v0 = vpack.c.bf16 %v381_v62, %v380_v61  ;;  %v642_v3 = vmul.f32 0.33333334, %v5430_v13  ;;  %v643_v4 = vmul.f32 0.33333334, %v5436_v17  ;;  %v653_v6 = vmul.f32 0.16666667, %v5450_v27 }
  0x78   : > { %4491 = vmatprep.subr.bf16.mxu1 %v5483_v41  ;;  %v654_v7 = vmul.f32 0.16666667, %v5453_v29  ;;  %v655_v8 = vmul.f32 0.16666667, %v5463_v32  ;;  %8777 = vst [vmem:[#allocation19_spill] sm:$0xff] %v5526_v10  ;;  %v5535_v11 = vld [vmem:[%s8468_s3 + $0x28] sm:$0xff]  }
  0x79   : > { %4462 = vmatpush3.bf16.msra.mxu0 %v4860_v5  ;;  %1022 = vperm.xlu1 %4856, %v637_v35   ;;  %v652_v5 = vmul.f32 0.16666667, %v5448_v26  ;;  %8778 = vst [vmem:[#allocation20_spill] sm:$0xff] %v5535_v11  ;;  %v644_v14 = vmul.f32 0.33333334, %v5448_v26  ;;  %v382_v18 = vld [vmem:[%s5394_s28] sm:$0xff] }
  0x7a   : > { %4463 = vmatprep.subr.bf16.mxu0 %v4861_v9  ;;  %1017 = vperm.xlu0 %4855, %v636_v34   ;;  %v645_v15 = vmul.f32 0.33333334, %v5450_v27  ;;  %v386_v19 = vld [vmem:[%s5394_s28 + $0x20] sm:$0xff]  ;;  %v388_v21 = vld [vmem:[%s5394_s28 + $0x30] sm:$0xff]  ;;  %v387_v46 = vld [vmem:[%s5394_s28 + $0x28] sm:$0xff]  ;;  %s8410_s21 = scalar_lea.hbm %s9307_s30, %s4307_s10  ;;  %p9308_p5 = scmp.ne.s32.totalorder %s9306_s8, 0 }
  0x7b   : > { %4492 = vmatpush3.bf16.msra.mxu1 %v5483_v41  ;;  %v384_v23 = vld [vmem:[%s5394_s28 + $0x10] sm:$0xff]  ;;  %v383_v48 = vld [vmem:[%s5394_s28 + $0x8] sm:$0xff]  ;;  %v385_v55 = vld [vmem:[%s5394_s28 + $0x18] sm:$0xff]  ;;  %s5207_s29 = smov [#allocation8]  }
  0x7c   : > { %v396_v34 = vld [vmem:[%s5394_s28 + $0x70] sm:$0xff] }
  0x7d   : > { %4464 = vmatpush3.bf16.msra.mxu0 %v4861_v9  ;;  %1032 = vperm.xlu1 %4856, %v639_v40   ;;  %v5517_v9 = vld [vmem:[%s8468_s3 + $0x18] sm:$0xff]  }
  0x7e   : > { %4465 = vmatprep.subr.bf16.mxu0 %v4862_v20  ;;  %1027 = vperm.xlu0 %4855, %v638_v36   ;;  %8776 = vst [vmem:[#allocation18_spill] sm:$0xff] %v5517_v9  ;;  %v392_v36 = vld [vmem:[%s5394_s28 + $0x50] sm:$0xff] }
  0x7f   : > { %4493 = vmatprep.subr.bf16.mxu1 %v5517_v9 }
  0x80   : > { %4494 = vmatpush3.bf16.msra.mxu1 %v5517_v9 }
  0x81   : > { %4466 = vmatpush3.bf16.msra.mxu0 %v4862_v20  ;;  %1628 = vperm.xlu1 %4856, %v5434_v16   ;;  %v646_v16 = vmul.f32 0.33333334, %v5453_v29 }
  0x82   : > { %4467 = vmatprep.subr.bf16.mxu0 %v4863_v31  ;;  %1623 = vperm.xlu0 %4855, %v5428_v12   ;;  %v5544_v12 = vld [vmem:[%s8468_s3 + $0x30] sm:$0xff]  }
  0x83   : > { %4495 = vmatprep.subr.bf16.mxu1 %v5526_v10  ;;  %8779 = vst [vmem:[#allocation21_spill] sm:$0xff] %v5544_v12 }
  0x84   : > { %4496 = vmatpush3.bf16.msra.mxu1 %v5526_v10 }
  0x85   : > { %4468 = vmatpush3.bf16.msra.mxu0 %v4863_v31  ;;  %1638 = vperm.xlu1 %4856, %v5436_v17   ;;  %v647_v17 = vmul.f32 0.33333334, %v5463_v32  ;;  %v390_v31 = vld [vmem:[%s5394_s28 + $0x40] sm:$0xff] }
  0x86   : > { %4469 = vmatprep.subr.bf16.mxu0 %v4864_v33  ;;  %1633 = vperm.xlu0 %4855, %v5430_v13   ;;  %v5553_v13 = vld [vmem:[%s8468_s3 + $0x38] sm:$0xff]  }
  0x87   : > { %4497 = vmatprep.subr.bf16.mxu1 %v5535_v11  ;;  %8780 = vst [vmem:[#allocation22_spill] sm:$0xff] %v5553_v13 }
  0x88   : > { %4498 = vmatpush3.bf16.msra.mxu1 %v5535_v11 }
  0x89   : > { %4470 = vmatpush3.bf16.msra.mxu0 %v4864_v33  ;;  %1648 = vperm.xlu1 %4856, %v5450_v27  }
  0x8a   : > { %4519 = vmatprep.subr.bf16.mxu0 %v5458_v30  ;;  %1643 = vperm.xlu0 %4855, %v5448_v26  }
  0x8b   : > { %4499 = vmatprep.subr.bf16.mxu1 %v5544_v12 }
  0x8c   : > { %4472 = vmatmul.mubr.bf16.vlgmr.msra.gmra.mrb[0].mxu0 %v407_v44  ;;  %4500 = vmatpush3.bf16.msra.mxu1 %v5544_v12 }
  0x8d   : > { %4475 = vmatprep.mubr.bf16.mxu0 %v408_v45  ;;  %4520 = vmatpush3.bf16.msra.mxu0 %v5458_v30 }
  0x8e   : > { %4521 = vmatprep.subr.bf16.mxu0 %v5476_v37  ;;  %1653 = vperm.xlu0 %4855, %v5453_v29  }
  0x8f   : > { %1658 = vperm.xlu1 %4856, %v5463_v32   ;;  %4501 = vmatprep.subr.bf16.mxu1 %v5553_v13  ;;  %v394_v32 = vld [vmem:[%s5394_s28 + $0x60] sm:$0xff] }
  0x90   : > { %4502 = vmatpush3.bf16.msra.mxu1 %v5553_v13 }
  0x91   : > { %4522 = vmatpush3.bf16.msra.mxu0 %v5476_v37  ;;  %4551 = vmatprep.subr.bf16.mxu1 %v5458_v30 }
  0x92   : > { %4523 = vmatprep.subr.bf16.mxu0 %v5483_v41  ;;  %925 = vperm.xlu0 %4855, %v648_v57  }
  0x93   : > { %930 = vperm.xlu1 %4856, %v649_v59  }
  0x94   : > { %4476 = vmatmul.mubr.bf16.gmra.mrb[4].mxu0 %v409_v50 }
  0x95   : > { %4479 = vmatprep.mubr.bf16.mxu0 %v410_v51  ;;  %4524 = vmatpush3.bf16.msra.mxu0 %v5483_v41  ;;  %v389_v51 = vld [vmem:[%s5394_s28 + $0x38] sm:$0xff] }
  0x96   : > { %935 = vperm.xlu0 %4855, %v650_v60   ;;  %4525 = vmatprep.subr.bf16.mxu0 %v5517_v9 }
  0x97   : > { %940 = vperm.xlu1 %4856, %v651_v63  }
  0x99   : > { %4526 = vmatpush3.bf16.msra.mxu0 %v5517_v9 }
  0x9a   : > { %1278 = vperm.xlu0 %4855, %v640_v1   ;;  %4527 = vmatprep.subr.bf16.mxu0 %v5526_v10 }
  0x9b   : > { %1283 = vperm.xlu1 %4856, %v641_v2  }
  0x9c   : > { %4480 = vmatmul.mubr.bf16.gmra.mrb[8].mxu0 %v411_v56 }
  0x9d   : > { %4483 = vmatprep.mubr.bf16.mxu0 %v412_v58  ;;  %4528 = vmatpush3.bf16.msra.mxu0 %v5526_v10 }
  0x9e   : > { %1288 = vperm.xlu0 %4855, %v642_v3   ;;  %4529 = vmatprep.subr.bf16.mxu0 %v5535_v11 }
  0x9f   : > { %1293 = vperm.xlu1 %4856, %v643_v4   ;;  %v391_v4 = vld [vmem:[%s5394_s28 + $0x48] sm:$0xff] }
  0xa1   : > { %4530 = vmatpush3.bf16.msra.mxu0 %v5535_v11 }
  0xa2   : > { %945 = vperm.xlu0 %4855, %v652_v5   ;;  %4531 = vmatprep.subr.bf16.mxu0 %v5544_v12 }
  0xa3   : > { %950 = vperm.xlu1 %4856, %v653_v6  }
  0xa4   : > { %4484 = vmatmul.mubr.bf16.gmra.mrb[12].mxu0 %v413_v0  ;;  %v395_v0 = vld [vmem:[%s5394_s28 + $0x68] sm:$0xff] }
  0xa5   : > { %4532 = vmatpush3.bf16.msra.mxu0 %v5544_v12 }
  0xa6   : > { %955 = vperm.xlu0 %4855, %v654_v7   ;;  %4533 = vmatprep.subr.bf16.mxu0 %v5553_v13  ;;  %v397_v7 = vld [vmem:[%s5394_s28 + $0x78] sm:$0xff] }
  0xa7   : > { %960 = vperm.xlu1 %4856, %v655_v8  }
  0xa9   : > { %4534 = vmatpush3.bf16.msra.mxu0 %v5553_v13 }
  0xaa   : > { %4583 = vmatprep.subr.bf16.mxu0 %v5458_v30  ;;  %1298 = vperm.xlu0 %4855, %v644_v14  }
  0xab   : > { %1303 = vperm.xlu1 %4856, %v645_v15  }
  0xae   : > { %1308 = vperm.xlu0 %4855, %v646_v16   ;;  %v393_v16 = vld [vmem:[%s5394_s28 + $0x58] sm:$0xff]  ;;  %s5096_s28 = scalar_lea.vmem %s8403_s25, 2048 }
  0xaf   : > { %1313 = vperm.xlu1 %4856, %v647_v17   ;;  %p5097_p11 = scmp.ne.s32.totalorder %s8403_s25, %s5096_s28 }
  0xb1   : > { %p5098_p7 = pnand %p5097_p11, %p9308_p5 }
  0xb3   : > { %p5099_p8 = pneg %p5098_p7 }
  0xf0   : > { %v5598_v3 = vpop.permute.xlu1 %1007 }
  0xf1   : > { %v5596_v2 = vpop.permute.xlu0 %997  ;;  %8788 = vst [vmem:[#allocation30_spill] sm:$0xff] %v5598_v3 }
  0xf2   : > { %8787 = vst [vmem:[#allocation29_spill] sm:$0xff] %v5596_v2 }
 0x15f   : > { %v4473_v20 = vpop.f32.mrb[0].mxu0 }
 0x160   : > { %v512_v22 = vpop.f32.mrb[1].mxu0  ;;  %v577_v26 = vadd.f32 %v4473_v20, %v386_v19 }
 0x161   : > { %v575_v24 = vadd.f32 %v512_v22, %v382_v18  ;;  %v4474_v25 = vpop.f32.mrb[2].mxu0 }
 0x162   : > { %v578_v27 = vadd.f32 %v4474_v25, %v388_v21  ;;  %v515_v28 = vpop.f32.mrb[3].mxu0  ;;  %v5615_v25 = vpop.permute.xlu0 %1002 }
 0x163   : > { %4873 = vtanh.f32 %v575_v24  ;;  %v576_v29 = vadd.f32 %v515_v28, %v384_v23  ;;  %8791 = vst [vmem:[#allocation33_spill] sm:$0xff] %v5615_v25 }
 0x164   : > { %4875 = vtanh.f32 %v578_v27 }
 0x165   : > { %4877 = vtanh.f32 %v576_v29 }
 0x166   : > { %4879 = vtanh.f32 %v577_v26  ;;  %v5617_v26 = vpop.permute.xlu1 %1012 }
 0x167   : > { %v4477_v33 = vpop.f32.mrb[4].mxu0  ;;  %8792 = vst [vmem:[#allocation34_spill] sm:$0xff] %v5617_v26 }
 0x168   : > { %v528_v35 = vpop.f32.mrb[5].mxu0  ;;  %v581_v40 = vadd.f32 %v4477_v33, %v394_v32 }
 0x169   : > { %v579_v38 = vadd.f32 %v528_v35, %v390_v31  ;;  %v4478_v39 = vpop.f32.mrb[6].mxu0 }
 0x16a   : > { %v582_v42 = vadd.f32 %v4478_v39, %v396_v34  ;;  %v531_v43 = vpop.f32.mrb[7].mxu0 }
 0x16b   : > { %4881 = vtanh.f32 %v579_v38  ;;  %v580_v44 = vadd.f32 %v531_v43, %v392_v36  ;;  %v5648_v43 = vpop.permute.xlu1 %1022 }
 0x16c   : > { %4883 = vtanh.f32 %v582_v42  ;;  %v5646_v42 = vpop.permute.xlu0 %1017  ;;  %8796 = vst [vmem:[#allocation38_spill] sm:$0xff] %v5648_v43 }
 0x16d   : > { %v5573_v45 = vpop.eup %4873  ;;  %4885 = vtanh.f32 %v580_v44  ;;  %8795 = vst [vmem:[#allocation37_spill] sm:$0xff] %v5646_v42 }
 0x16e   : > { %8781 = vst [vmem:[#allocation23_spill] sm:$0xff] %v5573_v45  ;;  %v5576_v47 = vpop.eup %4875  ;;  %4887 = vtanh.f32 %v581_v40 }
 0x16f   : > { %8782 = vst [vmem:[#allocation24_spill] sm:$0xff] %v5576_v47  ;;  %v5579_v49 = vpop.eup %4877  ;;  %v4481_v50 = vpop.f32.mrb[8].mxu0 }
 0x170   : > { %8783 = vst [vmem:[#allocation25_spill] sm:$0xff] %v5579_v49  ;;  %v5582_v52 = vpop.eup %4879  ;;  %v593_v53 = vadd.f32 %v4481_v50, %v387_v46  ;;  %v544_v54 = vpop.f32.mrb[9].mxu0  ;;  %v656_v56 = vpack.c.bf16 %v5579_v49, %v5573_v45 }
 0x171   : > { %8784 = vst [vmem:[#allocation26_spill] sm:$0xff] %v5582_v52  ;;  %v591_v57 = vadd.f32 %v544_v54, %v383_v48  ;;  %v4482_v58 = vpop.f32.mrb[10].mxu0  ;;  %v657_v59 = vpack.c.bf16 %v5576_v47, %v5582_v52 }
 0x172   : > { %4889 = vtanh.f32 %v593_v53  ;;  %v594_v60 = vadd.f32 %v4482_v58, %v389_v51  ;;  %v547_v61 = vpop.f32.mrb[11].mxu0  ;;  %4503 = vmatprep.mubr.bf16.mxu1 %v656_v56 }
 0x173   : > { %4891 = vtanh.f32 %v591_v57  ;;  %v592_v62 = vadd.f32 %v547_v61, %v385_v55  ;;  %4504 = vmatmul.mubr.bf16.vlgmr.msra.gmra.mrb[0].mxu1 %v657_v59 }
 0x174   : > { %4893 = vtanh.f32 %v594_v60  ;;  %4552 = vmatpush3.bf16.msra.mxu1 %v5458_v30 }
 0x175   : > { %v5590_v63 = vpop.eup %4881  ;;  %4895 = vtanh.f32 %v592_v62  ;;  %4553 = vmatprep.subr.bf16.mxu1 %v5476_v37  ;;  %v5682_v62 = vpop.permute.xlu0 %1027 }
 0x176   : > { %8785 = vst [vmem:[#allocation27_spill] sm:$0xff] %v5590_v63  ;;  %v5594_v1 = vpop.eup %4883  ;;  %8805 = vst [vmem:[#allocation47_spill] sm:$0xff] %v5682_v62 }
 0x177   : > { %8786 = vst [vmem:[#allocation28_spill] sm:$0xff] %v5594_v1  ;;  %v5601_v5 = vpop.eup %4885  ;;  %v4485_v6 = vpop.f32.mrb[12].mxu0 }
 0x178   : > { %8789 = vst [vmem:[#allocation31_spill] sm:$0xff] %v5601_v5  ;;  %v5604_v8 = vpop.eup %4887  ;;  %v597_v14 = vadd.f32 %v4485_v6, %v395_v0  ;;  %v560_v15 = vpop.f32.mrb[13].mxu0  ;;  %v658_v17 = vpack.c.bf16 %v5601_v5, %v5590_v63  ;;  %4554 = vmatpush3.bf16.msra.mxu1 %v5476_v37 }
 0x179   : > { %8790 = vst [vmem:[#allocation32_spill] sm:$0xff] %v5604_v8  ;;  %v595_v18 = vadd.f32 %v560_v15, %v391_v4  ;;  %v4486_v19 = vpop.f32.mrb[14].mxu0  ;;  %v659_v20 = vpack.c.bf16 %v5594_v1, %v5604_v8  ;;  %4555 = vmatprep.subr.bf16.mxu1 %v5483_v41  ;;  %v5684_v0 = vpop.permute.xlu1 %1032 }
 0x17a   : > { %4897 = vtanh.f32 %v597_v14  ;;  %v598_v21 = vadd.f32 %v4486_v19, %v397_v7  ;;  %v563_v22 = vpop.f32.mrb[15].mxu0  ;;  %4507 = vmatprep.mubr.bf16.mxu1 %v658_v17  ;;  %8806 = vst [vmem:[#allocation48_spill] sm:$0xff] %v5684_v0 }
 0x17b   : > { %4899 = vtanh.f32 %v595_v18  ;;  %v596_v23 = vadd.f32 %v563_v22, %v393_v16  ;;  %4508 = vmatmul.mubr.bf16.gmra.mrb[4].mxu1 %v659_v20 }
 0x17c   : > { %v5613_v24 = vpop.eup %4889  ;;  %4901 = vtanh.f32 %v598_v21  ;;  %4556 = vmatpush3.bf16.msra.mxu1 %v5483_v41 }
 0x17d   : > { %v5620_v27 = vpop.eup %4891  ;;  %4903 = vtanh.f32 %v596_v23  ;;  %v8490_v28 = vsub.f32 0.0, %v5613_v24  ;;  %4557 = vmatprep.subr.bf16.mxu1 %v5517_v9 }
 0x17e   : > { %v5624_v29 = vpop.eup %4893  ;;  %v8491_v31 = vsub.f32 0.0, %v5620_v27 }
 0x17f   : > { %8793 = vst [vmem:[#allocation35_spill] sm:$0xff] %v5624_v29  ;;  %v5627_v32 = vpop.eup %4895  ;;  %v8489_v33 = vsub.f32 0.0, %v5624_v29  ;;  %v661_v38 = vpack.c.bf16 %v5624_v29, %v5613_v24  ;;  %v1037_v39 = vmul.f32 %v5598_v3, %v8490_v28 }
 0x180   : > { %8794 = vst [vmem:[#allocation36_spill] sm:$0xff] %v5627_v32  ;;  %v660_v34 = vpack.c.bf16 %v5627_v32, %v5620_v27  ;;  %v8488_v35 = vsub.f32 0.0, %v5627_v32  ;;  %v1035_v36 = vmul.f32 %v5596_v2, %v8491_v31  ;;  %4558 = vmatpush3.bf16.msra.mxu1 %v5517_v9 }
 0x181   : > { %v1038_v40 = vmul.f32 %v5617_v26, %v8489_v33  ;;  %4559 = vmatprep.subr.bf16.mxu1 %v5526_v10  ;;  %v5668_v54 = vadd.f32 %v5582_v52, %v1037_v39 }
 0x182   : > { %4511 = vmatprep.mubr.bf16.mxu1 %v660_v34  ;;  %v1036_v44 = vmul.f32 %v5615_v25, %v8488_v35  ;;  %v5659_v50 = vadd.f32 %v5573_v45, %v1035_v36 }
 0x183   : > { %4512 = vmatmul.mubr.bf16.gmra.mrb[8].mxu1 %v661_v38  ;;  %v5654_v46 = vadd.f32 %v5576_v47, %v1038_v40  ;;  %8802 = vst [vmem:[#allocation44_spill] sm:$0xff] %v5668_v54 }
 0x184   : > { %v5656_v48 = vpop.eup %4897  ;;  %8799 = vst [vmem:[#allocation41_spill] sm:$0xff] %v5659_v50  ;;  %v5662_v51 = vadd.f32 %v5579_v49, %v1036_v44  ;;  %4560 = vmatpush3.bf16.msra.mxu1 %v5526_v10 }
 0x185   : > { %8797 = vst [vmem:[#allocation39_spill] sm:$0xff] %v5654_v46  ;;  %8798 = vst [vmem:[#allocation40_spill] sm:$0xff] %v5656_v48  ;;  %v5665_v53 = vpop.eup %4899  ;;  %v8486_v55 = vsub.f32 0.0, %v5656_v48  ;;  %4561 = vmatprep.subr.bf16.mxu1 %v5535_v11  ;;  %v1068_v60 = vpack.c.bf16 %v5654_v46, %v5668_v54 }
 0x186   : > { %8800 = vst [vmem:[#allocation42_spill] sm:$0xff] %v5662_v51  ;;  %8801 = vst [vmem:[#allocation43_spill] sm:$0xff] %v5665_v53  ;;  %v5672_v56 = vpop.eup %4901  ;;  %v1067_v57 = vpack.c.bf16 %v5662_v51, %v5659_v50  ;;  %v8487_v58 = vsub.f32 0.0, %v5665_v53  ;;  %v8834_v51 = vsub.f32 0.0, %v5613_v24 }
 0x187   : > { %8803 = vst [vmem:[#allocation45_spill] sm:$0xff] %v5672_v56  ;;  %v5677_v59 = vpop.eup %4903  ;;  %v8485_v61 = vsub.f32 0.0, %v5672_v56  ;;  %v663_v14 = vpack.c.bf16 %v5672_v56, %v5656_v48  ;;  %v1041_v15 = vmul.f32 %v5682_v62, %v8486_v55  ;;  %v8843_v62 = vsub.f32 0.0, %v5672_v56 }
 0x188   : > { %8804 = vst [vmem:[#allocation46_spill] sm:$0xff] %v5677_v59  ;;  %4535 = vmatprep.mubr.bf16.mxu0 %v1067_v57  ;;  %v662_v4 = vpack.c.bf16 %v5677_v59, %v5665_v53  ;;  %v8484_v6 = vsub.f32 0.0, %v5677_v59  ;;  %v1039_v7 = vmul.f32 %v5646_v42, %v8487_v58  ;;  %4562 = vmatpush3.bf16.msra.mxu1 %v5535_v11 }
 0x189   : > { %4536 = vmatmul.mubr.bf16.vlgmr.msra.gmra.mrb[16].mxu0 %v1068_v60  ;;  %v1042_v16 = vmul.f32 %v5684_v0, %v8485_v61  ;;  %4563 = vmatprep.subr.bf16.mxu1 %v5544_v12  ;;  %v5715_v21 = vadd.f32 %v5604_v8, %v1041_v15 }
 0x18a   : > { %4515 = vmatprep.mubr.bf16.mxu1 %v662_v4  ;;  %v1040_v17 = vmul.f32 %v5648_v43, %v8484_v6  ;;  %v5708_v19 = vadd.f32 %v5590_v63, %v1039_v7  ;;  %4584 = vmatpush3.bf16.msra.mxu0 %v5458_v30  ;;  %v5768_v7 = vld [vmem:[%s8469_s4] ss:$0 sm:$0xff] }
 0x18b   : > { %4516 = vmatmul.mubr.bf16.gmra.mrb[12].mxu1 %v663_v14  ;;  %v5705_v18 = vadd.f32 %v5594_v1, %v1042_v16  ;;  %8810 = vst [vmem:[#allocation52_spill] sm:$0xff] %v5715_v21  ;;  %4585 = vmatprep.subr.bf16.mxu0 %v5476_v37 }
 0x18c   : > { %8808 = vst [vmem:[#allocation50_spill] sm:$0xff] %v5708_v19  ;;  %v5711_v20 = vadd.f32 %v5601_v5, %v1040_v17  ;;  %4564 = vmatpush3.bf16.msra.mxu1 %v5544_v12 }
 0x18d   : > { %8807 = vst [vmem:[#allocation49_spill] sm:$0xff] %v5705_v18  ;;  %4565 = vmatprep.subr.bf16.mxu1 %v5553_v13  ;;  %v1070_v23 = vpack.c.bf16 %v5705_v18, %v5715_v21 }
 0x18e   : > { %8809 = vst [vmem:[#allocation51_spill] sm:$0xff] %v5711_v20  ;;  %v1069_v22 = vpack.c.bf16 %v5711_v20, %v5708_v19  ;;  %4586 = vmatpush3.bf16.msra.mxu0 %v5476_v37  ;;  %v5741_v37 = vpop.permute.xlu0 %1623  ;;  %v8833_v19 = vsub.f32 0.0, %v5620_v27 }
 0x18f   : > { %4587 = vmatprep.subr.bf16.mxu0 %v5483_v41  ;;  %8811 = vst [vmem:[#allocation53_spill] sm:$0xff] %v5741_v37 }
 0x190   : > { %4539 = vmatprep.mubr.bf16.mxu0 %v1069_v22  ;;  %4566 = vmatpush3.bf16.msra.mxu1 %v5553_v13 }
 0x191   : > { %4540 = vmatmul.mubr.bf16.gmra.mrb[20].mxu0 %v1070_v23  ;;  %4615 = vmatprep.subr.bf16.mxu1 %v5458_v30 }
 0x192   : > { %4588 = vmatpush3.bf16.msra.mxu0 %v5483_v41  ;;  %v5743_v41 = vpop.permute.xlu1 %1628  ;;  %v5745_v34 = vpop.permute.xlu0 %1633 }
 0x193   : > { %4589 = vmatprep.subr.bf16.mxu0 %v5517_v9  ;;  %8812 = vst [vmem:[#allocation54_spill] sm:$0xff] %v5743_v41  ;;  %8813 = vst [vmem:[#allocation55_spill] sm:$0xff] %v5745_v34 }
 0x196   : > { %4590 = vmatpush3.bf16.msra.mxu0 %v5517_v9  ;;  %v5747_v36 = vpop.permute.xlu1 %1638  ;;  %v5749_v38 = vpop.permute.xlu0 %1643 }
 0x197   : > { %4591 = vmatprep.subr.bf16.mxu0 %v5526_v10  ;;  %8814 = vst [vmem:[#allocation56_spill] sm:$0xff] %v5747_v36  ;;  %8815 = vst [vmem:[#allocation57_spill] sm:$0xff] %v5749_v38 }
 0x19a   : > { %4592 = vmatpush3.bf16.msra.mxu0 %v5526_v10  ;;  %v5751_v39 = vpop.permute.xlu1 %1648  ;;  %v5753_v40 = vpop.permute.xlu0 %1653 }
 0x19b   : > { %4593 = vmatprep.subr.bf16.mxu0 %v5535_v11  ;;  %8816 = vst [vmem:[#allocation58_spill] sm:$0xff] %v5751_v39  ;;  %8817 = vst [vmem:[#allocation59_spill] sm:$0xff] %v5753_v40  ;;  %v5810_v40 = vstv %s4222_s18 }
 0x19c   : > { %8829 = vst [vmem:[#allocation71_spill] sm:$0xff] %v5810_v40 }
 0x19e   : > { %4594 = vmatpush3.bf16.msra.mxu0 %v5535_v11  ;;  %v5755_v44 = vpop.permute.xlu1 %1658  ;;  %v5757_v57 = vpop.permute.xlu0 %925 }
 0x19f   : > { %4595 = vmatprep.subr.bf16.mxu0 %v5544_v12  ;;  %8818 = vst [vmem:[#allocation60_spill] sm:$0xff] %v5755_v44  ;;  %8819 = vst [vmem:[#allocation61_spill] sm:$0xff] %v5757_v57  ;;  %v963_v21 = vmul.f32 %v5757_v57, %v8833_v19  ;;  %v5841_v19 = vstv %s5783_s14 }
 0x1a0   : > { %8837 = vst [vmem:[#allocation76_spill] sm:$0xff] %v5841_v19 }
 0x1a2   : > { %4596 = vmatpush3.bf16.msra.mxu0 %v5544_v12  ;;  %v5759_v60 = vpop.permute.xlu1 %930  ;;  %v8836_v12 = vsub.f32 0.0, %v5624_v29 }
 0x1a3   : > { %4597 = vmatprep.subr.bf16.mxu0 %v5553_v13  ;;  %8820 = vst [vmem:[#allocation62_spill] sm:$0xff] %v5759_v60 }
 0x1a6   : > { %4598 = vmatpush3.bf16.msra.mxu0 %v5553_v13  ;;  %v5763_v4 = vpop.permute.xlu1 %940 }
 0x1a7   : > { %4647 = vmatprep.subr.bf16.mxu0 %v5458_v30  ;;  %v5761_v30 = vpop.permute.xlu0 %935  ;;  %8822 = vst [vmem:[#allocation64_spill] sm:$0xff] %v5763_v4  ;;  %v966_v11 = vmul.f32 %v5763_v4, %v8836_v12 }
 0x1a8   : > { %8821 = vst [vmem:[#allocation63_spill] sm:$0xff] %v5761_v30  ;;  %v965_v46 = vmul.f32 %v5761_v30, %v8834_v51 }
 0x1aa   : > { %v5775_v55 = vpop.permute.xlu1 %1283 }
 0x1ab   : > { %v5772_v23 = vpop.permute.xlu0 %1278  ;;  %8824 = vst [vmem:[#allocation66_spill] sm:$0xff] %v5775_v55 }
 0x1ac   : > { %8823 = vst [vmem:[#allocation65_spill] sm:$0xff] %v5772_v23 }
 0x246   : > { %v4505_v14 = vpop.f32.mrb[0].mxu1 }
 0x247   : > { %v817_v15 = vadd.f32 %v4505_v14, %v5768_v7  ;;  %v746_v16 = vpop.f32.mrb[1].mxu1  ;;  %v5778_v14 = vstv %s4221_s12  ;;  %s5100_s12 = sshll.u32 %s5207_s29, 4  ;;  %s5101_s12 = int_to_ptr.vmem [resolvable:$false] %s5100_s12 }
 0x248   : > { %v815_v17 = vadd.f32 %v5768_v7, %v746_v16  ;;  %v4506_v22 = vpop.f32.mrb[2].mxu1  ;;  %8825 = vst [vmem:[#allocation67_spill] sm:$0xff] %v5778_v14  ;;  %v5780_v16 = vpop.permute.xlu0 %1288  ;;  %v5796_v31 = vmul.f32 %v5573_v45, %v5778_v14  ;;  %v5814_v39 = vmul.f32 %v5590_v63, %v5778_v14  ;;  %v5818_v38 = vmul.f32 %v5594_v1, %v5778_v14  ;;  %p5103_p9 = scmp.lt.s32.totalorder %s8403_s25, %s5101_s12 }
 0x249   : > { %4905 = vtanh.f32 %v817_v15  ;;  %v818_v6 = vadd.f32 %v4506_v22, %v5768_v7  ;;  %v749_v61 = vpop.f32.mrb[3].mxu1  ;;  %8826 = vst [vmem:[#allocation68_spill] sm:$0xff] %v5780_v16  ;;  %v5785_v22 = vpop.permute.xlu1 %1293 }
 0x24a   : > { %4907 = vtanh.f32 %v815_v17  ;;  %v816_v58 = vadd.f32 %v5768_v7, %v749_v61  ;;  %8827 = vst [vmem:[#allocation69_spill] sm:$0xff] %v5785_v22  ;;  %8830 = vst [vmem:[#allocation72_spill] sm:$0xff] %v5814_v39 }
 0x24b   : > { %4909 = vtanh.f32 %v818_v6  ;;  %v5788_v6 = vstv %s362_s11  ;;  %8831 = vst [vmem:[#allocation73_spill] sm:$0xff] %v5818_v38  ;;  %s5102_s11 = scalar_lea.vmem %s5101_s12, 4096 }
 0x24c   : > { %4911 = vtanh.f32 %v816_v58  ;;  %8828 = vst [vmem:[#allocation70_spill] sm:$0xff] %v5788_v6  ;;  %v5792_v58 = vmul.f32 %v5582_v52, %v5778_v14  ;;  %v875_v34 = vmul.f32 %v5613_v24, %v5788_v6  ;;  %v5825_v20 = vpop.permute.xlu0 %945  ;;  %p5104_p13 = scmp.lt.s32.totalorder %s5102_s11, %s5096_s28 }
 0x24d   : > { %8832 = vst [vmem:[#allocation74_spill] sm:$0xff] %v5825_v20  ;;  %v5834_v13 = vpop.permute.xlu1 %950 }
 0x24e   : > { %v4509_v35 = vpop.f32.mrb[4].mxu1  ;;  %8835 = vst [vmem:[#allocation75_spill] sm:$0xff] %v5834_v13  ;;  %p5105_p2 = por %p5104_p13, %p5103_p9 }
 0x24f   : > { %v821_v33 = vadd.f32 %v4509_v35, %v5768_v7  ;;  %v762_v15 = vpop.f32.mrb[5].mxu1  ;;  %v5800_v35 = vmul.f32 %v5576_v47, %v5778_v14 }
 0x250   : > { %v819_v28 = vadd.f32 %v5768_v7, %v762_v15  ;;  %v4510_v17 = vpop.f32.mrb[6].mxu1  ;;  %v5804_v15 = vmul.f32 %v5579_v49, %v5778_v14  ;;  %p5106_p4 = pnand %p5105_p2, %p5099_p8 }
 0x251   : > { %4913 = vtanh.f32 %v821_v33  ;;  %v765_v61 = vpop.f32.mrb[7].mxu1  ;;  %v5808_v33 = vmul.f32 %v5604_v8, %v5778_v14  ;;  %v822_v37 = vadd.f32 %v4510_v17, %v5768_v7 }
 0x252   : > { %4915 = vtanh.f32 %v819_v28  ;;  %v873_v28 = vmul.f32 %v5620_v27, %v5788_v6  ;;  %v820_v17 = vadd.f32 %v5768_v7, %v765_v61 }
 0x253   : > { %v4906_v44 = vpop.eup %4905  ;;  %4917 = vtanh.f32 %v822_v37  ;;  %v5849_v37 = vpop.permute.xlu0 %955 }
 0x254   : > { %v4908_v41 = vpop.eup %4907  ;;  %v833_v36 = vmul.f32 %v4906_v44, %v4906_v44  ;;  %v866_v55 = vmul.f32 %v4906_v44, %v5810_v40  ;;  %4919 = vtanh.f32 %v820_v17  ;;  %8838 = vst [vmem:[#allocation77_spill] sm:$0xff] %v5849_v37 }
 0x255   : > { %v4910_v18 = vpop.eup %4909  ;;  %v831_v54 = vmul.f32 %v4908_v41, %v4908_v41  ;;  %v864_v51 = vmul.f32 %v4908_v41, %v5810_v40 }
 0x256   : > { %v4912_v50 = vpop.eup %4911  ;;  %v4513_v10 = vpop.f32.mrb[8].mxu1  ;;  %v841_v9 = vsub.f32 1.0, %v833_v36  ;;  %v834_v23 = vmul.f32 %v4910_v18, %v4910_v18  ;;  %v867_v0 = vmul.f32 %v4910_v18, %v5810_v40  ;;  %v883_v42 = vsub.f32 %v866_v55, %v875_v34 }
 0x257   : > { %v778_v57 = vpop.f32.mrb[9].mxu1  ;;  %v839_v22 = vsub.f32 1.0, %v831_v54  ;;  %v832_v61 = vmul.f32 %v4912_v50, %v4912_v50  ;;  %v865_v44 = vmul.f32 %v4912_v50, %v5810_v40  ;;  %v876_v54 = vmul.f32 %v5624_v29, %v5788_v6 }
 0x258   : > { %v849_v30 = vmul.f32 %v4513_v10, %v841_v9  ;;  %v4514_v43 = vpop.f32.mrb[10].mxu1  ;;  %v842_v16 = vsub.f32 1.0, %v834_v23  ;;  %v881_v9 = vsub.f32 %v864_v51, %v873_v28  ;;  %v5854_v23 = vpop.permute.xlu1 %960 }
 0x259   : > { %v847_v12 = vmul.f32 %v839_v22, %v778_v57  ;;  %v781_v4 = vpop.f32.mrb[11].mxu1  ;;  %v840_v36 = vsub.f32 1.0, %v832_v61  ;;  %v874_v57 = vmul.f32 %v5627_v32, %v5788_v6  ;;  %8839 = vst [vmem:[#allocation78_spill] sm:$0xff] %v5854_v23  ;;  %v884_v55 = vsub.f32 %v867_v0, %v876_v54 }
 0x25a   : > { %v892_v38 = vmul.f32 %v5841_v19, %v849_v30  ;;  %v850_v39 = vmul.f32 %v4514_v43, %v842_v16  ;;  %v8840_v22 = vsub.f32 0.0, %v5627_v32 }
 0x25b   : > { %v4914_v41 = vpop.eup %4913  ;;  %v890_v10 = vmul.f32 %v5841_v19, %v847_v12  ;;  %v848_v18 = vmul.f32 %v840_v36, %v781_v4  ;;  %v882_v51 = vsub.f32 %v865_v44, %v874_v57  ;;  %v8841_v12 = vsub.f32 0.0, %v5665_v53 }
 0x25c   : > { %v900_v50 = vsub.f32 %v883_v42, %v892_v38  ;;  %v893_v34 = vmul.f32 %v5841_v19, %v850_v39  ;;  %v4537_v43 = vpop.f32.mrb[16].mxu0  ;;  %v837_v30 = vmul.f32 %v4914_v41, %v4914_v41  ;;  %v4916_v16 = vpop.eup %4915  ;;  %v964_v17 = vmul.f32 %v5759_v60, %v8840_v22 }
 0x25d   : > { %v898_v28 = vsub.f32 %v881_v9, %v890_v10  ;;  %v891_v4 = vmul.f32 %v5841_v19, %v848_v18  ;;  %v1109_v61 = vpop.f32.mrb[17].mxu0  ;;  %v967_v36 = vmul.f32 %v5825_v20, %v8841_v12  ;;  %v8842_v42 = vsub.f32 0.0, %v5656_v48 }
 0x25e   : > { %v901_v38 = vsub.f32 %v884_v55, %v893_v34  ;;  %v4517_v39 = vpop.f32.mrb[12].mxu1  ;;  %v845_v54 = vsub.f32 1.0, %v837_v30  ;;  %v4538_v29 = vpop.f32.mrb[18].mxu0  ;;  %v970_v9 = vmul.f32 %v5854_v23, %v8843_v62  ;;  %v870_v10 = vmul.f32 %v4914_v41, %v5810_v40 }
 0x25f   : > { %v969_v0 = vmul.f32 %v5849_v37, %v8842_v42  ;;  %v899_v44 = vsub.f32 %v882_v51, %v891_v4  ;;  %v794_v18 = vpop.f32.mrb[13].mxu1  ;;  %v1112_v57 = vpop.f32.mrb[19].mxu0  ;;  %v5873_v22 = vmul.f32 %v5601_v5, %v5778_v14  ;;  %v5876_v12 = vadd.f32 %v5573_v45, %v963_v21 }
 0x260   : > { %v835_v55 = vmul.f32 %v4916_v16, %v4916_v16  ;;  %v4518_v34 = vpop.f32.mrb[14].mxu1  ;;  %v5879_v30 = vadd.f32 %v5582_v52, %v965_v46  ;;  %v5882_v42 = vadd.f32 %v5576_v47, %v966_v11  ;;  %v5885_v62 = vadd.f32 %v5579_v49, %v964_v17  ;;  %v4918_v23 = vpop.eup %4917 }
 0x261   : > { %v853_v41 = vmul.f32 %v4517_v39, %v845_v54  ;;  %v879_v51 = vmul.f32 %v5656_v48, %v5788_v6  ;;  %v877_v4 = vmul.f32 %v5665_v53, %v5788_v6  ;;  %v797_v21 = vpop.f32.mrb[15].mxu1  ;;  %v8844_v20 = vsub.f32 0.0, %v5677_v59  ;;  %v4920_v54 = vpop.eup %4919 }
 0x262   : > { %v5897_v11 = vadd.f32 %v5590_v63, %v967_v36  ;;  %v5900_v17 = vadd.f32 %v5604_v8, %v969_v0  ;;  %v1174_v39 = vadd.f32 %v4537_v43, %v5768_v7  ;;  %v5904_v37 = vadd.f32 %v5594_v1, %v970_v9 }
 0x263   : > { %v5894_v46 = vmul.f32 %v5834_v13, %v8844_v20  ;;  %v5907_v60 = vadd.f32 %v5796_v31, %v898_v28  ;;  %v887_v14 = vsub.f32 %v870_v10, %v879_v51  ;;  %v896_v5 = vmul.f32 %v5841_v19, %v853_v41 }
 0x264   : > { %8845 = vst [vmem:[#allocation79_spill] sm:$0xff] %v5904_v37  ;;  %v843_v20 = vsub.f32 1.0, %v835_v55  ;;  %v868_v13 = vmul.f32 %v4916_v16, %v5810_v40  ;;  %v880_v36 = vmul.f32 %v5672_v56, %v5788_v6  ;;  %v878_v0 = vmul.f32 %v5677_v59, %v5788_v6  ;;  %v4541_v43 = vpop.f32.mrb[20].mxu0 }
 0x265   : > { %v5916_v8 = vadd.f32 %v5792_v58, %v900_v50  ;;  %v5919_v9 = vadd.f32 %v5804_v15, %v899_v44  ;;  %v904_v31 = vsub.f32 %v887_v14, %v896_v5  ;;  %v838_v28 = vmul.f32 %v4918_v23, %v4918_v23  ;;  %v1125_v10 = vpop.f32.mrb[21].mxu0 }
 0x266   : > { %4921 = vtanh.f32 %v1174_v39  ;;  %v1172_v55 = vadd.f32 %v5768_v7, %v1109_v61  ;;  %v851_v16 = vmul.f32 %v843_v20, %v794_v18  ;;  %v836_v41 = vmul.f32 %v4920_v54, %v4920_v54  ;;  %v4542_v51 = vpop.f32.mrb[22].mxu0 }
 0x267   : > { %8846 = vst [vmem:[#allocation80_spill] sm:$0xff] %v5919_v9  ;;  %v1043_v1 = vmul.f32 %v5596_v2, %v5907_v60  ;;  %v5925_v37 = vadd.f32 %v5800_v35, %v901_v38  ;;  %v846_v58 = vsub.f32 1.0, %v838_v28  ;;  %v871_v50 = vmul.f32 %v4918_v23, %v5810_v40  ;;  %v1128_v15 = vpop.f32.mrb[23].mxu0 }
 0x268   : > { %v885_v44 = vsub.f32 %v868_v13, %v877_v4  ;;  %v894_v5 = vmul.f32 %v5841_v19, %v851_v16  ;;  %v844_v14 = vsub.f32 1.0, %v836_v41  ;;  %v869_v39 = vmul.f32 %v4920_v54, %v5810_v40 }
 0x269   : > { %v1045_v61 = vmul.f32 %v5598_v3, %v5916_v8  ;;  %v1044_v18 = vmul.f32 %v5615_v25, %v5919_v9  ;;  %v1175_v20 = vadd.f32 %v4538_v29, %v5768_v7  ;;  %v854_v35 = vmul.f32 %v4518_v34, %v846_v58 }
 0x26a   : > { %v5936_v38 = vadd.f32 %v5808_v33, %v904_v31  ;;  %v902_v23 = vsub.f32 %v885_v44, %v894_v5  ;;  %v1173_v13 = vadd.f32 %v5768_v7, %v1112_v57  ;;  %v852_v4 = vmul.f32 %v844_v14, %v797_v21  ;;  %v8852_v44 = vld [vmem:[#allocation35_spill] sm:$0xff] }
 0x26b   : > { %v1046_v28 = vmul.f32 %v5617_v26, %v5925_v37  ;;  %4923 = vtanh.f32 %v1172_v55  ;;  %v888_v54 = vsub.f32 %v871_v50, %v880_v36  ;;  %v897_v16 = vmul.f32 %v5841_v19, %v854_v35  ;;  %v8847_v36 = vld [vmem:[#allocation47_spill] sm:$0xff]  ;;  %v8848_v55 = vld [vmem:[#allocation72_spill] sm:$0xff] }
 0x26c   : > { %v886_v41 = vsub.f32 %v869_v39, %v878_v0  ;;  %v895_v9 = vmul.f32 %v5841_v19, %v852_v4  ;;  %v1178_v29 = vadd.f32 %v4541_v43, %v5768_v7  ;;  %v5945_v34 = vadd.f32 %v5620_v27, %v1043_v1  ;;  %v8850_v43 = vld [vmem:[#allocation73_spill] sm:$0xff] }
 0x26d   : > { %4925 = vtanh.f32 %v1175_v20  ;;  %v905_v33 = vsub.f32 %v888_v54, %v897_v16  ;;  %v5948_v57 = vadd.f32 %v5627_v32, %v1044_v18  ;;  %v5951_v21 = vadd.f32 %v5613_v24, %v1045_v61  ;;  %v8853_v4 = vld [vmem:[#allocation37_spill] sm:$0xff]  ;;  %v8855_v16 = vld [vmem:[#allocation68_spill] sm:$0xff] }
 0x26e   : > { %v1049_v31 = vmul.f32 %v8847_v36, %v5936_v38  ;;  %v5956_v0 = vadd.f32 %v8848_v55, %v902_v23  ;;  %4927 = vtanh.f32 %v1173_v13  ;;  %v903_v58 = vsub.f32 %v886_v41, %v895_v9 }
 0x26f   : > { %v5959_v50 = vadd.f32 %v8850_v43, %v905_v33  ;;  %v1071_v1 = vpack.c.bf16 %v5948_v57, %v5945_v34  ;;  %v5964_v5 = vadd.f32 %v8852_v44, %v1046_v28  ;;  %v1214_v14 = vsub.f32 0.0, %v5951_v21  ;;  %v8858_v43 = vld [vmem:[#allocation65_spill] sm:$0xff] }
 0x270   : > { %8849 = vst [vmem:[#allocation72_spill] sm:$0xff] %v5956_v0  ;;  %v5967_v39 = vpop.eup %4921  ;;  %v5970_v61 = vadd.f32 %v5873_v22, %v903_v58  ;;  %4929 = vtanh.f32 %v1178_v29  ;;  %v1212_v18 = vsub.f32 0.0, %v5945_v34  ;;  %v1213_v9 = vsub.f32 0.0, %v5948_v57  ;;  %v8854_v22 = vld [vmem:[#allocation48_spill] sm:$0xff] }
 0x271   : > { %8851 = vst [vmem:[#allocation73_spill] sm:$0xff] %v5959_v50  ;;  %v1176_v20 = vadd.f32 %v5768_v7, %v1125_v10  ;;  %v1179_v35 = vadd.f32 %v4542_v51, %v5768_v7  ;;  %4543 = vmatprep.mubr.bf16.mxu0 %v1071_v1  ;;  %v1072_v23 = vpack.c.bf16 %v5964_v5, %v5951_v21  ;;  %v1215_v13 = vsub.f32 0.0, %v5964_v5  ;;  %v8856_v10 = vld [vmem:[#allocation38_spill] sm:$0xff]  ;;  %v8857_v51 = vld [vmem:[#allocation69_spill] sm:$0xff] }
 0x272   : > { %v1047_v28 = vmul.f32 %v8853_v4, %v5956_v0  ;;  %v1050_v54 = vmul.f32 %v8854_v22, %v5959_v50  ;;  %v1318_v41 = vmul.f32 %v8855_v16, %v1214_v14  ;;  %v1350_v29 = vmul.f32 %v1214_v14, %v5598_v3  ;;  %v8860_v50 = vld [vmem:[#allocation66_spill] sm:$0xff] }
 0x273   : > { %v1048_v33 = vmul.f32 %v8856_v10, %v5970_v61  ;;  %4544 = vmatmul.mubr.bf16.gmra.mrb[24].mxu0 %v1072_v23  ;;  %v1319_v55 = vmul.f32 %v8857_v51, %v1215_v13  ;;  %v1351_v58 = vmul.f32 %v1215_v13, %v5617_v26  ;;  %v1316_v1 = vmul.f32 %v8858_v43, %v1212_v18 }
 0x274   : > { %v1177_v19 = vadd.f32 %v5768_v7, %v1128_v15  ;;  %v5992_v0 = vadd.f32 %v1318_v41, %v5879_v30  ;;  %v1317_v32 = vmul.f32 %v8860_v50, %v1213_v9  ;;  %v1348_v16 = vmul.f32 %v1212_v18, %v5596_v2  ;;  %v6008_v15 = vpop.permute.xlu0 %1298  ;;  %v6010_v30 = vpop.permute.xlu1 %1303 }
 0x275   : > { %v5996_v14 = vpop.eup %4923  ;;  %v5999_v3 = vadd.f32 %v1319_v55, %v5882_v42  ;;  %v6002_v23 = vadd.f32 %v1316_v1, %v5876_v12  ;;  %v1349_v13 = vmul.f32 %v1213_v9, %v5615_v25  ;;  %v6006_v26 = vadd.f32 %v5582_v52, %v1350_v29  ;;  %8864 = vst [vmem:[#allocation84_spill] sm:$0xff] %v6008_v15 }
 0x276   : > { %8859 = vst [vmem:[#allocation35_spill] sm:$0xff] %v5992_v0  ;;  %8865 = vst [vmem:[#allocation85_spill] sm:$0xff] %v6010_v30  ;;  %v6013_v41 = vadd.f32 %v1317_v32, %v5885_v62  ;;  %v6016_v18 = vadd.f32 %v5573_v45, %v1348_v16  ;;  %v6019_v42 = vadd.f32 %v5576_v47, %v1351_v58  ;;  %v8870_v58 = vld [vmem:[#allocation31_spill] sm:$0xff]  ;;  %4931 = vtanh.f32 %v1176_v20 }
 0x277   : > { %8861 = vst [vmem:[#allocation81_spill] sm:$0xff] %v5999_v3  ;;  %8862 = vst [vmem:[#allocation82_spill] sm:$0xff] %v6002_v23  ;;  %v6022_v12 = vadd.f32 %v5665_v53, %v1047_v28  ;;  %v6024_v9 = vpop.eup %4925  ;;  %v6027_v29 = vadd.f32 %v5579_v49, %v1349_v13  ;;  %v6030_v55 = vadd.f32 %v5677_v59, %v1048_v33  ;;  %4933 = vtanh.f32 %v1179_v35  ;;  %v8913_v59 = vld [vmem:[#allocation36_spill] sm:$0xff] }
 0x278   : > { %8863 = vst [vmem:[#allocation83_spill] sm:$0xff] %v6006_v26  ;;  %8866 = vst [vmem:[#allocation86_spill] sm:$0xff] %v6013_v41  ;;  %v6033_v32 = vadd.f32 %v5656_v48, %v1049_v31  ;;  %v6036_v62 = vadd.f32 %v5672_v56, %v1050_v54  ;;  %v6038_v16 = vpop.eup %4927  ;;  %v984_v28 = vadd.f32 %v8870_v58, %v5894_v46  ;;  %4935 = vtanh.f32 %v1177_v19  ;;  %v6066_v45 = vpop.permute.xlu0 %1308 }
 0x279   : > { %8867 = vst [vmem:[#allocation87_spill] sm:$0xff] %v6016_v18  ;;  %8868 = vst [vmem:[#allocation88_spill] sm:$0xff] %v6019_v42  ;;  %v1381_v1 = vpack.c.bf16 %v6019_v42, %v6006_v26  ;;  %v1216_v13 = vsub.f32 0.0, %v6022_v12  ;;  %v1380_v33 = vpack.c.bf16 %v6027_v29, %v6016_v18  ;;  %v1073_v31 = vpack.c.bf16 %v6030_v55, %v6022_v12  ;;  %v6068_v47 = vpop.permute.xlu1 %1313 }
 0x27a   : > { %8869 = vst [vmem:[#allocation89_spill] sm:$0xff] %v6027_v29  ;;  %v1074_v54 = vpack.c.bf16 %v6036_v62, %v6033_v32  ;;  %v6051_v49 = vpop.eup %4929  ;;  %v1217_v46 = vsub.f32 0.0, %v6030_v55  ;;  %v1218_v26 = vsub.f32 0.0, %v6033_v32  ;;  %v1219_v35 = vsub.f32 0.0, %v6036_v62  ;;  %8871 = vst [vmem:[#allocation90_spill] sm:$0xff] %v6066_v45 }
 0x27b   : > { %v1320_v20 = vmul.f32 %v6008_v15, %v1216_v13  ;;  %v1352_v42 = vmul.f32 %v1216_v13, %v8853_v4  ;;  %4567 = vmatprep.mubr.bf16.mxu1 %v1380_v33  ;;  %4547 = vmatprep.mubr.bf16.mxu0 %v1073_v31  ;;  %v6060_v29 = vmul.f32 %v5967_v39, %v5810_v40  ;;  %v8912_v15 = vld [vmem:[#allocation77_spill] sm:$0xff] }
 0x27c   : > { %v6064_v18 = vmul.f32 %v5951_v21, %v5788_v6  ;;  %8872 = vst [vmem:[#allocation91_spill] sm:$0xff] %v6068_v47  ;;  %4568 = vmatmul.mubr.bf16.vlgmr.msra.gmra.mrb[16].mxu1 %v1381_v1  ;;  %4548 = vmatmul.mubr.bf16.gmra.mrb[28].mxu0 %v1074_v54  ;;  %v1321_v19 = vmul.f32 %v6010_v30, %v1217_v46  ;;  %v6084_v1 = vld [vmem:[%s8468_s3] sm:$0xff]  }
 0x27d   : > { %v6072_v13 = vadd.f32 %v1320_v20, %v5897_v11  ;;  %v1353_v33 = vmul.f32 %v1217_v46, %v8856_v10  ;;  %v6076_v31 = vadd.f32 %v5590_v63, %v1352_v42  ;;  %v1322_v41 = vmul.f32 %v6066_v45, %v1218_v26  ;;  %8875 = vst [vmem:[#allocation94_spill] sm:$0xff] %v6084_v1  ;;  %v8884_v46 = vld [vmem:[#allocation28_spill] sm:$0xff]  ;;  %v8905_v10 = vld [vmem:[#allocation62_spill] sm:$0xff] }
 0x27e   : > { %v1323_v21 = vmul.f32 %v6068_v47, %v1219_v35  ;;  %v1354_v23 = vmul.f32 %v1218_v26, %v8847_v36  ;;  %4616 = vmatpush3.bf16.msra.mxu1 %v6084_v1  ;;  %v6087_v11 = vadd.f32 %v1321_v19, %v984_v28  ;;  %v1355_v42 = vmul.f32 %v1219_v35, %v8854_v22  ;;  %v6098_v26 = vld [vmem:[%s8468_s3 + $0x8] sm:$0xff]   ;;  %v8882_v35 = vld [vmem:[#allocation32_spill] sm:$0xff] }
 0x27f   : > { %8873 = vst [vmem:[#allocation92_spill] sm:$0xff] %v6072_v13  ;;  %8874 = vst [vmem:[#allocation93_spill] sm:$0xff] %v6076_v31  ;;  %v6090_v54 = vadd.f32 %v8870_v58, %v1353_v33  ;;  %4617 = vmatprep.subr.bf16.mxu1 %v6098_v26  ;;  %v6102_v20 = vadd.f32 %v1322_v41, %v5900_v17  ;;  %v8880_v28 = vld [vmem:[#allocation79_spill] sm:$0xff]  ;;  %v6117_v63 = vmul.f32 %v5996_v14, %v5810_v40 }
 0x280   : > { %8876 = vst [vmem:[#allocation95_spill] sm:$0xff] %v6087_v11  ;;  %8878 = vst [vmem:[#allocation97_spill] sm:$0xff] %v6098_v26  ;;  %v6105_v19 = vadd.f32 %v1323_v21, %v8880_v28  ;;  %v6110_v58 = vadd.f32 %v8882_v35, %v1354_v23  ;;  %v6113_v11 = vadd.f32 %v8884_v46, %v1355_v42  ;;  %v6124_v41 = vpop.eup %4931  ;;  %v6135_v42 = vld [vmem:[%s8468_s3 + $0x10] sm:$0xff]   ;;  %v8887_v35 = vld [vmem:[#allocation18_spill] sm:$0xff] }
 0x281   : > { %8877 = vst [vmem:[#allocation96_spill] sm:$0xff] %v6090_v54  ;;  %8879 = vst [vmem:[#allocation98_spill] sm:$0xff] %v6102_v20  ;;  %v1382_v33 = vpack.c.bf16 %v6090_v54, %v6076_v31  ;;  %v6121_v17 = vmul.f32 %v5945_v34, %v5788_v6  ;;  %v6130_v21 = vmul.f32 %v6024_v9, %v5810_v40  ;;  %v6138_v34 = vpop.eup %4933  ;;  %v8890_v20 = vld [vmem:[#allocation19_spill] sm:$0xff]  ;;  %v8895_v28 = vld [vmem:[#allocation41_spill] sm:$0xff] }
 0x282   : > { %8881 = vst [vmem:[#allocation79_spill] sm:$0xff] %v6105_v19  ;;  %8883 = vst [vmem:[#allocation99_spill] sm:$0xff] %v6110_v58  ;;  %4618 = vmatpush3.bf16.msra.mxu1 %v6098_v26  ;;  %v1383_v23 = vpack.c.bf16 %v6113_v11, %v6110_v58  ;;  %v6152_v58 = vmul.f32 %v5948_v57, %v5788_v6  ;;  %v6156_v54 = vmul.f32 %v6051_v49, %v5810_v40  ;;  %v6158_v31 = vpop.eup %4935  ;;  %v8892_v26 = vld [vmem:[#allocation21_spill] sm:$0xff] }
 0x283   : > { %8885 = vst [vmem:[#allocation100_spill] sm:$0xff] %v6113_v11  ;;  %4571 = vmatprep.mubr.bf16.mxu1 %v1382_v33  ;;  %8886 = vst [vmem:[#allocation101_spill] sm:$0xff] %v6135_v42  ;;  %4619 = vmatprep.subr.bf16.mxu1 %v6135_v42  ;;  %v6144_v33 = vmul.f32 %v5964_v5, %v5788_v6  ;;  %v6148_v11 = vmul.f32 %v6038_v16, %v5810_v40 }
 0x284   : > { %4572 = vmatmul.mubr.bf16.gmra.mrb[20].mxu1 %v1383_v23  ;;  %v6164_v5 = vmul.f32 %v6033_v32, %v5788_v6  ;;  %v6171_v57 = vmul.f32 %v6124_v41, %v5810_v40  ;;  %v6175_v46 = vmul.f32 %v6022_v12, %v5788_v6  ;;  %v6182_v32 = vmul.f32 %v6138_v34, %v5810_v40  ;;  %v8894_v23 = vld [vmem:[#allocation67_spill] sm:$0xff] }
 0x285   : > { %v6192_v12 = vmul.f32 %v6158_v31, %v5810_v40  ;;  %v6196_v19 = vmul.f32 %v6030_v55, %v5788_v6  ;;  %v8893_v55 = vld [vmem:[#allocation22_spill] sm:$0xff]  ;;  %v977_v45 = vmul.f32 %v8912_v15, %v5936_v38  ;;  %v8919_v38 = vsub.f32 %v6060_v29, %v6064_v18 }
 0x286   : > { %4620 = vmatpush3.bf16.msra.mxu1 %v6135_v42  ;;  %v6188_v42 = vmul.f32 %v6036_v62, %v5788_v6  ;;  %v8891_v62 = vld [vmem:[#allocation20_spill] sm:$0xff]  ;;  %v1260_v6 = vmul.f32 %v8895_v28, %v8894_v23  ;;  %v1189_v28 = vmul.f32 %v6038_v16, %v6038_v16  ;;  %v8910_v16 = vld [vmem:[#allocation49_spill] sm:$0xff]  ;;  %v1193_v18 = vmul.f32 %v6158_v31, %v6158_v31  ;;  %v8961_v15 = vld [vmem:[#allocation86_spill] sm:$0xff] }
 0x287   : > { %4621 = vmatprep.subr.bf16.mxu1 %v8887_v35  ;;  %8888 = vst [vmem:[#allocation18_spill] sm:$0xff] %v6192_v12  ;;  %8889 = vst [vmem:[#allocation102_spill] sm:$0xff] %v6196_v19  ;;  %v6250_v36 = vmul.f32 %v8910_v16, %v8894_v23  ;;  %v8916_v19 = vld [vmem:[#allocation76_spill] sm:$0xff] }
 0x289   : > { %8911 = vst [vmem:[#allocation22_spill] sm:$0xff] %v6250_v36  ;;  %v8915_v36 = vld [vmem:[#allocation74_spill] sm:$0xff] }
 0x28a   : > { %4622 = vmatpush3.bf16.msra.mxu1 %v8887_v35  ;;  %v1190_v35 = vmul.f32 %v5967_v39, %v5967_v39  ;;  %v8899_v39 = vld [vmem:[#allocation44_spill] sm:$0xff] }
 0x28b   : > { %4623 = vmatprep.subr.bf16.mxu1 %v8890_v20  ;;  %v1262_v52 = vmul.f32 %v8899_v39, %v8894_v23 }
 0x28e   : > { %4624 = vmatpush3.bf16.msra.mxu1 %v8890_v20  ;;  %v1188_v20 = vmul.f32 %v5996_v14, %v5996_v14  ;;  %v8900_v14 = vld [vmem:[#allocation39_spill] sm:$0xff] }
 0x28f   : > { %4625 = vmatprep.subr.bf16.mxu1 %v8891_v62  ;;  %v1263_v0 = vmul.f32 %v8900_v14, %v8894_v23  ;;  %v8908_v14 = vld [vmem:[#allocation51_spill] sm:$0xff] }
 0x290   : > { %v6246_v22 = vmul.f32 %v8908_v14, %v8894_v23  ;;  %v1196_v47 = vsub.f32 1.0, %v1188_v20 }
 0x292   : > { %4626 = vmatpush3.bf16.msra.mxu1 %v8891_v62  ;;  %v8896_v62 = vld [vmem:[#allocation63_spill] sm:$0xff]  ;;  %8909 = vst [vmem:[#allocation21_spill] sm:$0xff] %v6246_v22 }
 0x293   : > { %4627 = vmatprep.subr.bf16.mxu1 %v8892_v26  ;;  %v973_v13 = vmul.f32 %v8896_v62, %v5916_v8  ;;  %v8901_v8 = vld [vmem:[#allocation42_spill] sm:$0xff] }
 0x294   : > { %v1261_v62 = vmul.f32 %v8901_v8, %v8894_v23 }
 0x296   : > { %4628 = vmatpush3.bf16.msra.mxu1 %v8892_v26  ;;  %v8897_v26 = vld [vmem:[#allocation61_spill] sm:$0xff] }
 0x297   : > { %4629 = vmatprep.subr.bf16.mxu1 %v8893_v55  ;;  %v971_v40 = vmul.f32 %v8897_v26, %v5907_v60  ;;  %v8902_v60 = vld [vmem:[#allocation52_spill] sm:$0xff] }
 0x298   : > { %v6236_v26 = vmul.f32 %v8902_v60, %v8894_v23  ;;  %v989_v60 = vadd.f32 %v5613_v24, %v973_v13 }
 0x299   : > { %v987_v4 = vadd.f32 %v5620_v27, %v971_v40 }
 0x29a   : > { %4630 = vmatpush3.bf16.msra.mxu1 %v8893_v55  ;;  %v1191_v55 = vmul.f32 %v6024_v9, %v6024_v9  ;;  %8903 = vst [vmem:[#allocation19_spill] sm:$0xff] %v6236_v26  ;;  %v8904_v9 = vld [vmem:[#allocation80_spill] sm:$0xff] }
 0x29b   : > { %4679 = vmatprep.subr.bf16.mxu1 %v6084_v1  ;;  %v8898_v1 = vld [vmem:[#allocation64_spill] sm:$0xff]  ;;  %v972_v30 = vmul.f32 %v8905_v10, %v8904_v9 }
 0x29c   : > { %v974_v3 = vmul.f32 %v8898_v1, %v5925_v37  ;;  %v1198_v37 = vsub.f32 1.0, %v1190_v35  ;;  %v8906_v1 = vld [vmem:[#allocation50_spill] sm:$0xff]  ;;  %v1199_v10 = vsub.f32 1.0, %v1191_v55 }
 0x29d   : > { %v6242_v39 = vmul.f32 %v8906_v1, %v8894_v23  ;;  %v988_v16 = vadd.f32 %v8913_v59, %v972_v30  ;;  %v8914_v23 = vld [vmem:[#allocation72_spill] sm:$0xff] }
 0x29e   : > { %v990_v1 = vadd.f32 %v8852_v44, %v974_v3  ;;  %v975_v20 = vmul.f32 %v8915_v36, %v8914_v23  ;;  %v1192_v23 = vmul.f32 %v6124_v41, %v6124_v41  ;;  %v8921_v41 = vld [vmem:[#allocation75_spill] sm:$0xff] }
 0x29f   : > { %8907 = vst [vmem:[#allocation20_spill] sm:$0xff] %v6242_v39  ;;  %v1197_v39 = vsub.f32 1.0, %v1189_v28 }
 0x2a0   : > { %v6284_v29 = vadd.f32 %v5665_v53, %v975_v20 }
 0x346   : > { %v4545_v8 = vpop.f32.mrb[24].mxu0 }
 0x347   : > { %v1206_v9 = vmul.f32 %v4545_v8, %v1198_v37  ;;  %v1141_v35 = vpop.f32.mrb[25].mxu0  ;;  %v8917_v37 = vld [vmem:[#allocation73_spill] sm:$0xff]  ;;  %v8918_v8 = vld [vmem:[#allocation78_spill] sm:$0xff] }
 0x348   : > { %v1204_v14 = vmul.f32 %v1196_v47, %v1141_v35  ;;  %v4546_v22 = vpop.f32.mrb[26].mxu0  ;;  %v978_v55 = vmul.f32 %v8918_v8, %v8917_v37  ;;  %v1194_v47 = vmul.f32 %v6051_v49, %v6051_v49 }
 0x349   : > { %v1246_v13 = vmul.f32 %v1206_v9, %v8916_v19  ;;  %v1207_v12 = vmul.f32 %v4546_v22, %v1199_v10  ;;  %v1144_v40 = vpop.f32.mrb[27].mxu0  ;;  %v1195_v22 = vmul.f32 %v6138_v34, %v6138_v34  ;;  %v6275_v10 = vadd.f32 %v5656_v48, %v977_v45 }
 0x34a   : > { %v1244_v3 = vmul.f32 %v1204_v14, %v8916_v19  ;;  %v1205_v26 = vmul.f32 %v1197_v39, %v1144_v40  ;;  %v8920_v39 = vsub.f32 %v6117_v63, %v6121_v17  ;;  %v8922_v45 = vsub.f32 %v6130_v21, %v6144_v33 }
 0x34b   : > { %v1254_v30 = vsub.f32 %v8919_v38, %v1246_v13  ;;  %v1247_v28 = vmul.f32 %v1207_v12, %v8916_v19  ;;  %v976_v12 = vmul.f32 %v8921_v41, %v5970_v61  ;;  %v6292_v14 = vadd.f32 %v5672_v56, %v978_v55  ;;  %v8924_v13 = vld [vmem:[#allocation68_spill] sm:$0xff] }
 0x34c   : > { %v1252_v9 = vsub.f32 %v8920_v39, %v1244_v3  ;;  %v1245_v49 = vmul.f32 %v1205_v26, %v8916_v19  ;;  %v8923_v17 = vsub.f32 %v6148_v11, %v6152_v58  ;;  %v1202_v31 = vsub.f32 1.0, %v1194_v47  ;;  %v8925_v58 = vld [vmem:[#allocation30_spill] sm:$0xff] }
 0x34d   : > { %v1270_v35 = vadd.f32 %v1262_v52, %v1254_v30  ;;  %v1255_v34 = vsub.f32 %v8922_v45, %v1247_v28  ;;  %v1200_v61 = vsub.f32 1.0, %v1192_v23  ;;  %v1203_v52 = vsub.f32 1.0, %v1195_v22 }
 0x34e   : > { %v1268_v63 = vadd.f32 %v1260_v6, %v1252_v9  ;;  %v1253_v26 = vsub.f32 %v8923_v17, %v1245_v49  ;;  %v1201_v6 = vsub.f32 1.0, %v1193_v18 }
 0x34f   : > { %v1326_v20 = vmul.f32 %v8924_v13, %v1270_v35  ;;  %v1271_v40 = vadd.f32 %v1263_v0, %v1255_v34  ;;  %v4569_v37 = vpop.f32.mrb[16].mxu1  ;;  %v4549_v3 = vpop.f32.mrb[28].mxu0  ;;  %v1358_v11 = vmul.f32 %v1270_v35, %v8925_v58  ;;  %v8926_v34 = vld [vmem:[#allocation34_spill] sm:$0xff] }
 0x350   : > { %v1324_v38 = vmul.f32 %v8858_v43, %v1268_v63  ;;  %v1269_v21 = vadd.f32 %v1261_v62, %v1253_v26  ;;  %v1487_v33 = vadd.f32 %v4569_v37, %v5768_v7  ;;  %v1422_v55 = vpop.f32.mrb[17].mxu1  ;;  %v1157_v30 = vpop.f32.mrb[29].mxu0  ;;  %v1356_v22 = vmul.f32 %v1268_v63, %v5596_v2  ;;  %v8956_v58 = vld [vmem:[#allocation26_spill] sm:$0xff] }
 0x351   : > { %v6300_v28 = vadd.f32 %v1326_v20, %v989_v60  ;;  %v1327_v47 = vmul.f32 %v8857_v51, %v1271_v40  ;;  %v1485_v0 = vadd.f32 %v5768_v7, %v1422_v55  ;;  %v4570_v39 = vpop.f32.mrb[18].mxu1  ;;  %v4550_v9 = vpop.f32.mrb[30].mxu0  ;;  %v1359_v35 = vmul.f32 %v1271_v40, %v8926_v34 }
 0x352   : > { %v6305_v23 = vadd.f32 %v1324_v38, %v987_v4  ;;  %v1325_v62 = vmul.f32 %v8860_v50, %v1269_v21  ;;  %v1357_v49 = vmul.f32 %v1269_v21, %v5615_v25  ;;  %v1425_v45 = vpop.f32.mrb[19].mxu1  ;;  %v1160_v18 = vpop.f32.mrb[31].mxu0  ;;  %4937 = vtanh.f32 %v1487_v33  ;;  %v8958_v25 = vld [vmem:[#allocation81_spill] sm:$0xff] }
 0x353   : > { %v6310_v60 = vadd.f32 %v1327_v47, %v990_v1  ;;  %v1210_v17 = vmul.f32 %v4549_v3, %v1202_v31  ;;  %4939 = vtanh.f32 %v1485_v0  ;;  %v1208_v20 = vmul.f32 %v1200_v61, %v1157_v30 }
 0x354   : > { %v6313_v26 = vadd.f32 %v1325_v62, %v988_v16  ;;  %v1211_v4 = vmul.f32 %v4550_v9, %v1203_v52  ;;  %v1488_v63 = vadd.f32 %v4570_v39, %v5768_v7  ;;  %v1486_v38 = vadd.f32 %v5768_v7, %v1425_v45  ;;  %v8931_v62 = vld [vmem:[#allocation18_spill] sm:$0xff] }
 0x355   : > { %v1250_v37 = vmul.f32 %v1210_v17, %v8916_v19  ;;  %v1209_v21 = vmul.f32 %v1201_v6, %v1160_v18  ;;  %v1248_v55 = vmul.f32 %v1208_v20, %v8916_v19  ;;  %v6321_v40 = vadd.f32 %v5620_v27, %v1356_v22  ;;  %v8930_v22 = vld [vmem:[#allocation19_spill] sm:$0xff]  ;;  %v8936_v20 = vld [vmem:[#allocation22_spill] sm:$0xff] }
 0x356   : > { %v1251_v1 = vmul.f32 %v1211_v4, %v8916_v19  ;;  %v6324_v16 = vadd.f32 %v8913_v59, %v1357_v49  ;;  %v8927_v31 = vsub.f32 %v6156_v54, %v6164_v5  ;;  %v6331_v33 = vadd.f32 %v5613_v24, %v1358_v11  ;;  %v8932_v49 = vld [vmem:[#allocation102_spill] sm:$0xff] }
 0x357   : > { %v1249_v61 = vmul.f32 %v1209_v21, %v8916_v19  ;;  %v4573_v52 = vpop.f32.mrb[20].mxu1  ;;  %v6334_v30 = vadd.f32 %v8852_v44, %v1359_v35  ;;  %v8928_v6 = vsub.f32 %v6171_v57, %v6175_v46  ;;  %v8929_v0 = vsub.f32 %v6182_v32, %v6188_v42  ;;  %v8934_v57 = vld [vmem:[#allocation46_spill] sm:$0xff]  ;;  %v8935_v32 = vld [vmem:[#allocation20_spill] sm:$0xff] }
 0x358   : > { %v1258_v3 = vsub.f32 %v8927_v31, %v1250_v37  ;;  %v1491_v54 = vadd.f32 %v4573_v52, %v5768_v7  ;;  %v1438_v5 = vpop.f32.mrb[21].mxu1  ;;  %v1384_v9 = vpack.c.bf16 %v6324_v16, %v6321_v40  ;;  %4941 = vtanh.f32 %v1488_v63  ;;  %v8937_v21 = vld [vmem:[#allocation90_spill] sm:$0xff]  ;;  %v8938_v63 = vld [vmem:[#allocation21_spill] sm:$0xff] }
 0x359   : > { %v1256_v47 = vsub.f32 %v8928_v6, %v1248_v55  ;;  %v1259_v39 = vsub.f32 %v8929_v0, %v1251_v1  ;;  %v8933_v45 = vsub.f32 %v8931_v62, %v8932_v49  ;;  %v4574_v35 = vpop.f32.mrb[22].mxu1  ;;  %v1385_v46 = vpack.c.bf16 %v6334_v30, %v6331_v33  ;;  %v8940_v52 = vld [vmem:[#allocation37_spill] sm:$0xff]  ;;  %v8944_v62 = vld [vmem:[#allocation48_spill] sm:$0xff] }
 0x35a   : > { %v1274_v11 = vadd.f32 %v8930_v22, %v1258_v3  ;;  %v992_v42 = vadd.f32 %v8934_v57, %v976_v12  ;;  %4943 = vtanh.f32 %v1486_v38  ;;  %v1441_v37 = vpop.f32.mrb[23].mxu1  ;;  %4575 = vmatprep.mubr.bf16.mxu1 %v1384_v9  ;;  %v1489_v31 = vadd.f32 %v5768_v7, %v1438_v5  ;;  %v8939_v3 = vld [vmem:[#allocation84_spill] sm:$0xff]  ;;  %v8941_v12 = vld [vmem:[#allocation91_spill] sm:$0xff]  ;;  %v8945_v49 = vld [vmem:[#allocation85_spill] sm:$0xff] }
 0x35b   : > { %v1257_v18 = vsub.f32 %v8933_v45, %v1249_v61  ;;  %v1272_v17 = vadd.f32 %v8935_v32, %v1256_v47  ;;  %v1275_v4 = vadd.f32 %v8936_v20, %v1259_v39  ;;  %4945 = vtanh.f32 %v1491_v54  ;;  %4576 = vmatmul.mubr.bf16.gmra.mrb[24].mxu1 %v1385_v46  ;;  %v8943_v9 = vld [vmem:[#allocation47_spill] sm:$0xff] }
 0x35c   : > { %v1330_v55 = vmul.f32 %v8937_v21, %v1274_v11  ;;  %v1492_v38 = vadd.f32 %v4574_v35, %v5768_v7  ;;  %v6361_v47 = vpop.eup %4937  ;;  %v1362_v22 = vmul.f32 %v1274_v11, %v8943_v9  ;;  %v8948_v35 = vld [vmem:[#allocation38_spill] sm:$0xff]  ;;  %v1528_v11 = vsub.f32 0.0, %v6334_v30 }
 0x35d   : > { %v1273_v1 = vadd.f32 %v8938_v63, %v1257_v18  ;;  %v1328_v61 = vmul.f32 %v8939_v3, %v1272_v17  ;;  %v1360_v6 = vmul.f32 %v1272_v17, %v8940_v52  ;;  %v1331_v0 = vmul.f32 %v8941_v12, %v1275_v4  ;;  %v6369_v45 = vpop.eup %4939  ;;  %v8950_v63 = vld [vmem:[#allocation55_spill] sm:$0xff]  ;;  %v8954_v52 = vld [vmem:[#allocation53_spill] sm:$0xff] }
 0x35e   : > { %v6364_v39 = vadd.f32 %v1330_v55, %v6275_v10  ;;  %v1363_v54 = vmul.f32 %v1275_v4, %v8944_v62  ;;  %v1527_v17 = vsub.f32 0.0, %v6331_v33  ;;  %v1525_v20 = vsub.f32 0.0, %v6321_v40  ;;  %v8952_v62 = vld [vmem:[#allocation35_spill] sm:$0xff] }
 0x35f   : > { %v1329_v5 = vmul.f32 %v8945_v49, %v1273_v1  ;;  %v6372_v18 = vadd.f32 %v1328_v61, %v6284_v29  ;;  %v6375_v46 = vadd.f32 %v1331_v0, %v6292_v14  ;;  %v1361_v32 = vmul.f32 %v1273_v1, %v8948_v35  ;;  %v8951_v0 = vld [vmem:[#allocation56_spill] sm:$0xff] }
 0x360   : > { %8942 = vst [vmem:[#allocation41_spill] sm:$0xff] %v6364_v39  ;;  %v1526_v4 = vsub.f32 0.0, %v6324_v16  ;;  %v1490_v55 = vadd.f32 %v5768_v7, %v1441_v37  ;;  %v1591_v29 = vmul.f32 %v1527_v17, %v8924_v13  ;;  %v1663_v61 = vmul.f32 %v8950_v63, %v1527_v17  ;;  %v8955_v37 = vld [vmem:[#allocation54_spill] sm:$0xff] }
 0x361   : > { %8946 = vst [vmem:[#allocation44_spill] sm:$0xff] %v6372_v18  ;;  %8947 = vst [vmem:[#allocation39_spill] sm:$0xff] %v6375_v46  ;;  %v6379_v10 = vadd.f32 %v1329_v5, %v992_v42  ;;  %v6388_v14 = vadd.f32 %v5665_v53, %v1360_v6  ;;  %v1592_v1 = vmul.f32 %v1528_v11, %v8857_v51  ;;  %4947 = vtanh.f32 %v1489_v31  ;;  %v8968_v31 = vld [vmem:[#allocation57_spill] sm:$0xff]  ;;  %v8976_v53 = vld [vmem:[#allocation94_spill] sm:$0xff] }
 0x362   : > { %v1664_v42 = vmul.f32 %v8951_v0, %v1528_v11  ;;  %v1589_v5 = vmul.f32 %v1525_v20, %v8858_v43  ;;  %v1590_v9 = vmul.f32 %v1526_v4, %v8860_v50  ;;  %v6395_v35 = vadd.f32 %v1591_v29, %v8952_v62  ;;  %v6402_v6 = vpop.eup %4941  ;;  %v8960_v11 = vld [vmem:[#allocation82_spill] sm:$0xff]  ;;  %v8962_v62 = vld [vmem:[#allocation24_spill] sm:$0xff] }
 0x363   : > { %8949 = vst [vmem:[#allocation42_spill] sm:$0xff] %v6379_v10  ;;  %v1661_v7 = vmul.f32 %v8954_v52, %v1525_v20  ;;  %v1662_v34 = vmul.f32 %v8955_v37, %v1526_v4  ;;  %v6400_v17 = vadd.f32 %v8956_v58, %v1663_v61  ;;  %v6405_v2 = vadd.f32 %v1592_v1, %v8958_v25  ;;  %v8964_v4 = vld [vmem:[#allocation23_spill] sm:$0xff]  ;;  %v8966_v58 = vld [vmem:[#allocation25_spill] sm:$0xff] }
 0x364   : > { %8953 = vst [vmem:[#allocation52_spill] sm:$0xff] %v6395_v35  ;;  %v6408_v8 = vadd.f32 %v1589_v5, %v8960_v11  ;;  %v6411_v41 = vadd.f32 %v1590_v9, %v8961_v15  ;;  %v6414_v29 = vadd.f32 %v8962_v62, %v1664_v42  ;;  %v6416_v20 = vpop.eup %4943  ;;  %v6425_v25 = vadd.f32 %v8934_v57, %v1361_v32 }
 0x365   : > { %8957 = vst [vmem:[#allocation80_spill] sm:$0xff] %v6400_v17  ;;  %8959 = vst [vmem:[#allocation50_spill] sm:$0xff] %v6405_v2  ;;  %v6419_v36 = vadd.f32 %v8964_v4, %v1661_v7  ;;  %v6422_v61 = vadd.f32 %v8966_v58, %v1662_v34  ;;  %v1378_v1 = vadd.f32 %v5656_v48, %v1362_v22  ;;  %v6428_v5 = vpop.eup %4945  ;;  %v1529_v42 = vsub.f32 0.0, %v6388_v14  ;;  %v8969_v58 = vld [vmem:[#allocation71_spill] sm:$0xff] }
 0x366   : > { %8963 = vst [vmem:[#allocation51_spill] sm:$0xff] %v6414_v29  ;;  %v1694_v15 = vpack.c.bf16 %v6414_v29, %v6400_v17  ;;  %v1379_v9 = vadd.f32 %v5672_v56, %v1363_v54  ;;  %4949 = vtanh.f32 %v1492_v38  ;;  %v1386_v32 = vpack.c.bf16 %v6425_v25, %v6388_v14  ;;  %v8970_v29 = vld [vmem:[#allocation92_spill] sm:$0xff]  ;;  %v8972_v17 = vld [vmem:[#allocation58_spill] sm:$0xff]  ;;  %v8973_v48 = vld [vmem:[#allocation27_spill] sm:$0xff] }
 0x367   : > { %8965 = vst [vmem:[#allocation49_spill] sm:$0xff] %v6419_v36  ;;  %8967 = vst [vmem:[#allocation36_spill] sm:$0xff] %v6422_v61  ;;  %v1693_v34 = vpack.c.bf16 %v6422_v61, %v6419_v36  ;;  %v1530_v22 = vsub.f32 0.0, %v6425_v25  ;;  %v1593_v11 = vmul.f32 %v1529_v42, %v8939_v3  ;;  %v1665_v62 = vmul.f32 %v8968_v31, %v1529_v42  ;;  %v8979_v2 = vld [vmem:[#allocation31_spill] sm:$0xff] }
 0x368   : > { %v1387_v7 = vpack.c.bf16 %v1379_v9, %v1378_v1  ;;  %4951 = vtanh.f32 %v1490_v55  ;;  %4579 = vmatprep.mubr.bf16.mxu1 %v1386_v32  ;;  %v1531_v54 = vsub.f32 0.0, %v1378_v1  ;;  %v1532_v4 = vsub.f32 0.0, %v1379_v9  ;;  %v8975_v32 = vld [vmem:[#allocation59_spill] sm:$0xff] }
 0x369   : > { %4599 = vmatprep.mubr.bf16.mxu0 %v1693_v34  ;;  %v6443_v38 = vmul.f32 %v6361_v47, %v8969_v58  ;;  %v1594_v61 = vmul.f32 %v1530_v22, %v8945_v49  ;;  %v6447_v36 = vadd.f32 %v1593_v11, %v8970_v29  ;;  %v1666_v56 = vmul.f32 %v8972_v17, %v1530_v22  ;;  %v8981_v29 = vld [vmem:[#allocation60_spill] sm:$0xff]  ;;  %v8982_v22 = vld [vmem:[#allocation70_spill] sm:$0xff]  ;;  %v8998_v49 = vld [vmem:[#allocation67_spill] sm:$0xff] }
 0x36a   : > { %4600 = vmatmul.mubr.bf16.vlgmr.msra.gmra.mrb[32].mxu0 %v1694_v15  ;;  %4580 = vmatmul.mubr.bf16.gmra.mrb[28].mxu1 %v1387_v7  ;;  %v6451_v42 = vadd.f32 %v8973_v48, %v1665_v62  ;;  %v1595_v55 = vmul.f32 %v1531_v54, %v8937_v21  ;;  %v1596_v34 = vmul.f32 %v1532_v4, %v8941_v12  ;;  %v8977_v15 = vld [vmem:[#allocation95_spill] sm:$0xff]  ;;  %v8983_v62 = vld [vmem:[#allocation97_spill] sm:$0xff] }
 0x36b   : > { %8971 = vst [vmem:[#allocation72_spill] sm:$0xff] %v6447_v36  ;;  %v1667_v57 = vmul.f32 %v8975_v32, %v1531_v54  ;;  %4648 = vmatpush3.bf16.msra.mxu0 %v8976_v53  ;;  %v6458_v7 = vadd.f32 %v1594_v61, %v8977_v15  ;;  %v6461_v10 = vadd.f32 %v8979_v2, %v1666_v56  ;;  %v8984_v36 = vld [vmem:[#allocation98_spill] sm:$0xff]  ;;  %v8986_v54 = vld [vmem:[#allocation79_spill] sm:$0xff]  ;;  %v8988_v15 = vld [vmem:[#allocation32_spill] sm:$0xff] }
 0x36c   : > { %8974 = vst [vmem:[#allocation76_spill] sm:$0xff] %v6451_v42  ;;  %v1668_v11 = vmul.f32 %v8981_v29, %v1532_v4  ;;  %v6466_v48 = vmul.f32 %v6331_v33, %v8982_v22  ;;  %4649 = vmatprep.subr.bf16.mxu0 %v8983_v62  ;;  %v6470_v35 = vadd.f32 %v1595_v55, %v8984_v36  ;;  %v8990_v56 = vld [vmem:[#allocation28_spill] sm:$0xff]  ;;  %v6494_v55 = vpop.eup %4947 }
 0x36d   : > { %8978 = vst [vmem:[#allocation73_spill] sm:$0xff] %v6458_v7  ;;  %8980 = vst [vmem:[#allocation19_spill] sm:$0xff] %v6461_v10  ;;  %v6473_v46 = vadd.f32 %v1596_v34, %v8986_v54  ;;  %v1695_v61 = vpack.c.bf16 %v6461_v10, %v6451_v42  ;;  %v6478_v2 = vadd.f32 %v8988_v15, %v1667_v57  ;;  %v8992_v15 = vld [vmem:[#allocation101_spill] sm:$0xff] }
 0x36e   : > { %8985 = vst [vmem:[#allocation18_spill] sm:$0xff] %v6470_v35  ;;  %v6481_v4 = vadd.f32 %v8990_v56, %v1668_v11  ;;  %v6487_v7 = vmul.f32 %v6369_v45, %v8969_v58  ;;  %v6491_v36 = vmul.f32 %v6321_v40, %v8982_v22  ;;  %v6500_v34 = vmul.f32 %v6402_v6, %v8969_v58  ;;  %v6540_v54 = vld [vmem:[%s8468_s3 + $0x18] sm:$0xff]  }
 0x36f   : > { %8987 = vst [vmem:[#allocation102_spill] sm:$0xff] %v6473_v46  ;;  %8989 = vst [vmem:[#allocation20_spill] sm:$0xff] %v6478_v2  ;;  %4650 = vmatpush3.bf16.msra.mxu0 %v8983_v62  ;;  %4603 = vmatprep.mubr.bf16.mxu0 %v1695_v61  ;;  %v6508_v40 = vmul.f32 %v6334_v30, %v8982_v22  ;;  %v6513_v61 = vmul.f32 %v6416_v20, %v8969_v58 }
 0x370   : > { %8991 = vst [vmem:[#allocation22_spill] sm:$0xff] %v6481_v4  ;;  %v1696_v57 = vpack.c.bf16 %v6481_v4, %v6478_v2  ;;  %v6502_v11 = vpop.eup %4949  ;;  %4651 = vmatprep.subr.bf16.mxu0 %v8992_v15  ;;  %v6517_v56 = vmul.f32 %v6324_v16, %v8982_v22  ;;  %v6525_v30 = vmul.f32 %v6428_v5, %v8969_v58  ;;  %8993 = vst [vmem:[#allocation21_spill] sm:$0xff] %v6540_v54 }
 0x371   : > { %v6528_v10 = vmul.f32 %v1378_v1, %v8982_v22  ;;  %v6535_v16 = vmul.f32 %v6494_v55, %v8969_v58  ;;  %v6547_v4 = vmul.f32 %v6388_v14, %v8982_v22  ;;  %v6564_v1 = vmul.f32 %v6425_v25, %v8982_v22  ;;  %v6581_v25 = vld [vmem:[%s8468_s3 + $0x28] sm:$0xff]   ;;  %v6588_v14 = vld [vmem:[%s8468_s3 + $0x30] sm:$0xff]  }
 0x372   : > { %4604 = vmatmul.mubr.bf16.gmra.mrb[36].mxu0 %v1696_v57  ;;  %v6519_v33 = vpop.eup %4951  ;;  %v1550_v57 = vsub.f32 %v6513_v61, %v6517_v56  ;;  %v6551_v61 = vmul.f32 %v6502_v11, %v8969_v58  ;;  %v6554_v56 = vmul.f32 %v1379_v9, %v8982_v22  ;;  %v6572_v9 = vld [vmem:[%s8468_s3 + $0x20] sm:$0xff]   ;;  %8995 = vst [vmem:[#allocation26_spill] sm:$0xff] %v6581_v25  ;;  %8996 = vst [vmem:[#allocation81_spill] sm:$0xff] %v6588_v14 }
 0x373   : > { %4652 = vmatpush3.bf16.msra.mxu0 %v8992_v15  ;;  %v6558_v42 = vmul.f32 %v6519_v33, %v8969_v58  ;;  %8994 = vst [vmem:[#allocation35_spill] sm:$0xff] %v6572_v9  ;;  %v6595_v15 = vld [vmem:[%s8468_s3 + $0x38] sm:$0xff]   ;;  %v1503_v2 = vmul.f32 %v6361_v47, %v6361_v47  ;;  %v8999_v47 = vld [vmem:[#allocation87_spill] sm:$0xff] }
 0x374   : > { %4653 = vmatprep.subr.bf16.mxu0 %v6540_v54  ;;  %8997 = vst [vmem:[#allocation82_spill] sm:$0xff] %v6595_v15  ;;  %v1573_v18 = vmul.f32 %v8999_v47, %v8998_v49  ;;  %v9005_v47 = vld [vmem:[#allocation99_spill] sm:$0xff] }
 0x377   : > { %4654 = vmatpush3.bf16.msra.mxu0 %v6540_v54  ;;  %v1511_v54 = vsub.f32 1.0, %v1503_v2 }
 0x378   : > { %4655 = vmatprep.subr.bf16.mxu0 %v6572_v9 }
 0x37b   : > { %4656 = vmatpush3.bf16.msra.mxu0 %v6572_v9  ;;  %v1502_v9 = vmul.f32 %v6416_v20, %v6416_v20  ;;  %v9001_v20 = vld [vmem:[#allocation93_spill] sm:$0xff] }
 0x37c   : > { %4657 = vmatprep.subr.bf16.mxu0 %v6581_v25  ;;  %v6615_v2 = vmul.f32 %v9001_v20, %v8998_v49 }
 0x37d   : > { %v1510_v17 = vsub.f32 1.0, %v1502_v9  ;;  %v9003_v9 = vsub.f32 %v6443_v38, %v6466_v48  ;;  %v9007_v38 = vld [vmem:[#allocation100_spill] sm:$0xff] }
 0x37e   : > { %v6642_v48 = vmul.f32 %v9007_v38, %v8998_v49 }
 0x37f   : > { %4658 = vmatpush3.bf16.msra.mxu0 %v6581_v25  ;;  %v1501_v25 = vmul.f32 %v6369_v45, %v6369_v45  ;;  %v9000_v45 = vld [vmem:[#allocation89_spill] sm:$0xff] }
 0x380   : > { %4659 = vmatprep.subr.bf16.mxu0 %v6588_v14  ;;  %v1574_v29 = vmul.f32 %v9000_v45, %v8998_v49  ;;  %v1505_v45 = vmul.f32 %v6494_v55, %v6494_v55 }
 0x381   : > { %v1509_v46 = vsub.f32 1.0, %v1501_v25 }
 0x383   : > { %4660 = vmatpush3.bf16.msra.mxu0 %v6588_v14  ;;  %v1504_v14 = vmul.f32 %v6402_v6, %v6402_v6 }
 0x384   : > { %4661 = vmatprep.subr.bf16.mxu0 %v6595_v15 }
 0x387   : > { %4662 = vmatpush3.bf16.msra.mxu0 %v6595_v15  ;;  %v1512_v15 = vsub.f32 1.0, %v1504_v14 }
 0x388   : > { %4711 = vmatprep.subr.bf16.mxu0 %v8976_v53 }
 0x42e   : > { %v4577_v62 = vpop.f32.mrb[24].mxu1 }
 0x42f   : > { %v1519_v35 = vmul.f32 %v4577_v62, %v1511_v54  ;;  %v1454_v22 = vpop.f32.mrb[25].mxu1 }
 0x430   : > { %v1517_v58 = vmul.f32 %v1509_v46, %v1454_v22  ;;  %v4578_v53 = vpop.f32.mrb[26].mxu1  ;;  %v1507_v46 = vmul.f32 %v6428_v5, %v6428_v5  ;;  %v9002_v22 = vld [vmem:[#allocation96_spill] sm:$0xff] }
 0x431   : > { %v1559_v6 = vmul.f32 %v1519_v35, %v8916_v19  ;;  %v1520_v12 = vmul.f32 %v4578_v53, %v1512_v15  ;;  %v1457_v39 = vpop.f32.mrb[27].mxu1  ;;  %v6622_v14 = vmul.f32 %v9002_v22, %v8998_v49  ;;  %v9004_v53 = vld [vmem:[#allocation83_spill] sm:$0xff]  ;;  %v9009_v22 = vld [vmem:[#allocation88_spill] sm:$0xff] }
 0x432   : > { %v1557_v62 = vmul.f32 %v1517_v58, %v8916_v19  ;;  %v1518_v54 = vmul.f32 %v1510_v17, %v1457_v39  ;;  %v1575_v15 = vmul.f32 %v9004_v53, %v8998_v49  ;;  %v6632_v58 = vmul.f32 %v9005_v47, %v8998_v49 }
 0x433   : > { %v1567_v35 = vsub.f32 %v9003_v9, %v1559_v6  ;;  %v1560_v25 = vmul.f32 %v1520_v12, %v8916_v19  ;;  %v9006_v39 = vsub.f32 %v6487_v7, %v6491_v36  ;;  %v9008_v12 = vsub.f32 %v6500_v34, %v6508_v40 }
 0x434   : > { %v1558_v5 = vmul.f32 %v1518_v54, %v8916_v19  ;;  %v1576_v9 = vmul.f32 %v9009_v22, %v8998_v49  ;;  %v1515_v36 = vsub.f32 1.0, %v1507_v46 }
 0x435   : > { %v1565_v17 = vsub.f32 %v9006_v39, %v1557_v62  ;;  %v1583_v6 = vadd.f32 %v1575_v15, %v1567_v35  ;;  %v1568_v20 = vsub.f32 %v9008_v12, %v1560_v25  ;;  %v1508_v62 = vmul.f32 %v6502_v11, %v6502_v11 }
 0x436   : > { %v1566_v7 = vsub.f32 %v1550_v57, %v1558_v5  ;;  %v1506_v35 = vmul.f32 %v6519_v33, %v6519_v33  ;;  %v1513_v25 = vsub.f32 1.0, %v1505_v45 }
 0x437   : > { %v1581_v53 = vadd.f32 %v1573_v18, %v1565_v17  ;;  %v1599_v55 = vmul.f32 %v1583_v6, %v8924_v13  ;;  %v1671_v54 = vmul.f32 %v8950_v63, %v1583_v6  ;;  %v1584_v47 = vadd.f32 %v1576_v9, %v1568_v20 }
 0x438   : > { %v1582_v15 = vadd.f32 %v1574_v29, %v1566_v7  ;;  %v1516_v5 = vsub.f32 1.0, %v1508_v62  ;;  %v1514_v45 = vsub.f32 1.0, %v1506_v35 }
 0x439   : > { %v1597_v34 = vmul.f32 %v1581_v53, %v8858_v43  ;;  %v1669_v40 = vmul.f32 %v8954_v52, %v1581_v53  ;;  %v6658_v18 = vadd.f32 %v1599_v55, %v6300_v28  ;;  %v1600_v57 = vmul.f32 %v1584_v47, %v8857_v51  ;;  %v9049_v52 = vld [vmem:[#allocation94_spill] sm:$0xff] }
 0x43a   : > { %v1672_v11 = vmul.f32 %v8951_v0, %v1584_v47  ;;  %v6663_v46 = vadd.f32 %v5613_v24, %v1671_v54  ;;  %v1598_v33 = vmul.f32 %v1582_v15, %v8860_v50  ;;  %v1670_v17 = vmul.f32 %v8955_v37, %v1582_v15  ;;  %v9047_v37 = vld [vmem:[#allocation18_spill] sm:$0xff] }
 0x43b   : > { %v6666_v39 = vadd.f32 %v1597_v34, %v6305_v23  ;;  %v6671_v29 = vadd.f32 %v5620_v27, %v1669_v40  ;;  %v6674_v28 = vadd.f32 %v1600_v57, %v6310_v60  ;;  %v6690_v60 = vld [vmem:[%s8469_s4] ss:$0 sm:$0xff] }
 0x43c   : > { %v6677_v38 = vadd.f32 %v8852_v44, %v1672_v11  ;;  %v6680_v24 = vadd.f32 %v1598_v33, %v6313_v26  ;;  %v6683_v12 = vadd.f32 %v8913_v59, %v1670_v17  ;;  %v1840_v27 = vsub.f32 0.0, %v6663_v46  ;;  %9010 = vst [vmem:[#allocation86_spill] sm:$0xff] %v6690_v60 }
 0x43d   : > { %v4601_v23 = vpop.f32.mrb[32].mxu0  ;;  %v4581_v6 = vpop.f32.mrb[28].mxu1  ;;  %v1838_v20 = vsub.f32 0.0, %v6671_v29  ;;  %v9011_v17 = vsub.f32 %v6525_v30, %v6528_v10  ;;  %v9015_v10 = vsub.f32 %v6551_v61, %v6554_v56 }
 0x43e   : > { %v1800_v44 = vadd.f32 %v6690_v60, %v4601_v23  ;;  %v1735_v22 = vpop.f32.mrb[33].mxu0  ;;  %v1523_v9 = vmul.f32 %v4581_v6, %v1515_v36  ;;  %v1470_v26 = vpop.f32.mrb[29].mxu1  ;;  %v1698_v53 = vpack.c.bf16 %v6677_v38, %v6663_v46  ;;  %v1841_v59 = vsub.f32 0.0, %v6677_v38 }
 0x43f   : > { %v1798_v7 = vadd.f32 %v6690_v60, %v1735_v22  ;;  %v4602_v62 = vpop.f32.mrb[34].mxu0  ;;  %v1521_v55 = vmul.f32 %v1513_v25, %v1470_v26  ;;  %v4582_v54 = vpop.f32.mrb[30].mxu1  ;;  %v1697_v47 = vpack.c.bf16 %v6683_v12, %v6671_v29  ;;  %v1839_v35 = vsub.f32 0.0, %v6683_v12 }
 0x440   : > { %4953 = vtanh.f32 %v1800_v44  ;;  %v1563_v34 = vmul.f32 %v1523_v9, %v8916_v19  ;;  %v1801_v36 = vadd.f32 %v6690_v60, %v4602_v62  ;;  %v1738_v40 = vpop.f32.mrb[35].mxu0  ;;  %v1524_v15 = vmul.f32 %v4582_v54, %v1516_v5  ;;  %v1473_v57 = vpop.f32.mrb[31].mxu1  ;;  %v9012_v44 = vld [vmem:[#allocation61_spill] sm:$0xff] }
 0x441   : > { %4955 = vtanh.f32 %v1798_v7  ;;  %v1561_v11 = vmul.f32 %v1521_v55, %v8916_v19  ;;  %v1799_v33 = vadd.f32 %v6690_v60, %v1738_v40  ;;  %v1522_v25 = vmul.f32 %v1514_v45, %v1473_v57  ;;  %4607 = vmatprep.mubr.bf16.mxu0 %v1697_v47  ;;  %v9014_v7 = vld [vmem:[#allocation62_spill] sm:$0xff]  ;;  %v9022_v57 = vld [vmem:[#allocation91_spill] sm:$0xff] }
 0x442   : > { %v1571_v23 = vsub.f32 %v9011_v17, %v1563_v34  ;;  %4957 = vtanh.f32 %v1801_v36  ;;  %v1564_v6 = vmul.f32 %v1524_v15, %v8916_v19  ;;  %v1902_v22 = vmul.f32 %v1838_v20, %v9012_v44  ;;  %4608 = vmatmul.mubr.bf16.gmra.mrb[40].mxu0 %v1698_v53  ;;  %v9017_v20 = vld [vmem:[#allocation63_spill] sm:$0xff]  ;;  %v9021_v15 = vld [vmem:[#allocation41_spill] sm:$0xff]  ;;  %v9024_v17 = vld [vmem:[#allocation44_spill] sm:$0xff] }
 0x443   : > { %v9013_v5 = vsub.f32 %v6535_v16, %v6547_v4  ;;  %4959 = vtanh.f32 %v1799_v33  ;;  %v1562_v26 = vmul.f32 %v1522_v25, %v8916_v19  ;;  %v1903_v45 = vmul.f32 %v1839_v35, %v9014_v7  ;;  %v9023_v33 = vld [vmem:[#allocation60_spill] sm:$0xff] }
 0x444   : > { %v1587_v62 = vadd.f32 %v6632_v58, %v1571_v23  ;;  %v1572_v30 = vsub.f32 %v9015_v10, %v1564_v6  ;;  %v6719_v55 = vadd.f32 %v1902_v22, %v6408_v8  ;;  %v1904_v53 = vmul.f32 %v1840_v27, %v9017_v20  ;;  %v9020_v58 = vld [vmem:[#allocation64_spill] sm:$0xff]  ;;  %v9025_v6 = vld [vmem:[#allocation85_spill] sm:$0xff] }
 0x445   : > { %v1569_v9 = vsub.f32 %v9013_v5, %v1561_v11  ;;  %v9018_v4 = vsub.f32 %v6558_v42, %v6564_v1  ;;  %v4605_v47 = vpop.f32.mrb[36].mxu0  ;;  %v6727_v35 = vadd.f32 %v1903_v45, %v6411_v41  ;;  %v1905_v34 = vmul.f32 %v1841_v59, %v9020_v58  ;;  %v9026_v5 = vld [vmem:[#allocation58_spill] sm:$0xff] }
 0x446   : > { %9016 = vst [vmem:[#allocation24_spill] sm:$0xff] %v6719_v55  ;;  %v1603_v61 = vmul.f32 %v1587_v62, %v8937_v21  ;;  %v1675_v56 = vmul.f32 %v8975_v32, %v1587_v62  ;;  %v1588_v8 = vadd.f32 %v6642_v48, %v1572_v30  ;;  %v1804_v27 = vadd.f32 %v6690_v60, %v4605_v47  ;;  %v1751_v36 = vpop.f32.mrb[37].mxu0  ;;  %v9028_v30 = vld [vmem:[#allocation52_spill] sm:$0xff]  ;;  %v9053_v21 = vld [vmem:[#allocation101_spill] sm:$0xff] }
 0x447   : > { %v1585_v54 = vadd.f32 %v6615_v2, %v1569_v9  ;;  %v1570_v16 = vsub.f32 %v9018_v4, %v1562_v26  ;;  %9019 = vst [vmem:[#allocation23_spill] sm:$0xff] %v6727_v35  ;;  %v1802_v41 = vadd.f32 %v6690_v60, %v1751_v36  ;;  %v4606_v40 = vpop.f32.mrb[38].mxu0  ;;  %v9027_v26 = vld [vmem:[#allocation39_spill] sm:$0xff] }
 0x448   : > { %v6739_v59 = vadd.f32 %v1603_v61, %v9021_v15  ;;  %v1604_v11 = vmul.f32 %v1588_v8, %v9022_v57  ;;  %v1676_v25 = vmul.f32 %v9023_v33, %v1588_v8  ;;  %4961 = vtanh.f32 %v1804_v27  ;;  %v1754_v48 = vpop.f32.mrb[39].mxu0  ;;  %v9031_v61 = vld [vmem:[#allocation50_spill] sm:$0xff]  ;;  %v9033_v36 = vld [vmem:[#allocation43_spill] sm:$0xff] }
 0x449   : > { %v1601_v2 = vmul.f32 %v1585_v54, %v8939_v3  ;;  %v1673_v42 = vmul.f32 %v8968_v31, %v1585_v54  ;;  %v1586_v1 = vadd.f32 %v6622_v14, %v1570_v16  ;;  %4963 = vtanh.f32 %v1802_v41  ;;  %v9030_v16 = vld [vmem:[#allocation42_spill] sm:$0xff] }
 0x44a   : > { %v6748_v14 = vpop.eup %4953  ;;  %v6751_v45 = vadd.f32 %v1604_v11, %v9027_v26  ;;  %v1805_v62 = vadd.f32 %v6690_v60, %v4606_v40  ;;  %v1803_v10 = vadd.f32 %v6690_v60, %v1754_v48  ;;  %v6756_v54 = vadd.f32 %v1904_v53, %v9028_v30  ;;  %v9034_v41 = vld [vmem:[#allocation46_spill] sm:$0xff]  ;;  %v9035_v53 = vld [vmem:[#allocation40_spill] sm:$0xff]  ;;  %v9036_v11 = vld [vmem:[#allocation45_spill] sm:$0xff] }
 0x44b   : > { %v6744_v23 = vadd.f32 %v1601_v2, %v9024_v17  ;;  %v1602_v22 = vmul.f32 %v1586_v1, %v9025_v6  ;;  %v1674_v9 = vmul.f32 %v9026_v5, %v1586_v1  ;;  %v6758_v4 = vpop.eup %4955  ;;  %v6764_v8 = vadd.f32 %v1905_v34, %v9031_v61  ;;  %v9044_v5 = vld [vmem:[#allocation78_spill] sm:$0xff] }
 0x44c   : > { %9029 = vst [vmem:[#allocation25_spill] sm:$0xff] %v6756_v54  ;;  %v1934_v27 = vpack.c.bf16 %v6727_v35, %v6719_v55  ;;  %v1689_v2 = vadd.f32 %v9033_v36, %v1673_v42  ;;  %v6769_v1 = vpop.eup %4957  ;;  %4965 = vtanh.f32 %v1805_v62  ;;  %v1691_v15 = vadd.f32 %v9035_v53, %v1675_v56  ;;  %v9037_v62 = vld [vmem:[#allocation74_spill] sm:$0xff]  ;;  %v9038_v36 = vld [vmem:[#allocation71_spill] sm:$0xff]  ;;  %v9041_v53 = vld [vmem:[#allocation77_spill] sm:$0xff] }
 0x44d   : > { %v6761_v47 = vadd.f32 %v1602_v22, %v9030_v16  ;;  %9032 = vst [vmem:[#allocation92_spill] sm:$0xff] %v6764_v8  ;;  %v1690_v40 = vadd.f32 %v9034_v41, %v1674_v9  ;;  %v1692_v48 = vadd.f32 %v9036_v11, %v1676_v25  ;;  %v6774_v17 = vpop.eup %4959  ;;  %4967 = vtanh.f32 %v1803_v10  ;;  %v9039_v25 = vld [vmem:[#allocation70_spill] sm:$0xff] }
 0x44e   : > { %4631 = vmatprep.mubr.bf16.mxu1 %v1934_v27  ;;  %v1935_v34 = vpack.c.bf16 %v6764_v8, %v6756_v54  ;;  %v1842_v22 = vsub.f32 0.0, %v1689_v2  ;;  %v1844_v16 = vsub.f32 0.0, %v1691_v15  ;;  %v6781_v56 = vmul.f32 %v6748_v14, %v9038_v36  ;;  %v9040_v27 = vld [vmem:[#allocation75_spill] sm:$0xff]  ;;  %v9056_v6 = vld [vmem:[#allocation26_spill] sm:$0xff] }
 0x44f   : > { %v1699_v26 = vpack.c.bf16 %v1690_v40, %v1689_v2  ;;  %v1843_v30 = vsub.f32 0.0, %v1690_v40  ;;  %v1700_v42 = vpack.c.bf16 %v1692_v48, %v1691_v15  ;;  %v1845_v9 = vsub.f32 0.0, %v1692_v48 }
 0x450   : > { %4632 = vmatmul.mubr.bf16.vlgmr.msra.gmra.mrb[32].mxu1 %v1935_v34  ;;  %v1906_v61 = vmul.f32 %v1842_v22, %v9037_v62  ;;  %v6785_v10 = vmul.f32 %v6663_v46, %v9039_v25  ;;  %v1908_v11 = vmul.f32 %v1844_v16, %v9041_v53  ;;  %v6791_v33 = vmul.f32 %v6758_v4, %v9038_v36  ;;  %v9042_v22 = vld [vmem:[#allocation72_spill] sm:$0xff]  ;;  %v9045_v16 = vld [vmem:[#allocation73_spill] sm:$0xff] }
 0x451   : > { %4611 = vmatprep.mubr.bf16.mxu0 %v1699_v26  ;;  %v1907_v41 = vmul.f32 %v1843_v30, %v9040_v27  ;;  %v6795_v34 = vmul.f32 %v6671_v29, %v9039_v25  ;;  %v1909_v46 = vmul.f32 %v1845_v9, %v9044_v5  ;;  %4680 = vmatpush3.bf16.msra.mxu1 %v9049_v52 }
 0x452   : > { %v6798_v32 = vadd.f32 %v1906_v61, %v9042_v22  ;;  %4612 = vmatmul.mubr.bf16.gmra.mrb[44].mxu0 %v1700_v42  ;;  %v6803_v30 = vpop.eup %4961  ;;  %v6809_v0 = vadd.f32 %v1908_v11, %v9047_v37  ;;  %v9050_v42 = vld [vmem:[#allocation102_spill] sm:$0xff]  ;;  %v6821_v22 = vmul.f32 %v6769_v1, %v9038_v36  ;;  %v9052_v37 = vld [vmem:[#allocation97_spill] sm:$0xff]  ;;  %v6851_v57 = vmul.f32 %v1691_v15, %v9039_v25 }
 0x453   : > { %v6806_v31 = vadd.f32 %v1907_v41, %v9045_v16  ;;  %v6814_v61 = vpop.eup %4963  ;;  %v6817_v9 = vadd.f32 %v1909_v46, %v9050_v42  ;;  %v6825_v41 = vmul.f32 %v6677_v38, %v9039_v25  ;;  %4681 = vmatprep.subr.bf16.mxu1 %v9052_v37  ;;  %v6832_v16 = vmul.f32 %v6774_v17, %v9038_v36 }
 0x454   : > { %9043 = vst [vmem:[#allocation27_spill] sm:$0xff] %v6798_v32  ;;  %9048 = vst [vmem:[#allocation31_spill] sm:$0xff] %v6809_v0  ;;  %v6836_v46 = vmul.f32 %v6683_v12, %v9039_v25  ;;  %v6844_v29 = vmul.f32 %v6803_v30, %v9038_v36  ;;  %v1817_v3 = vmul.f32 %v6769_v1, %v6769_v1 }
 0x455   : > { %9046 = vst [vmem:[#allocation95_spill] sm:$0xff] %v6806_v31  ;;  %9051 = vst [vmem:[#allocation98_spill] sm:$0xff] %v6817_v9  ;;  %v1936_v11 = vpack.c.bf16 %v6806_v31, %v6798_v32  ;;  %v1937_v42 = vpack.c.bf16 %v6817_v9, %v6809_v0  ;;  %v1865_v38 = vsub.f32 %v6821_v22, %v6825_v41  ;;  %4682 = vmatpush3.bf16.msra.mxu1 %v9052_v37 }
 0x456   : > { %v6846_v26 = vpop.eup %4965  ;;  %v1863_v63 = vsub.f32 %v6832_v16, %v6836_v46  ;;  %v6858_v22 = vmul.f32 %v6814_v61, %v9038_v36  ;;  %v6861_v41 = vmul.f32 %v1689_v2, %v9039_v25  ;;  %4683 = vmatprep.subr.bf16.mxu1 %v9053_v21  ;;  %v6871_v37 = vmul.f32 %v1692_v48, %v9039_v25  ;;  %v9055_v16 = vld [vmem:[#allocation35_spill] sm:$0xff]  ;;  %v9057_v2 = vld [vmem:[#allocation81_spill] sm:$0xff] }
 0x457   : > { %4635 = vmatprep.mubr.bf16.mxu1 %v1936_v11  ;;  %v6854_v12 = vpop.eup %4967  ;;  %v6868_v15 = vmul.f32 %v6846_v26, %v9038_v36  ;;  %v9054_v11 = vld [vmem:[#allocation21_spill] sm:$0xff]  ;;  %v1814_v48 = vmul.f32 %v6758_v4, %v6758_v4  ;;  %v1815_v50 = vmul.f32 %v6774_v17, %v6774_v17  ;;  %v1825_v60 = vsub.f32 1.0, %v1817_v3 }
 0x458   : > { %4636 = vmatmul.mubr.bf16.gmra.mrb[36].mxu1 %v1937_v42  ;;  %v6877_v46 = vmul.f32 %v6854_v12, %v9038_v36  ;;  %v6882_v42 = vmul.f32 %v1690_v40, %v9039_v25  ;;  %v1816_v40 = vmul.f32 %v6748_v14, %v6748_v14  ;;  %v9059_v1 = vsub.f32 %v6781_v56, %v6785_v10  ;;  %v9064_v10 = vld [vmem:[#allocation36_spill] sm:$0xff] }
 0x459   : > { %4684 = vmatpush3.bf16.msra.mxu1 %v9053_v21  ;;  %v9058_v21 = vld [vmem:[#allocation82_spill] sm:$0xff]  ;;  %v1822_v13 = vsub.f32 1.0, %v1814_v48 }
 0x45a   : > { %4685 = vmatprep.subr.bf16.mxu1 %v9054_v11  ;;  %v1824_v43 = vsub.f32 1.0, %v1816_v40  ;;  %v9060_v40 = vld [vmem:[#allocation80_spill] sm:$0xff] }
 0x45b   : > { %v1888_v48 = vmul.f32 %v9060_v40, %v8998_v49 }
 0x45d   : > { %4686 = vmatpush3.bf16.msra.mxu1 %v9054_v11 }
 0x45e   : > { %4687 = vmatprep.subr.bf16.mxu1 %v9055_v16 }
 0x461   : > { %4688 = vmatpush3.bf16.msra.mxu1 %v9055_v16 }
 0x462   : > { %4689 = vmatprep.subr.bf16.mxu1 %v9056_v6 }
 0x465   : > { %4690 = vmatpush3.bf16.msra.mxu1 %v9056_v6 }
 0x466   : > { %4691 = vmatprep.subr.bf16.mxu1 %v9057_v2 }
 0x469   : > { %4692 = vmatpush3.bf16.msra.mxu1 %v9057_v2  ;;  %v1823_v2 = vsub.f32 1.0, %v1815_v50  ;;  %v9062_v50 = vsub.f32 %v6791_v33, %v6795_v34  ;;  %v1820_v33 = vmul.f32 %v6803_v30, %v6803_v30 }
 0x46a   : > { %4693 = vmatprep.subr.bf16.mxu1 %v9058_v21 }
 0x46d   : > { %4694 = vmatpush3.bf16.msra.mxu1 %v9058_v21 }
 0x46e   : > { %4743 = vmatprep.subr.bf16.mxu1 %v9049_v52 }
 0x515   : > { %v4609_v51 = vpop.f32.mrb[40].mxu0 }
 0x516   : > { %v1832_v36 = vmul.f32 %v4609_v51, %v1824_v43  ;;  %v1767_v25 = vpop.f32.mrb[41].mxu0  ;;  %v9061_v43 = vld [vmem:[#allocation49_spill] sm:$0xff] }
 0x517   : > { %v1830_v21 = vmul.f32 %v1822_v13, %v1767_v25  ;;  %v4610_v52 = vpop.f32.mrb[42].mxu0  ;;  %v1886_v13 = vmul.f32 %v9061_v43, %v8998_v49 }
 0x518   : > { %v1872_v14 = vmul.f32 %v1832_v36, %v8916_v19  ;;  %v1833_v6 = vmul.f32 %v4610_v52, %v1825_v60  ;;  %v1770_v16 = vpop.f32.mrb[43].mxu0 }
 0x519   : > { %v1870_v4 = vmul.f32 %v1830_v21, %v8916_v19  ;;  %v1831_v11 = vmul.f32 %v1823_v2, %v1770_v16  ;;  %v9063_v16 = vld [vmem:[#allocation51_spill] sm:$0xff]  ;;  %v1887_v2 = vmul.f32 %v9064_v10, %v8998_v49 }
 0x51a   : > { %v1880_v17 = vsub.f32 %v9059_v1, %v1872_v14  ;;  %v1873_v51 = vmul.f32 %v1833_v6, %v8916_v19  ;;  %v1889_v56 = vmul.f32 %v9063_v16, %v8998_v49 }
 0x51b   : > { %v1878_v3 = vsub.f32 %v9062_v50, %v1870_v4  ;;  %v1871_v60 = vmul.f32 %v1831_v11, %v8916_v19  ;;  %v1818_v11 = vmul.f32 %v6814_v61, %v6814_v61 }
 0x51c   : > { %v1896_v36 = vadd.f32 %v1888_v48, %v1880_v17  ;;  %v1881_v25 = vsub.f32 %v1865_v38, %v1873_v51  ;;  %v1821_v17 = vmul.f32 %v6846_v26, %v6846_v26 }
 0x51d   : > { %v1894_v21 = vadd.f32 %v1886_v13, %v1878_v3  ;;  %v1879_v52 = vsub.f32 %v1863_v63, %v1871_v60  ;;  %v1826_v50 = vsub.f32 1.0, %v1818_v11 }
 0x51e   : > { %v1912_v6 = vmul.f32 %v1896_v36, %v9017_v20  ;;  %v1897_v14 = vadd.f32 %v1889_v56, %v1881_v25 }
 0x51f   : > { %v1910_v1 = vmul.f32 %v1894_v21, %v9012_v44  ;;  %v1895_v40 = vadd.f32 %v1887_v2, %v1879_v52 }
 0x520   : > { %v6929_v34 = vadd.f32 %v1912_v6, %v6658_v18  ;;  %v1913_v38 = vmul.f32 %v1897_v14, %v9020_v58  ;;  %v1819_v18 = vmul.f32 %v6854_v12, %v6854_v12 }
 0x521   : > { %v6935_v4 = vadd.f32 %v1910_v1, %v6666_v39  ;;  %v1911_v63 = vmul.f32 %v1895_v40, %v9014_v7  ;;  %v1828_v39 = vsub.f32 1.0, %v1820_v33  ;;  %v9069_v1 = vld [vmem:[#allocation20_spill] sm:$0xff]  ;;  %v9070_v33 = vsub.f32 %v6844_v29, %v6851_v57  ;;  %v9075_v29 = vld [vmem:[#allocation22_spill] sm:$0xff] }
 0x522   : > { %9065 = vst [vmem:[#allocation79_spill] sm:$0xff] %v6929_v34  ;;  %v6941_v48 = vadd.f32 %v1913_v38, %v6674_v28  ;;  %v1829_v28 = vsub.f32 1.0, %v1821_v17  ;;  %v1827_v16 = vsub.f32 1.0, %v1819_v18  ;;  %v1892_v40 = vmul.f32 %v9069_v1, %v8998_v49  ;;  %v9072_v18 = vld [vmem:[#allocation76_spill] sm:$0xff] }
 0x523   : > { %9066 = vst [vmem:[#allocation32_spill] sm:$0xff] %v6935_v4  ;;  %v6943_v30 = vpop.f32.mrb[32].mxu1  ;;  %v6948_v51 = vadd.f32 %v1911_v63, %v6680_v24  ;;  %v2079_v12 = vsub.f32 0.0, %v6935_v4  ;;  %v9071_v63 = vld [vmem:[#allocation29_spill] sm:$0xff] }
 0x524   : > { %9067 = vst [vmem:[#allocation28_spill] sm:$0xff] %v6941_v48  ;;  %v6950_v61 = vpop.f32.mrb[33].mxu1  ;;  %v1939_v56 = vpack.c.bf16 %v6941_v48, %v6929_v34 }
 0x525   : > { %9068 = vst [vmem:[#allocation87_spill] sm:$0xff] %v6948_v51  ;;  %v4613_v43 = vpop.f32.mrb[44].mxu0  ;;  %v6952_v13 = vpop.f32.mrb[34].mxu1  ;;  %v1938_v36 = vpack.c.bf16 %v6948_v51, %v6935_v4  ;;  %v2080_v10 = vsub.f32 0.0, %v6948_v51  ;;  %v2175_v17 = vmul.f32 %v2079_v12, %v9071_v63 }
 0x526   : > { %v1836_v3 = vmul.f32 %v4613_v43, %v1828_v39  ;;  %v1783_v26 = vpop.f32.mrb[45].mxu0  ;;  %v6954_v60 = vpop.f32.mrb[35].mxu1  ;;  %v1890_v39 = vmul.f32 %v9072_v18, %v8998_v49  ;;  %v9073_v43 = vsub.f32 %v6858_v22, %v6861_v41  ;;  %v9077_v22 = vld [vmem:[#allocation19_spill] sm:$0xff] }
 0x527   : > { %v1834_v25 = vmul.f32 %v1826_v50, %v1783_v26  ;;  %v4614_v24 = vpop.f32.mrb[46].mxu0  ;;  %4639 = vmatprep.mubr.bf16.mxu1 %v1938_v36  ;;  %v1893_v36 = vmul.f32 %v9075_v29, %v8998_v49  ;;  %v1891_v41 = vmul.f32 %v9077_v22, %v8998_v49  ;;  %v9086_v29 = vld [vmem:[#allocation34_spill] sm:$0xff] }
 0x528   : > { %v1876_v2 = vmul.f32 %v1836_v3, %v8916_v19  ;;  %v1837_v21 = vmul.f32 %v4614_v24, %v1829_v28  ;;  %v1786_v52 = vpop.f32.mrb[47].mxu0  ;;  %4640 = vmatmul.mubr.bf16.gmra.mrb[40].mxu1 %v1939_v56  ;;  %v9074_v28 = vld [vmem:[#allocation33_spill] sm:$0xff]  ;;  %v9076_v24 = vsub.f32 %v6868_v15, %v6871_v37  ;;  %v7005_v37 = vadd.f32 %v2175_v17, %v6719_v55 }
 0x529   : > { %v1874_v6 = vmul.f32 %v1834_v25, %v8916_v19  ;;  %v1835_v14 = vmul.f32 %v1827_v16, %v1786_v52  ;;  %v2176_v57 = vmul.f32 %v2080_v10, %v9074_v28 }
 0x52a   : > { %v1884_v38 = vsub.f32 %v9070_v33, %v1876_v2  ;;  %v1877_v11 = vmul.f32 %v1837_v21, %v8916_v19  ;;  %v9078_v21 = vsub.f32 %v6877_v46, %v6882_v42  ;;  %9080 = vst [vmem:[#allocation93_spill] sm:$0xff] %v7005_v37  ;;  %v8667_v33 = vsub.f32 0.0, %v6929_v34 }
 0x52b   : > { %v1882_v50 = vsub.f32 %v9073_v43, %v1874_v6  ;;  %v1875_v3 = vmul.f32 %v1835_v14, %v8916_v19  ;;  %v6979_v26 = vpop.f32.mrb[36].mxu1  ;;  %v6999_v14 = vadd.f32 %v2176_v57, %v6727_v35  ;;  %v8666_v46 = vsub.f32 0.0, %v6941_v48 }
 0x52c   : > { %v1900_v25 = vadd.f32 %v1892_v40, %v1884_v38  ;;  %v1885_v16 = vsub.f32 %v9076_v24, %v1877_v11  ;;  %v6989_v56 = vpop.f32.mrb[37].mxu1 }
 0x52d   : > { %v1898_v2 = vadd.f32 %v1890_v39, %v1882_v50  ;;  %v1883_v52 = vsub.f32 %v9078_v21, %v1875_v3  ;;  %v6996_v6 = vpop.f32.mrb[38].mxu1  ;;  %9079 = vst [vmem:[#allocation89_spill] sm:$0xff] %v6999_v14  ;;  %v2207_v39 = vpack.c.bf16 %v6999_v14, %v7005_v37  ;;  %v9084_v3 = vld [vmem:[#allocation30_spill] sm:$0xff]  ;;  %v9108_v37 = vld [vmem:[#allocation71_spill] sm:$0xff] }
 0x52e   : > { %v1916_v1 = vmul.f32 %v1900_v25, %v9041_v53  ;;  %v1901_v40 = vadd.f32 %v1893_v36, %v1885_v16  ;;  %v7002_v15 = vpop.f32.mrb[39].mxu1  ;;  %v2177_v57 = vmul.f32 %v8667_v33, %v9084_v3  ;;  %v2178_v36 = vmul.f32 %v8666_v46, %v9086_v29 }
 0x52f   : > { %v1914_v38 = vmul.f32 %v1898_v2, %v9037_v62  ;;  %v1899_v11 = vadd.f32 %v1891_v41, %v1883_v52  ;;  %4663 = vmatprep.mubr.bf16.mxu0 %v2207_v39  ;;  %v9089_v2 = vld [vmem:[#allocation37_spill] sm:$0xff] }
 0x530   : > { %v7011_v42 = vadd.f32 %v1916_v1, %v6739_v59  ;;  %v1917_v18 = vmul.f32 %v1901_v40, %v9044_v5  ;;  %v7039_v16 = vadd.f32 %v2178_v36, %v6764_v8  ;;  %v9090_v1 = vld [vmem:[#allocation38_spill] sm:$0xff] }
 0x531   : > { %v7017_v43 = vadd.f32 %v1914_v38, %v6744_v23  ;;  %v1915_v17 = vmul.f32 %v1899_v11, %v9040_v27  ;;  %v9091_v38 = vld [vmem:[#allocation48_spill] sm:$0xff]  ;;  %v7069_v36 = vld [vmem:[%s8468_s3] sm:$0xff]  }
 0x532   : > { %9081 = vst [vmem:[#allocation96_spill] sm:$0xff] %v7011_v42  ;;  %v7021_v50 = vadd.f32 %v1917_v18, %v6751_v45  ;;  %v8664_v25 = vsub.f32 0.0, %v7011_v42  ;;  %v7036_v45 = vadd.f32 %v2177_v57, %v6756_v54  ;;  %9088 = vst [vmem:[#allocation41_spill] sm:$0xff] %v7039_v16 }
 0x533   : > { %9082 = vst [vmem:[#allocation83_spill] sm:$0xff] %v7017_v43  ;;  %v7027_v59 = vadd.f32 %v1915_v17, %v6761_v47  ;;  %v8665_v23 = vsub.f32 0.0, %v7017_v43  ;;  %v9094_v17 = vld [vmem:[#allocation47_spill] sm:$0xff]  ;;  %9095 = vst [vmem:[#allocation52_spill] sm:$0xff] %v7069_v36 }
 0x534   : > { %9083 = vst [vmem:[#allocation99_spill] sm:$0xff] %v7021_v50  ;;  %v8663_v24 = vsub.f32 0.0, %v7021_v50  ;;  %9087 = vst [vmem:[#allocation88_spill] sm:$0xff] %v7036_v45  ;;  %v1941_v41 = vpack.c.bf16 %v7021_v50, %v7011_v42  ;;  %v2208_v52 = vpack.c.bf16 %v7039_v16, %v7036_v45  ;;  %v2181_v57 = vmul.f32 %v8664_v25, %v9094_v17  ;;  %v9104_v25 = vld [vmem:[#allocation82_spill] sm:$0xff] }
 0x535   : > { %9085 = vst [vmem:[#allocation100_spill] sm:$0xff] %v7027_v59  ;;  %v1940_v47 = vpack.c.bf16 %v7027_v59, %v7017_v43  ;;  %v8662_v22 = vsub.f32 0.0, %v7027_v59  ;;  %v2179_v21 = vmul.f32 %v8665_v23, %v9089_v2  ;;  %v7144_v16 = vmul.f32 %v6809_v0, %v8998_v49 }
 0x536   : > { %v2182_v11 = vmul.f32 %v8663_v24, %v9091_v38  ;;  %4664 = vmatmul.mubr.bf16.vlgmr.msra.gmra.mrb[48].mxu0 %v2208_v52  ;;  %v7084_v52 = vadd.f32 %v2181_v57, %v6809_v0  ;;  %v9101_v57 = vld [vmem:[#allocation35_spill] sm:$0xff]  ;;  %v9103_v24 = vld [vmem:[#allocation81_spill] sm:$0xff] }
 0x537   : > { %4643 = vmatprep.mubr.bf16.mxu1 %v1940_v47  ;;  %v2180_v40 = vmul.f32 %v8662_v22, %v9090_v1  ;;  %v7058_v18 = vadd.f32 %v2179_v21, %v6798_v32  ;;  %4712 = vmatpush3.bf16.msra.mxu0 %v7069_v36  ;;  %v7080_v21 = vld [vmem:[%s8468_s3 + $0x8] sm:$0xff]   ;;  %v9100_v22 = vld [vmem:[#allocation21_spill] sm:$0xff] }
 0x538   : > { %4644 = vmatmul.mubr.bf16.gmra.mrb[44].mxu1 %v1941_v41  ;;  %v7075_v41 = vadd.f32 %v2182_v11, %v6817_v9  ;;  %9097 = vst [vmem:[#allocation50_spill] sm:$0xff] %v7080_v21  ;;  %4713 = vmatprep.subr.bf16.mxu0 %v7080_v21  ;;  %9098 = vst [vmem:[#allocation43_spill] sm:$0xff] %v7084_v52  ;;  %v7092_v11 = vld [vmem:[%s8468_s3 + $0x10] sm:$0xff]  }
 0x539   : > { %9092 = vst [vmem:[#allocation44_spill] sm:$0xff] %v7058_v18  ;;  %v7061_v39 = vadd.f32 %v2180_v40, %v6806_v31  ;;  %9099 = vst [vmem:[#allocation46_spill] sm:$0xff] %v7092_v11 }
 0x53a   : > { %9096 = vst [vmem:[#allocation42_spill] sm:$0xff] %v7075_v41  ;;  %v2210_v40 = vpack.c.bf16 %v7075_v41, %v7084_v52 }
 0x53b   : > { %9093 = vst [vmem:[#allocation39_spill] sm:$0xff] %v7061_v39  ;;  %v2209_v47 = vpack.c.bf16 %v7061_v39, %v7058_v18  ;;  %4714 = vmatpush3.bf16.msra.mxu0 %v7080_v21 }
 0x53c   : > { %4715 = vmatprep.subr.bf16.mxu0 %v7092_v11 }
 0x53d   : > { %4667 = vmatprep.mubr.bf16.mxu0 %v2209_v47  ;;  %v9102_v47 = vld [vmem:[#allocation26_spill] sm:$0xff] }
 0x53e   : > { %4668 = vmatmul.mubr.bf16.gmra.mrb[52].mxu0 %v2210_v40  ;;  %v9105_v40 = vld [vmem:[#allocation86_spill] sm:$0xff] }
 0x53f   : > { %4716 = vmatpush3.bf16.msra.mxu0 %v7092_v11  ;;  %v2041_v23 = vadd.f32 %v9105_v40, %v6943_v30 }
 0x540   : > { %4717 = vmatprep.subr.bf16.mxu0 %v9100_v22 }
 0x541   : > { %4969 = vtanh.f32 %v2041_v23  ;;  %v7124_v23 = vmul.f32 %v6719_v55, %v8998_v49 }
 0x543   : > { %4718 = vmatpush3.bf16.msra.mxu0 %v9100_v22  ;;  %v2039_v22 = vadd.f32 %v9105_v40, %v6950_v61  ;;  %v2046_v61 = vadd.f32 %v9105_v40, %v6996_v6  ;;  %v2143_v6 = vmul.f32 %v2079_v12, %v9012_v44  ;;  %v7152_v12 = vmul.f32 %v6817_v9, %v8998_v49  ;;  %v9107_v44 = vld [vmem:[#allocation70_spill] sm:$0xff] }
 0x544   : > { %4719 = vmatprep.subr.bf16.mxu0 %v9101_v57  ;;  %v2097_v41 = vmul.f32 %v6929_v34, %v9107_v44 }
 0x545   : > { %4971 = vtanh.f32 %v2039_v22  ;;  %v7168_v39 = vadd.f32 %v2143_v6, %v6719_v55  ;;  %v9110_v6 = vsub.f32 0.0, %v7017_v43 }
 0x547   : > { %4720 = vmatpush3.bf16.msra.mxu0 %v9101_v57  ;;  %v2042_v57 = vadd.f32 %v9105_v40, %v6952_v13  ;;  %v2147_v55 = vmul.f32 %v9110_v6, %v9037_v62 }
 0x548   : > { %4721 = vmatprep.subr.bf16.mxu0 %v9102_v47 }
 0x549   : > { %4973 = vtanh.f32 %v2042_v57  ;;  %v2144_v57 = vmul.f32 %v2080_v10, %v9014_v7  ;;  %v7156_v10 = vmul.f32 %v6806_v31, %v8998_v49 }
 0x54b   : > { %4722 = vmatpush3.bf16.msra.mxu0 %v9102_v47  ;;  %v2040_v47 = vadd.f32 %v9105_v40, %v6954_v60  ;;  %v4970_v30 = vpop.eup %4969  ;;  %v2129_v60 = vmul.f32 %v6756_v54, %v8998_v49  ;;  %v7171_v18 = vadd.f32 %v2144_v57, %v6727_v35 }
 0x54c   : > { %4723 = vmatprep.subr.bf16.mxu0 %v9103_v24 }
 0x54d   : > { %4975 = vtanh.f32 %v2040_v47  ;;  %v2057_v47 = vmul.f32 %v4970_v30, %v4970_v30 }
 0x54f   : > { %4724 = vmatpush3.bf16.msra.mxu0 %v9103_v24  ;;  %v2045_v24 = vadd.f32 %v9105_v40, %v6979_v26  ;;  %v4972_v46 = vpop.eup %4971  ;;  %v7128_v26 = vmul.f32 %v6764_v8, %v8998_v49  ;;  %v2065_v14 = vsub.f32 1.0, %v2057_v47 }
 0x550   : > { %4725 = vmatprep.subr.bf16.mxu0 %v9104_v25  ;;  %v2055_v33 = vmul.f32 %v4972_v46, %v4972_v46  ;;  %v2087_v36 = vmul.f32 %v4972_v46, %v9108_v37 }
 0x551   : > { %4977 = vtanh.f32 %v2045_v24  ;;  %v2044_v24 = vadd.f32 %v9105_v40, %v7002_v15  ;;  %v9106_v15 = vsub.f32 0.0, %v6929_v34 }
 0x552   : > { %v2063_v21 = vsub.f32 1.0, %v2055_v33 }
 0x553   : > { %4726 = vmatpush3.bf16.msra.mxu0 %v9104_v25  ;;  %v2043_v25 = vadd.f32 %v9105_v40, %v6989_v56  ;;  %v4974_v13 = vpop.eup %4973  ;;  %v7132_v56 = vmul.f32 %v6727_v35, %v8998_v49  ;;  %v7161_v7 = vmul.f32 %v9106_v15, %v9017_v20  ;;  %v9109_v15 = vsub.f32 0.0, %v6941_v48 }
 0x554   : > { %v2058_v45 = vmul.f32 %v4974_v13, %v4974_v13  ;;  %v2090_v47 = vmul.f32 %v4974_v13, %v9108_v37 }
 0x555   : > { %4979 = vtanh.f32 %v2043_v25  ;;  %v7148_v25 = vmul.f32 %v6798_v32, %v8998_v49  ;;  %v2089_v49 = vmul.f32 %v4970_v30, %v9108_v37  ;;  %v7177_v20 = vmul.f32 %v9109_v15, %v9020_v58 }
 0x556   : > { %4981 = vtanh.f32 %v2046_v61  ;;  %v2095_v61 = vmul.f32 %v6935_v4, %v9107_v44  ;;  %v2066_v35 = vsub.f32 1.0, %v2058_v45 }
 0x557   : > { %v4976_v22 = vpop.eup %4975  ;;  %4983 = vtanh.f32 %v2044_v24  ;;  %v9111_v24 = vsub.f32 0.0, %v7011_v42  ;;  %v2105_v9 = vsub.f32 %v2089_v49, %v2097_v41 }
 0x558   : > { %v2056_v52 = vmul.f32 %v4976_v22, %v4976_v22  ;;  %v2088_v46 = vmul.f32 %v4976_v22, %v9108_v37 }
 0x559   : > { %v7187_v38 = vmul.f32 %v9111_v24, %v9041_v53  ;;  %v2096_v24 = vmul.f32 %v6948_v51, %v9107_v44 }
 0x55a   : > { %v2064_v33 = vsub.f32 1.0, %v2056_v52 }
 0x55b   : > { %v4978_v30 = vpop.eup %4977  ;;  %v2104_v41 = vsub.f32 %v2088_v46, %v2096_v24 }
 0x55c   : > { %v2061_v49 = vmul.f32 %v4978_v30, %v4978_v30 }
 0x5fb   : > { %v4641_v11 = vpop.f32.mrb[40].mxu1 }
 0x5fc   : > { %v2073_v31 = vmul.f32 %v4641_v11, %v2065_v14  ;;  %v2008_v57 = vpop.f32.mrb[41].mxu1  ;;  %v2098_v14 = vmul.f32 %v6941_v48, %v9107_v44  ;;  %v2103_v11 = vsub.f32 %v2087_v36, %v2095_v61 }
 0x5fd   : > { %v2071_v15 = vmul.f32 %v2063_v21, %v2008_v57  ;;  %v4642_v58 = vpop.f32.mrb[42].mxu1  ;;  %v4980_v21 = vpop.eup %4979 }
 0x5fe   : > { %v2113_v1 = vmul.f32 %v2073_v31, %v8916_v19  ;;  %v2074_v6 = vmul.f32 %v4642_v58, %v2066_v35  ;;  %v2011_v45 = vpop.f32.mrb[43].mxu1  ;;  %v2106_v52 = vsub.f32 %v2090_v47, %v2098_v14  ;;  %v9112_v31 = vsub.f32 0.0, %v7021_v50  ;;  %v4982_v61 = vpop.eup %4981 }
 0x5ff   : > { %v2111_v13 = vmul.f32 %v2071_v15, %v8916_v19  ;;  %v2072_v62 = vmul.f32 %v2064_v33, %v2011_v45  ;;  %v9113_v15 = vsub.f32 0.0, %v7027_v59  ;;  %v2093_v47 = vmul.f32 %v4978_v30, %v9108_v37  ;;  %v4984_v24 = vpop.eup %4983 }
 0x600   : > { %v2121_v57 = vsub.f32 %v2105_v9, %v2113_v1  ;;  %v2114_v22 = vmul.f32 %v2074_v6, %v8916_v19  ;;  %v7200_v35 = vmul.f32 %v9112_v31, %v9044_v5  ;;  %v7212_v6 = vadd.f32 %v2147_v55, %v6798_v32 }
 0x601   : > { %v2119_v58 = vsub.f32 %v2103_v11, %v2111_v13  ;;  %v2112_v36 = vmul.f32 %v2072_v62, %v8916_v19  ;;  %v7206_v33 = vmul.f32 %v9113_v15, %v9040_v27  ;;  %v2059_v45 = vmul.f32 %v4980_v21, %v4980_v21  ;;  %v9121_v27 = vld [vmem:[#allocation68_spill] sm:$0xff] }
 0x602   : > { %v7208_v9 = vadd.f32 %v2129_v60, %v2121_v57  ;;  %v2122_v1 = vsub.f32 %v2106_v52, %v2114_v22  ;;  %v2069_v13 = vsub.f32 1.0, %v2061_v49  ;;  %v2101_v60 = vmul.f32 %v7011_v42, %v9107_v44 }
 0x603   : > { %v7215_v14 = vadd.f32 %v7124_v23, %v2119_v58  ;;  %v2120_v46 = vsub.f32 %v2104_v41, %v2112_v36  ;;  %v2091_v23 = vmul.f32 %v4980_v21, %v9108_v37  ;;  %v2062_v57 = vmul.f32 %v4982_v61, %v4982_v61 }
 0x604   : > { %9114 = vst [vmem:[#allocation40_spill] sm:$0xff] %v7208_v9  ;;  %v2185_v62 = vmul.f32 %v7208_v9, %v9084_v3  ;;  %v7220_v11 = vadd.f32 %v7128_v26, %v2122_v1  ;;  %v2109_v22 = vsub.f32 %v2093_v47, %v2101_v60  ;;  %v2099_v26 = vmul.f32 %v7017_v43, %v9107_v44 }
 0x605   : > { %9115 = vst [vmem:[#allocation45_spill] sm:$0xff] %v7215_v14  ;;  %v2183_v55 = vmul.f32 %v7215_v14, %v9071_v63  ;;  %v7227_v30 = vadd.f32 %v7132_v56, %v2120_v46  ;;  %v2067_v58 = vsub.f32 1.0, %v2059_v45  ;;  %v2094_v56 = vmul.f32 %v4982_v61, %v9108_v37 }
 0x606   : > { %9116 = vst [vmem:[#allocation72_spill] sm:$0xff] %v7220_v11  ;;  %v2186_v52 = vmul.f32 %v7220_v11, %v9086_v29  ;;  %v7235_v49 = vadd.f32 %v2185_v62, %v6929_v34  ;;  %v2102_v21 = vmul.f32 %v7021_v50, %v9107_v44  ;;  %v2060_v36 = vmul.f32 %v4984_v24, %v4984_v24 }
 0x607   : > { %9117 = vst [vmem:[#allocation73_spill] sm:$0xff] %v7227_v30  ;;  %v2184_v31 = vmul.f32 %v7227_v30, %v9074_v28  ;;  %v7241_v41 = vadd.f32 %v2183_v55, %v6935_v4  ;;  %v2107_v47 = vsub.f32 %v2091_v23, %v2099_v26  ;;  %v2070_v46 = vsub.f32 1.0, %v2062_v57  ;;  %v9122_v30 = vld [vmem:[#allocation69_spill] sm:$0xff] }
 0x608   : > { %9118 = vst [vmem:[#allocation18_spill] sm:$0xff] %v7235_v49  ;;  %v7246_v15 = vadd.f32 %v2186_v52, %v6941_v48  ;;  %v2354_v1 = vsub.f32 0.0, %v7235_v49  ;;  %v2161_v61 = vadd.f32 %v7161_v7, %v6756_v54  ;;  %v2092_v57 = vmul.f32 %v4984_v24, %v9108_v37 }
 0x609   : > { %9119 = vst [vmem:[#allocation94_spill] sm:$0xff] %v7241_v41  ;;  %v7250_v62 = vadd.f32 %v2184_v31, %v6948_v51  ;;  %v2352_v52 = vsub.f32 0.0, %v7241_v41  ;;  %v4665_v48 = vpop.f32.mrb[48].mxu0  ;;  %v2100_v26 = vmul.f32 %v7027_v59, %v9107_v44  ;;  %v2068_v53 = vsub.f32 1.0, %v2060_v36  ;;  %v9123_v36 = vld [vmem:[#allocation65_spill] sm:$0xff] }
 0x60a   : > { %9120 = vst [vmem:[#allocation102_spill] sm:$0xff] %v7246_v15  ;;  %v2212_v60 = vpack.c.bf16 %v7246_v15, %v7235_v49  ;;  %v2355_v55 = vsub.f32 0.0, %v7246_v15  ;;  %v2418_v4 = vmul.f32 %v2354_v1, %v9121_v27  ;;  %v2249_v31 = vpop.f32.mrb[49].mxu0  ;;  %v2110_v9 = vsub.f32 %v2094_v56, %v2102_v21 }
 0x60b   : > { %v4645_v45 = vpop.f32.mrb[44].mxu1  ;;  %v2211_v7 = vpack.c.bf16 %v7250_v62, %v7241_v41  ;;  %v2353_v15 = vsub.f32 0.0, %v7250_v62  ;;  %v2108_v56 = vsub.f32 %v2092_v57, %v2100_v26  ;;  %v2312_v21 = vadd.f32 %v9105_v40, %v2249_v31 }
 0x60c   : > { %v2077_v34 = vmul.f32 %v4645_v45, %v2069_v13  ;;  %v2024_v23 = vpop.f32.mrb[45].mxu1  ;;  %v2419_v11 = vmul.f32 %v2355_v55, %v9122_v30  ;;  %v7265_v27 = vadd.f32 %v2418_v4, %v2161_v61  ;;  %v4666_v13 = vpop.f32.mrb[50].mxu0  ;;  %v2416_v4 = vmul.f32 %v2352_v52, %v9123_v36 }
 0x60d   : > { %v2075_v51 = vmul.f32 %v2067_v58, %v2024_v23  ;;  %v4646_v5 = vpop.f32.mrb[46].mxu1  ;;  %4671 = vmatprep.mubr.bf16.mxu0 %v2211_v7  ;;  %v2252_v41 = vpop.f32.mrb[51].mxu0  ;;  %v2162_v58 = vadd.f32 %v7177_v20, %v6764_v8  ;;  %v2314_v61 = vadd.f32 %v9105_v40, %v4665_v48  ;;  %v9124_v7 = vld [vmem:[#allocation66_spill] sm:$0xff]  ;;  %v2451_v26 = vmul.f32 %v2355_v55, %v9086_v29  ;;  %v9128_v55 = vld [vmem:[#allocation95_spill] sm:$0xff] }
 0x60e   : > { %v2117_v14 = vmul.f32 %v2077_v34, %v8916_v19  ;;  %v2078_v45 = vmul.f32 %v4646_v5, %v2070_v46  ;;  %v2027_v24 = vpop.f32.mrb[47].mxu1  ;;  %4672 = vmatmul.mubr.bf16.gmra.mrb[56].mxu0 %v2212_v60  ;;  %v2313_v20 = vadd.f32 %v9105_v40, %v2252_v41 }
 0x60f   : > { %v2115_v37 = vmul.f32 %v2075_v51, %v8916_v19  ;;  %v2076_v49 = vmul.f32 %v2068_v53, %v2027_v24  ;;  %v7277_v51 = vadd.f32 %v2419_v11, %v2162_v58  ;;  %v2315_v53 = vadd.f32 %v9105_v40, %v4666_v13 }
 0x610   : > { %v2125_v34 = vsub.f32 %v2109_v22, %v2117_v14  ;;  %v2118_v5 = vmul.f32 %v2078_v45, %v8916_v19  ;;  %v2417_v24 = vmul.f32 %v2353_v15, %v9124_v7  ;;  %v7293_v11 = vadd.f32 %v7187_v38, %v6809_v0 }
 0x611   : > { %v2123_v46 = vsub.f32 %v2107_v47, %v2115_v37  ;;  %v2116_v23 = vmul.f32 %v2076_v49, %v8916_v19  ;;  %v7289_v37 = vadd.f32 %v2416_v4, %v7168_v39  ;;  %4985 = vtanh.f32 %v2314_v61  ;;  %v9127_v4 = vld [vmem:[#allocation48_spill] sm:$0xff] }
 0x612   : > { %v2126_v60 = vsub.f32 %v2110_v9, %v2118_v5  ;;  %v7283_v48 = vadd.f32 %v7144_v16, %v2125_v34  ;;  %v4669_v9 = vpop.f32.mrb[52].mxu0  ;;  %v7299_v41 = vadd.f32 %v2417_v24, %v7171_v18  ;;  %4987 = vtanh.f32 %v2312_v21 }
 0x613   : > { %v7286_v14 = vadd.f32 %v7148_v25, %v2123_v46  ;;  %v2124_v22 = vsub.f32 %v2108_v56, %v2116_v23  ;;  %v2318_v25 = vadd.f32 %v9105_v40, %v4669_v9  ;;  %v2265_v39 = vpop.f32.mrb[53].mxu0  ;;  %v2450_v47 = vmul.f32 %v2354_v1, %v9084_v3  ;;  %v9126_v1 = vld [vmem:[#allocation98_spill] sm:$0xff] }
 0x614   : > { %v7296_v49 = vadd.f32 %v7152_v12, %v2126_v60  ;;  %4989 = vtanh.f32 %v2315_v53  ;;  %v2316_v12 = vadd.f32 %v9105_v40, %v2265_v39  ;;  %v4670_v57 = vpop.f32.mrb[54].mxu0  ;;  %v2189_v18 = vmul.f32 %v7283_v48, %v9094_v17  ;;  %v9131_v53 = vld [vmem:[#allocation24_spill] sm:$0xff] }
 0x615   : > { %v7302_v16 = vadd.f32 %v7156_v10, %v2124_v22  ;;  %v2187_v38 = vmul.f32 %v7286_v14, %v9089_v2  ;;  %4991 = vtanh.f32 %v2313_v20  ;;  %v9125_v10 = vld [vmem:[#allocation38_spill] sm:$0xff]  ;;  %v2268_v13 = vpop.f32.mrb[55].mxu0  ;;  %v2448_v45 = vmul.f32 %v2352_v52, %v9071_v63  ;;  %v9133_v20 = vld [vmem:[#allocation23_spill] sm:$0xff] }
 0x616   : > { %v2166_v58 = vadd.f32 %v7200_v35, %v9126_v1  ;;  %v2190_v61 = vmul.f32 %v7296_v49, %v9127_v4  ;;  %4993 = vtanh.f32 %v2318_v25  ;;  %v2319_v34 = vadd.f32 %v9105_v40, %v4670_v57  ;;  %v9135_v57 = vld [vmem:[#allocation84_spill] sm:$0xff] }
 0x617   : > { %v2188_v31 = vmul.f32 %v7302_v16, %v9125_v10  ;;  %v2164_v5 = vadd.f32 %v7206_v33, %v9128_v55  ;;  %4995 = vtanh.f32 %v2316_v12  ;;  %v2317_v56 = vadd.f32 %v9105_v40, %v2268_v13 }
 0x618   : > { %v2449_v21 = vmul.f32 %v2353_v15, %v9074_v28  ;;  %v7325_v46 = vadd.f32 %v2450_v47, %v6756_v54  ;;  %v7328_v52 = vadd.f32 %v2451_v26, %v6764_v8  ;;  %v7331_v35 = vadd.f32 %v2187_v38, %v7017_v43  ;;  %v9173_v8 = vld [vmem:[#allocation61_spill] sm:$0xff] }
 0x619   : > { %v7334_v23 = vadd.f32 %v2188_v31, %v7027_v59  ;;  %4997 = vtanh.f32 %v2319_v34  ;;  %v7337_v33 = vadd.f32 %v2448_v45, %v9131_v53  ;;  %v2205_v15 = vadd.f32 %v2189_v18, %v7011_v42  ;;  %v9136_v45 = vld [vmem:[#allocation85_spill] sm:$0xff]  ;;  %v9175_v53 = vld [vmem:[#allocation88_spill] sm:$0xff] }
 0x61a   : > { %9129 = vst [vmem:[#allocation97_spill] sm:$0xff] %v7325_v46  ;;  %9130 = vst [vmem:[#allocation101_spill] sm:$0xff] %v7328_v52  ;;  %v7340_v40 = vadd.f32 %v2449_v21, %v9133_v20  ;;  %v2481_v60 = vpack.c.bf16 %v7328_v52, %v7325_v46  ;;  %v7348_v22 = vadd.f32 %v2190_v61, %v7021_v50  ;;  %v2356_v9 = vsub.f32 0.0, %v7331_v35  ;;  %v9179_v54 = vld [vmem:[#allocation73_spill] sm:$0xff] }
 0x61b   : > { %9132 = vst [vmem:[#allocation80_spill] sm:$0xff] %v7337_v33  ;;  %v2213_v24 = vpack.c.bf16 %v7334_v23, %v7331_v35  ;;  %4999 = vtanh.f32 %v2317_v56  ;;  %v2357_v39 = vsub.f32 0.0, %v7334_v23  ;;  %v2358_v47 = vsub.f32 0.0, %v2205_v15  ;;  %v7354_v38 = vpop.eup %4985  ;;  %v9137_v56 = vld [vmem:[#allocation90_spill] sm:$0xff] }
 0x61c   : > { %9134 = vst [vmem:[#allocation49_spill] sm:$0xff] %v7340_v40  ;;  %v2480_v25 = vpack.c.bf16 %v7340_v40, %v7337_v33  ;;  %v2214_v12 = vpack.c.bf16 %v7348_v22, %v2205_v15  ;;  %v2420_v26 = vmul.f32 %v2356_v9, %v9135_v57  ;;  %v2452_v18 = vmul.f32 %v2356_v9, %v9089_v2  ;;  %v7360_v13 = vpop.eup %4987  ;;  %v9140_v40 = vld [vmem:[#allocation91_spill] sm:$0xff]  ;;  %v9172_v57 = vld [vmem:[#allocation40_spill] sm:$0xff] }
 0x61d   : > { %4675 = vmatprep.mubr.bf16.mxu0 %v2213_v24  ;;  %v2359_v31 = vsub.f32 0.0, %v7348_v22  ;;  %v2421_v61 = vmul.f32 %v2357_v39, %v9136_v45  ;;  %v2453_v34 = vmul.f32 %v2357_v39, %v9125_v10  ;;  %v2422_v21 = vmul.f32 %v2358_v47, %v9137_v56  ;;  %v9163_v10 = vld [vmem:[#allocation44_spill] sm:$0xff]  ;;  %v9171_v2 = vld [vmem:[#allocation63_spill] sm:$0xff]  ;;  %v9174_v56 = vld [vmem:[#allocation45_spill] sm:$0xff] }
 0x61e   : > { %4695 = vmatprep.mubr.bf16.mxu1 %v2480_v25  ;;  %v2454_v52 = vmul.f32 %v2358_v47, %v9094_v17  ;;  %v7366_v24 = vpop.eup %4989  ;;  %4676 = vmatmul.mubr.bf16.gmra.mrb[60].mxu0 %v2214_v12  ;;  %v7369_v46 = vadd.f32 %v2420_v26, %v7212_v6  ;;  %v7372_v9 = vadd.f32 %v2452_v18, %v6798_v32  ;;  %v9144_v12 = vld [vmem:[#allocation52_spill] sm:$0xff]  ;;  %v9146_v18 = vld [vmem:[#allocation18_spill] sm:$0xff] }
 0x61f   : > { %4696 = vmatmul.mubr.bf16.vlgmr.msra.gmra.mrb[48].mxu1 %v2481_v60  ;;  %v2423_v25 = vmul.f32 %v2359_v31, %v9140_v40  ;;  %v7375_v33 = vpop.eup %4991  ;;  %v7377_v45 = vadd.f32 %v2421_v61, %v2164_v5  ;;  %v7380_v39 = vadd.f32 %v2453_v34, %v9128_v55  ;;  %v7383_v47 = vadd.f32 %v2422_v21, %v7293_v11  ;;  %v9147_v5 = vld [vmem:[#allocation50_spill] sm:$0xff]  ;;  %v9150_v21 = vld [vmem:[#allocation71_spill] sm:$0xff] }
 0x620   : > { %9138 = vst [vmem:[#allocation51_spill] sm:$0xff] %v7369_v46  ;;  %9139 = vst [vmem:[#allocation36_spill] sm:$0xff] %v7372_v9  ;;  %v2455_v60 = vmul.f32 %v2359_v31, %v9127_v4  ;;  %4751 = vmatpush3.bf16.msra.mxu1 %v9144_v12  ;;  %v7387_v6 = vpop.eup %4993  ;;  %v7393_v32 = vmul.f32 %v9146_v18, %v9107_v44  ;;  %v7401_v34 = vadd.f32 %v2454_v52, %v6809_v0  ;;  %v9151_v12 = vld [vmem:[#allocation94_spill] sm:$0xff] }
 0x621   : > { %9141 = vst [vmem:[#allocation20_spill] sm:$0xff] %v7377_v45  ;;  %9142 = vst [vmem:[#allocation29_spill] sm:$0xff] %v7380_v39  ;;  %v7389_v26 = vadd.f32 %v2423_v25, %v2166_v58  ;;  %4744 = vmatprep.subr.bf16.mxu1 %v9147_v5  ;;  %v7396_v61 = vpop.eup %4995  ;;  %v2482_v11 = vpack.c.bf16 %v7380_v39, %v7372_v9  ;;  %v7408_v58 = vmul.f32 %v7354_v38, %v9150_v21  ;;  %v9153_v39 = vld [vmem:[#allocation46_spill] sm:$0xff] }
 0x622   : > { %9143 = vst [vmem:[#allocation76_spill] sm:$0xff] %v7383_v47  ;;  %9148 = vst [vmem:[#allocation22_spill] sm:$0xff] %v7401_v34  ;;  %v7404_v31 = vadd.f32 %v2455_v60, %v9126_v1  ;;  %v7412_v25 = vmul.f32 %v7360_v13, %v9150_v21  ;;  %v7416_v18 = vmul.f32 %v9151_v12, %v9107_v44  ;;  %v9152_v1 = vld [vmem:[#allocation102_spill] sm:$0xff]  ;;  %v5045_v47 = vld [vmem:[%s8468_s3 + $0x18] sm:$0xff]  }
 0x623   : > { %9145 = vst [vmem:[#allocation33_spill] sm:$0xff] %v7389_v26  ;;  %v7418_v26 = vpop.eup %4997  ;;  %4699 = vmatprep.mubr.bf16.mxu1 %v2482_v11  ;;  %v7428_v9 = vmul.f32 %v7366_v24, %v9150_v21  ;;  %v7432_v12 = vmul.f32 %v9152_v1, %v9107_v44  ;;  %v7443_v60 = vmul.f32 %v7250_v62, %v9107_v44  ;;  %v5046_v45 = vld [vmem:[%s8468_s3 + $0x20] sm:$0xff]  }
 0x624   : > { %9149 = vst [vmem:[#allocation19_spill] sm:$0xff] %v7404_v31  ;;  %v2483_v52 = vpack.c.bf16 %v7404_v31, %v7401_v34  ;;  %4752 = vmatpush3.bf16.msra.mxu1 %v9147_v5  ;;  %v7439_v31 = vmul.f32 %v7375_v33, %v9150_v21  ;;  %v7450_v1 = vmul.f32 %v7387_v6, %v9150_v21 }
 0x625   : > { %v7435_v11 = vpop.eup %4999  ;;  %4745 = vmatprep.subr.bf16.mxu1 %v9153_v39  ;;  %v7453_v5 = vmul.f32 %v2205_v15, %v9107_v44  ;;  %v7459_v62 = vmul.f32 %v7396_v61, %v9150_v21  ;;  %v7465_v34 = vmul.f32 %v7331_v35, %v9107_v44  ;;  %v7470_v15 = vmul.f32 %v7418_v26, %v9150_v21 }
 0x626   : > { %v7474_v0 = vmul.f32 %v7348_v22, %v9107_v44  ;;  %v7483_v35 = vmul.f32 %v7435_v11, %v9150_v21  ;;  %v2328_v55 = vmul.f32 %v7360_v13, %v7360_v13  ;;  %v9160_v22 = vld [vmem:[#allocation67_spill] sm:$0xff]  ;;  %v2151_v20 = vmul.f32 %v9174_v56, %v9173_v8 }
 0x627   : > { %4700 = vmatmul.mubr.bf16.gmra.mrb[52].mxu1 %v2483_v52  ;;  %9154 = vst [vmem:[#allocation30_spill] sm:$0xff] %v7459_v62  ;;  %9155 = vst [vmem:[#allocation34_spill] sm:$0xff] %v7465_v34  ;;  %v5047_v52 = vld [vmem:[%s8468_s3 + $0x28] sm:$0xff]   ;;  %v7517_v4 = vmul.f32 %v9163_v10, %v9160_v22  ;;  %v2153_v10 = vmul.f32 %v9172_v57, %v9171_v2  ;;  %v9181_v2 = vld [vmem:[#allocation74_spill] sm:$0xff] }
 0x628   : > { %4753 = vmatpush3.bf16.msra.mxu1 %v9153_v39  ;;  %9156 = vst [vmem:[#allocation21_spill] sm:$0xff] %v7470_v15  ;;  %9157 = vst [vmem:[#allocation35_spill] sm:$0xff] %v7474_v0  ;;  %v7487_v39 = vmul.f32 %v7334_v23, %v9107_v44  ;;  %v5048_v23 = vld [vmem:[%s8468_s3 + $0x30] sm:$0xff]   ;;  %v9161_v44 = vld [vmem:[#allocation93_spill] sm:$0xff]  ;;  %v2155_v56 = vmul.f32 %v7286_v14, %v9181_v2 }
 0x629   : > { %4746 = vmatprep.subr.bf16.mxu1 %v5045_v47  ;;  %9158 = vst [vmem:[#allocation26_spill] sm:$0xff] %v7483_v35  ;;  %v2400_v46 = vmul.f32 %v9161_v44, %v9160_v22  ;;  %9164 = vst [vmem:[#allocation82_spill] sm:$0xff] %v7517_v4  ;;  %v9167_v13 = vld [vmem:[#allocation43_spill] sm:$0xff]  ;;  %v9169_v44 = vld [vmem:[#allocation42_spill] sm:$0xff] }
 0x62a   : > { %9159 = vst [vmem:[#allocation81_spill] sm:$0xff] %v7487_v39  ;;  %v7531_v17 = vmul.f32 %v9169_v44, %v9160_v22  ;;  %v9176_v39 = vld [vmem:[#allocation64_spill] sm:$0xff]  ;;  %v9178_v4 = vld [vmem:[#allocation62_spill] sm:$0xff]  ;;  %v9180_v15 = vld [vmem:[#allocation77_spill] sm:$0xff] }
 0x62b   : > { %v9177_v35 = vld [vmem:[#allocation72_spill] sm:$0xff]  ;;  %v2152_v0 = vmul.f32 %v9179_v54, %v9178_v4  ;;  %v2157_v57 = vmul.f32 %v7283_v48, %v9180_v15  ;;  %v9183_v54 = vld [vmem:[#allocation41_spill] sm:$0xff] }
 0x62c   : > { %4754 = vmatpush3.bf16.msra.mxu1 %v5045_v47  ;;  %v5049_v47 = vld [vmem:[%s8468_s3 + $0x38] sm:$0xff]   ;;  %9170 = vst [vmem:[#allocation65_spill] sm:$0xff] %v7531_v17  ;;  %v9185_v62 = vld [vmem:[#allocation32_spill] sm:$0xff] }
 0x62d   : > { %4747 = vmatprep.subr.bf16.mxu1 %v5046_v45  ;;  %v2167_v48 = vadd.f32 %v2151_v20, %v9185_v62 }
 0x630   : > { %4755 = vmatpush3.bf16.msra.mxu1 %v5046_v45  ;;  %v2330_v45 = vmul.f32 %v7354_v38, %v7354_v38  ;;  %v9165_v38 = vld [vmem:[#allocation39_spill] sm:$0xff] }
 0x631   : > { %4748 = vmatprep.subr.bf16.mxu1 %v5047_v52  ;;  %v7523_v40 = vmul.f32 %v9165_v38, %v9160_v22  ;;  %v2402_v38 = vmul.f32 %v9175_v53, %v9160_v22  ;;  %v9182_v53 = vld [vmem:[#allocation78_spill] sm:$0xff] }
 0x633   : > { %9166 = vst [vmem:[#allocation86_spill] sm:$0xff] %v7523_v40  ;;  %v2336_v40 = vsub.f32 1.0, %v2328_v55  ;;  %v2158_v55 = vmul.f32 %v7296_v49, %v9182_v53  ;;  %v9188_v49 = vsub.f32 %v7408_v58, %v7393_v32 }
 0x634   : > { %4756 = vmatpush3.bf16.msra.mxu1 %v5047_v52  ;;  %v2331_v52 = vmul.f32 %v7366_v24, %v7366_v24  ;;  %v7527_v24 = vmul.f32 %v9167_v13, %v9160_v22  ;;  %v2154_v13 = vmul.f32 %v9177_v35, %v9176_v39 }
 0x635   : > { %4749 = vmatprep.subr.bf16.mxu1 %v5048_v23 }
 0x636   : > { %9168 = vst [vmem:[#allocation69_spill] sm:$0xff] %v7527_v24 }
 0x638   : > { %4757 = vmatpush3.bf16.msra.mxu1 %v5048_v23  ;;  %v9162_v23 = vld [vmem:[#allocation89_spill] sm:$0xff] }
 0x639   : > { %4750 = vmatprep.subr.bf16.mxu1 %v5049_v47  ;;  %v2401_v21 = vmul.f32 %v9162_v23, %v9160_v22  ;;  %v2338_v23 = vsub.f32 1.0, %v2330_v45  ;;  %v2339_v45 = vsub.f32 1.0, %v2331_v52  ;;  %v9184_v52 = vld [vmem:[#allocation79_spill] sm:$0xff] }
 0x63a   : > { %v2169_v4 = vadd.f32 %v2153_v10, %v9184_v52  ;;  %v7565_v10 = vadd.f32 %v2155_v56, %v7017_v43 }
 0x63c   : > { %4758 = vmatpush3.bf16.msra.mxu1 %v5049_v47  ;;  %v2329_v47 = vmul.f32 %v7375_v33, %v7375_v33 }
 0x63e   : > { %v2337_v34 = vsub.f32 1.0, %v2329_v47  ;;  %v9187_v47 = vld [vmem:[#allocation87_spill] sm:$0xff] }
 0x63f   : > { %v2168_v2 = vadd.f32 %v2152_v0, %v9187_v47  ;;  %v7572_v0 = vadd.f32 %v2158_v55, %v7021_v50  ;;  %v9193_v55 = vld [vmem:[#allocation68_spill] sm:$0xff] }
 0x6e1   : > { %v4673_v33 = vpop.f32.mrb[56].mxu0 }
 0x6e2   : > { %v2346_v44 = vmul.f32 %v4673_v33, %v2338_v23  ;;  %v2281_v17 = vpop.f32.mrb[57].mxu0  ;;  %v2403_v23 = vmul.f32 %v9183_v54, %v9160_v22 }
 0x6e3   : > { %v2344_v8 = vmul.f32 %v2336_v40, %v2281_v17  ;;  %v4674_v24 = vpop.f32.mrb[58].mxu0  ;;  %v9186_v17 = vld [vmem:[#allocation28_spill] sm:$0xff] }
 0x6e4   : > { %v2386_v35 = vmul.f32 %v2346_v44, %v8916_v19  ;;  %v2347_v39 = vmul.f32 %v4674_v24, %v2339_v45  ;;  %v2284_v33 = vpop.f32.mrb[59].mxu0  ;;  %v2170_v40 = vadd.f32 %v2154_v13, %v9186_v17  ;;  %v7562_v45 = vadd.f32 %v2157_v57, %v7011_v42  ;;  %v9190_v13 = vld [vmem:[#allocation75_spill] sm:$0xff] }
 0x6e5   : > { %v2384_v15 = vmul.f32 %v2344_v8, %v8916_v19  ;;  %v2345_v14 = vmul.f32 %v2337_v34, %v2284_v33  ;;  %v9189_v8 = vsub.f32 %v7412_v25, %v7416_v18  ;;  %v7576_v32 = vmul.f32 %v7302_v16, %v9190_v13 }
 0x6e6   : > { %v2394_v44 = vsub.f32 %v9188_v49, %v2386_v35  ;;  %v2387_v24 = vmul.f32 %v2347_v39, %v8916_v19  ;;  %v9191_v39 = vsub.f32 %v7428_v9, %v7432_v12  ;;  %v9192_v35 = vsub.f32 %v7439_v31, %v7443_v60 }
 0x6e7   : > { %v2392_v20 = vsub.f32 %v9189_v8, %v2384_v15  ;;  %v2385_v34 = vmul.f32 %v2345_v14, %v8916_v19  ;;  %v2334_v18 = vmul.f32 %v7387_v6, %v7387_v6  ;;  %v2332_v15 = vmul.f32 %v7396_v61, %v7396_v61 }
 0x6e8   : > { %v2410_v58 = vadd.f32 %v2402_v38, %v2394_v44  ;;  %v2395_v57 = vsub.f32 %v9191_v39, %v2387_v24  ;;  %v2335_v9 = vmul.f32 %v7418_v26, %v7418_v26  ;;  %v2333_v60 = vmul.f32 %v7435_v11, %v7435_v11 }
 0x6e9   : > { %v2408_v56 = vadd.f32 %v2400_v46, %v2392_v20  ;;  %v2393_v25 = vsub.f32 %v9192_v35, %v2385_v34  ;;  %v2340_v44 = vsub.f32 1.0, %v2332_v15 }
 0x6ea   : > { %v2426_v54 = vmul.f32 %v2410_v58, %v9193_v55  ;;  %v2458_v16 = vmul.f32 %v2410_v58, %v9084_v3  ;;  %v2411_v38 = vadd.f32 %v2403_v23, %v2395_v57  ;;  %v2341_v34 = vsub.f32 1.0, %v2333_v60 }
 0x6eb   : > { %v2424_v46 = vmul.f32 %v2408_v56, %v9123_v36  ;;  %v2456_v12 = vmul.f32 %v2408_v56, %v9071_v63  ;;  %v2409_v31 = vadd.f32 %v2401_v21, %v2393_v25 }
 0x6ec   : > { %v7596_v6 = vadd.f32 %v2426_v54, %v2169_v4  ;;  %v2427_v61 = vmul.f32 %v2411_v38, %v9122_v30  ;;  %v2459_v33 = vmul.f32 %v2411_v38, %v9086_v29  ;;  %v7601_v3 = vadd.f32 %v2458_v16, %v9184_v52  ;;  %v9195_v54 = vld [vmem:[#allocation53_spill] sm:$0xff]  ;;  %v7639_v38 = vld [vmem:[%s8469_s4] ss:$0 sm:$0xff] }
 0x6ed   : > { %v7603_v23 = vadd.f32 %v2424_v46, %v2167_v48  ;;  %v2425_v26 = vmul.f32 %v2409_v31, %v9124_v7  ;;  %v2457_v14 = vmul.f32 %v2409_v31, %v9074_v28  ;;  %v7608_v63 = vadd.f32 %v2456_v12, %v9185_v62 }
 0x6ee   : > { %v7610_v21 = vadd.f32 %v2427_v61, %v2170_v40  ;;  %v2342_v4 = vsub.f32 1.0, %v2334_v18  ;;  %v7613_v11 = vadd.f32 %v2459_v33, %v9186_v17  ;;  %v2627_v29 = vsub.f32 0.0, %v7601_v3  ;;  %v9194_v18 = vld [vmem:[#allocation55_spill] sm:$0xff] }
 0x6ef   : > { %v7616_v49 = vadd.f32 %v2425_v26, %v2168_v2  ;;  %v7619_v48 = vadd.f32 %v2457_v14, %v9187_v47  ;;  %v2625_v24 = vsub.f32 0.0, %v7608_v63  ;;  %v2343_v28 = vsub.f32 1.0, %v2335_v9 }
 0x6f0   : > { %v2485_v8 = vpack.c.bf16 %v7613_v11, %v7601_v3  ;;  %v2628_v40 = vsub.f32 0.0, %v7613_v11  ;;  %v2691_v20 = vmul.f32 %v2627_v29, %v9193_v55  ;;  %v2723_v15 = vmul.f32 %v2627_v29, %v9194_v18 }
 0x6f1   : > { %v2484_v58 = vpack.c.bf16 %v7619_v48, %v7608_v63  ;;  %v2626_v2 = vsub.f32 0.0, %v7619_v48  ;;  %v2689_v39 = vmul.f32 %v2625_v24, %v9123_v36  ;;  %v4677_v56 = vpop.f32.mrb[60].mxu0  ;;  %v2721_v16 = vmul.f32 %v2625_v24, %v9195_v54  ;;  %v9196_v24 = vld [vmem:[#allocation56_spill] sm:$0xff] }
 0x6f2   : > { %v4697_v57 = vpop.f32.mrb[48].mxu1  ;;  %v2692_v35 = vmul.f32 %v2628_v40, %v9122_v30  ;;  %v7632_v25 = vadd.f32 %v2691_v20, %v7265_v27  ;;  %v2350_v12 = vmul.f32 %v4677_v56, %v2342_v4  ;;  %v2297_v31 = vpop.f32.mrb[61].mxu0  ;;  %v2724_v20 = vmul.f32 %v2628_v40, %v9196_v24 }
 0x6f3   : > { %v2587_v9 = vadd.f32 %v7639_v38, %v4697_v57  ;;  %v2522_v46 = vpop.f32.mrb[49].mxu1  ;;  %4703 = vmatprep.mubr.bf16.mxu1 %v2484_v58  ;;  %v2690_v60 = vmul.f32 %v2626_v2, %v9124_v7  ;;  %v7644_v27 = vadd.f32 %v2689_v39, %v7289_v37  ;;  %v2348_v26 = vmul.f32 %v2340_v44, %v2297_v31  ;;  %v4678_v14 = vpop.f32.mrb[62].mxu0  ;;  %v9197_v37 = vld [vmem:[#allocation54_spill] sm:$0xff] }
 0x6f4   : > { %v2585_v61 = vadd.f32 %v7639_v38, %v2522_v46  ;;  %v4698_v33 = vpop.f32.mrb[50].mxu1  ;;  %4704 = vmatmul.mubr.bf16.gmra.mrb[56].mxu1 %v2485_v8  ;;  %v7648_v29 = vadd.f32 %v2692_v35, %v7277_v51  ;;  %v2390_v4 = vmul.f32 %v2350_v12, %v8916_v19  ;;  %v2351_v56 = vmul.f32 %v4678_v14, %v2343_v28  ;;  %v2300_v53 = vpop.f32.mrb[63].mxu0 }
 0x6f5   : > { %v2588_v58 = vadd.f32 %v7639_v38, %v4698_v33  ;;  %v2525_v57 = vpop.f32.mrb[51].mxu1  ;;  %v2722_v39 = vmul.f32 %v2626_v2, %v9197_v37  ;;  %5001 = vtanh.f32 %v2587_v9  ;;  %v2388_v46 = vmul.f32 %v2348_v26, %v8916_v19  ;;  %v9200_v2 = vld [vmem:[#allocation30_spill] sm:$0xff] }
 0x6f6   : > { %v2586_v44 = vadd.f32 %v7639_v38, %v2525_v57  ;;  %v2349_v8 = vmul.f32 %v2341_v34, %v2300_v53  ;;  %5003 = vtanh.f32 %v2585_v61  ;;  %v9198_v51 = vsub.f32 %v7450_v1, %v7453_v5  ;;  %v9201_v9 = vld [vmem:[#allocation34_spill] sm:$0xff]  ;;  %v9203_v34 = vld [vmem:[#allocation69_spill] sm:$0xff]  ;;  %v9205_v5 = vld [vmem:[#allocation35_spill] sm:$0xff] }
 0x6f7   : > { %v2391_v35 = vmul.f32 %v2351_v56, %v8916_v19  ;;  %v7661_v12 = vadd.f32 %v2690_v60, %v7299_v41  ;;  %v2172_v28 = vadd.f32 %v7576_v32, %v7027_v59  ;;  %5005 = vtanh.f32 %v2588_v58  ;;  %v9204_v1 = vld [vmem:[#allocation21_spill] sm:$0xff]  ;;  %v9209_v60 = vld [vmem:[#allocation82_spill] sm:$0xff] }
 0x6f8   : > { %v2398_v40 = vsub.f32 %v9198_v51, %v2390_v4  ;;  %v9202_v31 = vsub.f32 %v9200_v2, %v9201_v9  ;;  %v2389_v53 = vmul.f32 %v2349_v8, %v8916_v19  ;;  %5007 = vtanh.f32 %v2586_v44  ;;  %v9207_v4 = vld [vmem:[#allocation25_spill] sm:$0xff]  ;;  %v9210_v32 = vld [vmem:[#allocation26_spill] sm:$0xff]  ;;  %v9215_v8 = vld [vmem:[#allocation23_spill] sm:$0xff] }
 0x6f9   : > { %9199 = vst [vmem:[#allocation66_spill] sm:$0xff] %v7661_v12  ;;  %v9206_v26 = vsub.f32 %v9204_v1, %v9205_v5  ;;  %v7674_v41 = vadd.f32 %v2723_v15, %v9207_v4  ;;  %v9211_v58 = vld [vmem:[#allocation81_spill] sm:$0xff]  ;;  %v9217_v44 = vld [vmem:[#allocation90_spill] sm:$0xff]  ;;  %v9219_v5 = vld [vmem:[#allocation92_spill] sm:$0xff] }
 0x6fa   : > { %v2396_v33 = vsub.f32 %v9202_v31, %v2388_v46  ;;  %v2414_v61 = vadd.f32 %v9203_v34, %v2398_v40  ;;  %v9212_v56 = vsub.f32 %v9210_v32, %v9211_v58  ;;  %v4701_v2 = vpop.f32.mrb[52].mxu1  ;;  %v9213_v46 = vld [vmem:[#allocation24_spill] sm:$0xff]  ;;  %v7684_v40 = vadd.f32 %v2722_v39, %v9215_v8  ;;  %v9218_v34 = vld [vmem:[#allocation65_spill] sm:$0xff]  ;;  %v9223_v32 = vld [vmem:[#allocation86_spill] sm:$0xff] }
 0x6fb   : > { %v2399_v14 = vsub.f32 %v9206_v26, %v2391_v35  ;;  %9208 = vst [vmem:[#allocation52_spill] sm:$0xff] %v7674_v41  ;;  %v7681_v9 = vadd.f32 %v2721_v16, %v9213_v46  ;;  %v2591_v15 = vadd.f32 %v7639_v38, %v4701_v2  ;;  %v2538_v1 = vpop.f32.mrb[53].mxu1  ;;  %v9221_v26 = vld [vmem:[#allocation84_spill] sm:$0xff]  ;;  %v9224_v46 = vld [vmem:[#allocation47_spill] sm:$0xff]  ;;  %v9227_v12 = vld [vmem:[#allocation85_spill] sm:$0xff] }
 0x6fc   : > { %v2412_v57 = vadd.f32 %v9209_v60, %v2396_v33  ;;  %v2397_v51 = vsub.f32 %v9212_v56, %v2389_v53  ;;  %9216 = vst [vmem:[#allocation50_spill] sm:$0xff] %v7684_v40  ;;  %v2430_v31 = vmul.f32 %v2414_v61, %v9217_v44  ;;  %v7690_v33 = vadd.f32 %v2724_v20, %v9219_v5  ;;  %v9222_v53 = vld [vmem:[#allocation37_spill] sm:$0xff]  ;;  %v4702_v39 = vpop.f32.mrb[54].mxu1  ;;  %v9225_v8 = vld [vmem:[#allocation91_spill] sm:$0xff] }
 0x6fd   : > { %9214 = vst [vmem:[#allocation18_spill] sm:$0xff] %v7681_v9  ;;  %v2415_v35 = vadd.f32 %v9218_v34, %v2399_v14  ;;  %v2589_v58 = vadd.f32 %v7639_v38, %v2538_v1  ;;  %v2462_v14 = vmul.f32 %v2414_v61, %v9224_v46  ;;  %v9226_v34 = vld [vmem:[#allocation48_spill] sm:$0xff]  ;;  %v2541_v20 = vpop.f32.mrb[55].mxu1  ;;  %5009 = vtanh.f32 %v2591_v15 }
 0x6fe   : > { %9220 = vst [vmem:[#allocation94_spill] sm:$0xff] %v7690_v33  ;;  %v2428_v4 = vmul.f32 %v2412_v57, %v9221_v26  ;;  %v2460_v60 = vmul.f32 %v2412_v57, %v9222_v53  ;;  %v2413_v16 = vadd.f32 %v9223_v32, %v2397_v51  ;;  %v7697_v56 = vadd.f32 %v2430_v31, %v7562_v45  ;;  %v9228_v53 = vld [vmem:[#allocation38_spill] sm:$0xff] }
 0x6ff   : > { %v2431_v2 = vmul.f32 %v2415_v35, %v9225_v8  ;;  %v2463_v13 = vmul.f32 %v2415_v35, %v9226_v34  ;;  %v2592_v45 = vadd.f32 %v7639_v38, %v4702_v39  ;;  %v2590_v61 = vadd.f32 %v7639_v38, %v2541_v20  ;;  %v7714_v35 = vpop.eup %5001 }
 0x700   : > { %v7703_v5 = vadd.f32 %v2428_v4, %v7565_v10  ;;  %v2429_v57 = vmul.f32 %v2413_v16, %v9227_v12  ;;  %v2461_v51 = vmul.f32 %v2413_v16, %v9228_v53  ;;  %v2753_v31 = vpack.c.bf16 %v7684_v40, %v7681_v9  ;;  %v7721_v4 = vpop.eup %5003  ;;  %v9231_v53 = vld [vmem:[#allocation57_spill] sm:$0xff]  ;;  %v9232_v40 = vld [vmem:[#allocation71_spill] sm:$0xff] }
 0x701   : > { %v7708_v1 = vadd.f32 %v2431_v2, %v7572_v0  ;;  %5011 = vtanh.f32 %v2589_v58  ;;  %v2754_v10 = vpack.c.bf16 %v7690_v33, %v7674_v41  ;;  %v2476_v15 = vadd.f32 %v2460_v60, %v7017_v43  ;;  %v5006_v46 = vpop.eup %5005  ;;  %v9234_v33 = vld [vmem:[#allocation59_spill] sm:$0xff]  ;;  %v9238_v43 = vld [vmem:[#allocation70_spill] sm:$0xff] }
 0x702   : > { %v7716_v32 = vadd.f32 %v2429_v57, %v2172_v28  ;;  %5013 = vtanh.f32 %v2592_v45  ;;  %4727 = vmatprep.mubr.bf16.mxu0 %v2753_v31  ;;  %v2477_v0 = vadd.f32 %v2461_v51, %v7027_v59  ;;  %v2478_v16 = vadd.f32 %v2462_v14, %v7011_v42  ;;  %v5008_v58 = vpop.eup %5007  ;;  %v9233_v14 = vld [vmem:[#allocation58_spill] sm:$0xff]  ;;  %v9235_v41 = vld [vmem:[#allocation51_spill] sm:$0xff]  ;;  %v9237_v42 = vld [vmem:[#allocation60_spill] sm:$0xff] }
 0x703   : > { %9229 = vst [vmem:[#allocation102_spill] sm:$0xff] %v7708_v1  ;;  %v2479_v39 = vadd.f32 %v2463_v13, %v7021_v50  ;;  %5015 = vtanh.f32 %v2590_v61  ;;  %4728 = vmatmul.mubr.bf16.vlgmr.msra.gmra.mrb[64].mxu0 %v2754_v10  ;;  %v2629_v28 = vsub.f32 0.0, %v2476_v15  ;;  %v7730_v51 = vmul.f32 %v7714_v35, %v9232_v40 }
 0x704   : > { %9230 = vst [vmem:[#allocation46_spill] sm:$0xff] %v7716_v32  ;;  %v2486_v2 = vpack.c.bf16 %v2477_v0, %v2476_v15  ;;  %v2630_v20 = vsub.f32 0.0, %v2477_v0  ;;  %v2631_v57 = vsub.f32 0.0, %v2478_v16  ;;  %v7743_v32 = vmul.f32 %v7601_v3, %v9238_v43  ;;  %v9251_v3 = vld [vmem:[#allocation98_spill] sm:$0xff] }
 0x705   : > { %v2487_v34 = vpack.c.bf16 %v2479_v39, %v2478_v16  ;;  %v2693_v60 = vmul.f32 %v2629_v28, %v9221_v26  ;;  %v2725_v45 = vmul.f32 %v2629_v28, %v9231_v53  ;;  %v2632_v31 = vsub.f32 0.0, %v2479_v39 }
 0x706   : > { %4707 = vmatprep.mubr.bf16.mxu1 %v2486_v2  ;;  %v2694_v13 = vmul.f32 %v2630_v20, %v9227_v12  ;;  %v2726_v61 = vmul.f32 %v2630_v20, %v9233_v14  ;;  %v2695_v10 = vmul.f32 %v2631_v57, %v9217_v44  ;;  %v2727_v9 = vmul.f32 %v2631_v57, %v9234_v33  ;;  %v9239_v2 = vld [vmem:[#allocation20_spill] sm:$0xff]  ;;  %v9241_v20 = vld [vmem:[#allocation27_spill] sm:$0xff] }
 0x707   : > { %4708 = vmatmul.mubr.bf16.gmra.mrb[60].mxu1 %v2487_v34  ;;  %v7737_v50 = vadd.f32 %v2693_v60, %v9235_v41  ;;  %v2696_v28 = vmul.f32 %v2632_v31, %v9225_v8  ;;  %v2728_v59 = vmul.f32 %v2632_v31, %v9237_v42  ;;  %v7749_v14 = vadd.f32 %v2725_v45, %v9241_v20  ;;  %v9243_v12 = vld [vmem:[#allocation95_spill] sm:$0xff]  ;;  %v9245_v34 = vld [vmem:[#allocation76_spill] sm:$0xff]  ;;  %v5010_v60 = vpop.eup %5009 }
 0x708   : > { %v7746_v1 = vadd.f32 %v2694_v13, %v9239_v2  ;;  %v7752_v57 = vadd.f32 %v2726_v61, %v9243_v12  ;;  %v7755_v41 = vadd.f32 %v2695_v10, %v9245_v34  ;;  %v9249_v31 = vld [vmem:[#allocation31_spill] sm:$0xff]  ;;  %v2651_v45 = vsub.f32 %v7730_v51, %v7743_v32 }
 0x709   : > { %9236 = vst [vmem:[#allocation67_spill] sm:$0xff] %v7737_v50  ;;  %9242 = vst [vmem:[#allocation89_spill] sm:$0xff] %v7749_v14  ;;  %v9247_v50 = vld [vmem:[#allocation33_spill] sm:$0xff]  ;;  %v7761_v42 = vadd.f32 %v2727_v9, %v9249_v31  ;;  %v7764_v53 = vadd.f32 %v2728_v59, %v9251_v3  ;;  %v2641_v9 = vmul.f32 %v7608_v63, %v9238_v43 }
 0x70a   : > { %9240 = vst [vmem:[#allocation93_spill] sm:$0xff] %v7746_v1  ;;  %9244 = vst [vmem:[#allocation44_spill] sm:$0xff] %v7752_v57  ;;  %v7758_v8 = vadd.f32 %v2696_v28, %v9247_v50  ;;  %v2755_v12 = vpack.c.bf16 %v7752_v57, %v7749_v14  ;;  %v2633_v50 = vmul.f32 %v7721_v4, %v9232_v40  ;;  %v9258_v1 = vld [vmem:[#allocation36_spill] sm:$0xff] }
 0x70b   : > { %9246 = vst [vmem:[#allocation39_spill] sm:$0xff] %v7755_v41  ;;  %9250 = vst [vmem:[#allocation42_spill] sm:$0xff] %v7761_v42  ;;  %v5012_v13 = vpop.eup %5011  ;;  %v2756_v61 = vpack.c.bf16 %v7764_v53, %v7761_v42  ;;  %v2636_v59 = vmul.f32 %v5006_v46, %v9232_v40  ;;  %v2644_v32 = vmul.f32 %v7613_v11, %v9238_v43  ;;  %v9257_v42 = vld [vmem:[#allocation49_spill] sm:$0xff] }
 0x70c   : > { %9248 = vst [vmem:[#allocation43_spill] sm:$0xff] %v7758_v8  ;;  %9252 = vst [vmem:[#allocation40_spill] sm:$0xff] %v7764_v53  ;;  %v7776_v10 = vpop.eup %5013  ;;  %4731 = vmatprep.mubr.bf16.mxu0 %v2755_v12  ;;  %v2634_v51 = vmul.f32 %v5008_v58, %v9232_v40  ;;  %v2649_v2 = vsub.f32 %v2633_v50, %v2641_v9  ;;  %v2642_v20 = vmul.f32 %v7619_v48, %v9238_v43 }
 0x70d   : > { %v7782_v28 = vpop.eup %5015  ;;  %4732 = vmatmul.mubr.bf16.gmra.mrb[68].mxu0 %v2756_v61  ;;  %v2652_v34 = vsub.f32 %v2636_v59, %v2644_v32  ;;  %v7787_v63 = vmul.f32 %v5010_v60, %v9232_v40  ;;  %v7790_v31 = vmul.f32 %v2478_v16, %v9238_v43  ;;  %v7793_v12 = vmul.f32 %v5012_v13, %v9232_v40 }
 0x70e   : > { %v2650_v3 = vsub.f32 %v2634_v51, %v2642_v20  ;;  %v7798_v61 = vmul.f32 %v2476_v15, %v9238_v43  ;;  %v7802_v48 = vmul.f32 %v7776_v10, %v9232_v40  ;;  %v7805_v50 = vmul.f32 %v2479_v39, %v9238_v43 }
 0x70f   : > { %v7809_v16 = vmul.f32 %v7782_v28, %v9232_v40  ;;  %v7814_v59 = vmul.f32 %v2477_v0, %v9238_v43  ;;  %v2603_v39 = vmul.f32 %v7714_v35, %v7714_v35  ;;  %v2601_v51 = vmul.f32 %v7721_v4, %v7721_v4  ;;  %v9256_v0 = vld [vmem:[#allocation80_spill] sm:$0xff]  ;;  %v9259_v4 = vld [vmem:[#allocation29_spill] sm:$0xff] }
 0x710   : > { %9253 = vst [vmem:[#allocation45_spill] sm:$0xff] %v7805_v50  ;;  %v2604_v20 = vmul.f32 %v5006_v46, %v5006_v46  ;;  %v2602_v11 = vmul.f32 %v5008_v58, %v5008_v58  ;;  %v2673_v14 = vmul.f32 %v9256_v0, %v9160_v22  ;;  %v2674_v15 = vmul.f32 %v9257_v42, %v9160_v22  ;;  %v9261_v42 = vld [vmem:[#allocation22_spill] sm:$0xff] }
 0x711   : > { %9254 = vst [vmem:[#allocation88_spill] sm:$0xff] %v7809_v16  ;;  %9255 = vst [vmem:[#allocation72_spill] sm:$0xff] %v7814_v59  ;;  %v2611_v57 = vsub.f32 1.0, %v2603_v39  ;;  %v2609_v9 = vsub.f32 1.0, %v2601_v51  ;;  %v7830_v35 = vmul.f32 %v9258_v1, %v9160_v22  ;;  %v7834_v46 = vmul.f32 %v9259_v4, %v9160_v22 }
 0x712   : > { %v2612_v32 = vsub.f32 1.0, %v2604_v20  ;;  %v2610_v51 = vsub.f32 1.0, %v2602_v11  ;;  %v7837_v16 = vmul.f32 %v5010_v60, %v5010_v60  ;;  %v7844_v20 = vmul.f32 %v5012_v13, %v5012_v13  ;;  %v9264_v13 = vld [vmem:[#allocation101_spill] sm:$0xff] }
 0x713   : > { %9260 = vst [vmem:[#allocation73_spill] sm:$0xff] %v7834_v46  ;;  %v3022_v11 = vlaneseq }
 0x7c7   : > { %v4705_v53 = vpop.f32.mrb[56].mxu1 }
 0x7c8   : > { %v2619_v8 = vmul.f32 %v4705_v53, %v2611_v57  ;;  %v2554_v41 = vpop.f32.mrb[57].mxu1  ;;  %v7841_v53 = vmul.f32 %v9261_v42, %v9160_v22 }
 0x7c9   : > { %v2617_v58 = vmul.f32 %v2609_v9, %v2554_v41  ;;  %v4706_v39 = vpop.f32.mrb[58].mxu1  ;;  %v9262_v41 = vld [vmem:[#allocation97_spill] sm:$0xff] }
 0x7ca   : > { %v2659_v40 = vmul.f32 %v2619_v8, %v8916_v19  ;;  %v2620_v0 = vmul.f32 %v4706_v39, %v2612_v32  ;;  %v2557_v59 = vpop.f32.mrb[59].mxu1  ;;  %v2675_v9 = vmul.f32 %v9262_v41, %v9160_v22  ;;  %v9263_v32 = vld [vmem:[#allocation19_spill] sm:$0xff]  ;;  %v5206_v39 = vmov 1966171168  }
 0x7cb   : > { %v2657_v1 = vmul.f32 %v2617_v58, %v8916_v19  ;;  %v2618_v57 = vmul.f32 %v2610_v51, %v2557_v59  ;;  %v7851_v60 = vmul.f32 %v9263_v32, %v9160_v22  ;;  %v3020_v46 = vunpack.c.l.s4 %v5206_v39 }
 0x7cc   : > { %v2667_v4 = vsub.f32 %v2651_v45, %v2659_v40  ;;  %v2660_v8 = vmul.f32 %v2620_v0, %v8916_v19  ;;  %v2676_v40 = vmul.f32 %v9264_v13, %v9160_v22  ;;  %v2615_v45 = vsub.f32 1.0, %v7837_v16 }
 0x7cd   : > { %v2665_v42 = vsub.f32 %v2649_v2, %v2657_v1  ;;  %v2658_v50 = vmul.f32 %v2618_v57, %v8916_v19  ;;  %v2613_v0 = vsub.f32 1.0, %v7844_v20  ;;  %v7860_v32 = vmul.f32 %v7776_v10, %v7776_v10 }
 0x7ce   : > { %v2683_v58 = vadd.f32 %v2675_v9, %v2667_v4  ;;  %v2668_v59 = vsub.f32 %v2652_v34, %v2660_v8  ;;  %v3023_v1 = vshrl.u32 %v3022_v11, 7  ;;  %v3021_v34 = vunpack.c.0.s8 %v3020_v46 }
 0x7cf   : > { %v2681_v51 = vadd.f32 %v2673_v14, %v2665_v42  ;;  %v2666_v41 = vsub.f32 %v2650_v3, %v2658_v50 }
 0x7d0   : > { %v2699_v39 = vmul.f32 %v2683_v58, %v9193_v55  ;;  %v2731_v2 = vmul.f32 %v2683_v58, %v9194_v18  ;;  %v2684_v57 = vadd.f32 %v2676_v40, %v2668_v59  ;;  %v7896_v20 = vsub.s32 %v3021_v34, %v3023_v1  ;;  %v9266_v59 = vld [vmem:[#allocation61_spill] sm:$0xff]  ;;  %v9267_v40 = vld [vmem:[#allocation64_spill] sm:$0xff]  ;;  %v9268_v34 = vld [vmem:[#allocation62_spill] sm:$0xff] }
 0x7d1   : > { %v2697_v4 = vmul.f32 %v2681_v51, %v9123_v36  ;;  %v2729_v9 = vmul.f32 %v2681_v51, %v9195_v54  ;;  %v2682_v16 = vadd.f32 %v2674_v15, %v2666_v41 }
 0x7d2   : > { %v7867_v14 = vadd.f32 %v2699_v39, %v7596_v6  ;;  %v2747_v3 = vadd.f32 %v2731_v2, %v9184_v52  ;;  %v2700_v10 = vmul.f32 %v2684_v57, %v9122_v30  ;;  %v2732_v50 = vmul.f32 %v2684_v57, %v9196_v24 }
 0x7d3   : > { %v7873_v55 = vadd.f32 %v2697_v4, %v7603_v23  ;;  %v2698_v18 = vmul.f32 %v2682_v16, %v9124_v7  ;;  %v2730_v46 = vmul.f32 %v2682_v16, %v9197_v37  ;;  %v2745_v36 = vadd.f32 %v2729_v9, %v9185_v62  ;;  %v9265_v37 = vld [vmem:[#allocation63_spill] sm:$0xff] }
 0x7d4   : > { %v2900_v54 = vsub.f32 0.0, %v2747_v3  ;;  %v7879_v15 = vadd.f32 %v2700_v10, %v7610_v21  ;;  %v7882_v6 = vadd.f32 %v2732_v50, %v9186_v17  ;;  %v7886_v30 = vmul.f32 %v7782_v28, %v7782_v28 }
 0x7d5   : > { %v7889_v52 = vadd.f32 %v2698_v18, %v7616_v49  ;;  %v2616_v7 = vsub.f32 1.0, %v7860_v32  ;;  %v7893_v24 = vadd.f32 %v2730_v46, %v9187_v47  ;;  %v2898_v62 = vsub.f32 0.0, %v2745_v36 }
 0x7d6   : > { %v4729_v23 = vpop.f32.mrb[64].mxu0  ;;  %v2964_v21 = vmul.f32 %v2900_v54, %v9265_v37  ;;  %v2901_v17 = vsub.f32 0.0, %v7882_v6  ;;  %v2758_v28 = vpack.c.bf16 %v7882_v6, %v2747_v3  ;;  %v2614_v39 = vsub.f32 1.0, %v7886_v30 }
 0x7d7   : > { %v2795_v11 = vpop.f32.mrb[65].mxu0  ;;  %v2860_v8 = vadd.f32 %v7639_v38, %v4729_v23  ;;  %v2757_v42 = vpack.c.bf16 %v7893_v24, %v2745_v36  ;;  %v2899_v58 = vsub.f32 0.0, %v7893_v24  ;;  %v2962_v47 = vmul.f32 %v2898_v62, %v9266_v59  ;;  %v9269_v23 = vld [vmem:[#allocation66_spill] sm:$0xff] }
 0x7d8   : > { %v4730_v49 = vpop.f32.mrb[66].mxu0  ;;  %v2980_v13 = vadd.f32 %v2964_v21, %v7632_v25  ;;  %v2965_v51 = vmul.f32 %v2901_v17, %v9267_v40  ;;  %v7908_v2 = vmul.f32 %v2747_v3, %v9238_v43  ;;  %v7911_v1 = vadd.f32 %v7639_v38, %v2795_v11 }
 0x7d9   : > { %v2798_v41 = vpop.f32.mrb[67].mxu0  ;;  %4735 = vmatprep.mubr.bf16.mxu1 %v2757_v42  ;;  %v2963_v4 = vmul.f32 %v2899_v58, %v9268_v34  ;;  %v7915_v9 = vadd.f32 %v2962_v47, %v7644_v27  ;;  %v7918_v25 = vmul.f32 %v2745_v36, %v9238_v43  ;;  %5017 = vtanh.f32 %v2860_v8 }
 0x7da   : > { %v4709_v57 = vpop.f32.mrb[60].mxu1  ;;  %2996 = vst [vmem:[#allocation2 + $0x10] sm:$0xff] %v2980_v13  ;;  %v3116_v16 = vcombine.high %v2980_v13, %v2980_v13  ;;  %v3123_v10 = vrot.slane %v2980_v13, %v7896_v20  ;;  %v2981_v3 = vadd.f32 %v2965_v51, %v7648_v29  ;;  %4736 = vmatmul.mubr.bf16.vlgmr.msra.gmra.mrb[64].mxu1 %v2758_v28  ;;  %5019 = vtanh.f32 %v7911_v1 }
 0x7db   : > { %v2623_v50 = vmul.f32 %v4709_v57, %v2615_v45  ;;  %v2570_v18 = vpop.f32.mrb[61].mxu1  ;;  %v7923_v46 = vadd.f32 %v7639_v38, %v4730_v49  ;;  %v7926_v62 = vadd.f32 %v2963_v4, %v9269_v23  ;;  %2994 = vst [vmem:[#allocation2] sm:$0xff] %v7915_v9  ;;  %v2859_v8 = vadd.f32 %v7639_v38, %v2798_v41 }
 0x7dc   : > { %v2621_v54 = vmul.f32 %v2613_v0, %v2570_v18  ;;  %v4710_v27 = vpop.f32.mrb[62].mxu1  ;;  %v3130_v36 = vrot.slane %v3116_v16, %v7896_v20  ;;  %v3131_v21 = vcombine.high %v3123_v10, %v3123_v10  ;;  %v3139_v29 = vrot.slane %v3123_v10, %v7896_v20  ;;  %4248 = vst.sshfl [vmem:[%s5408_s17 + $0x20] sm:$0x1 pattern:$0x73625140] %v3123_v10 }
 0x7dd   : > { %2997 = vst [vmem:[#allocation2 + $0x18] sm:$0xff] %v2981_v3  ;;  %v3165_v45 = vcombine.high %v2981_v3, %v2981_v3  ;;  %v2573_v17 = vpop.f32.mrb[63].mxu1  ;;  %v3172_v0 = vrot.slane %v2981_v3, %v7896_v20  ;;  %v2663_v11 = vmul.f32 %v2623_v50, %v8916_v19  ;;  %2995 = vst [vmem:[#allocation2 + $0x8] sm:$0xff] %v7926_v62  ;;  %5021 = vtanh.f32 %v7923_v46 }
 0x7de   : > { %v2661_v28 = vmul.f32 %v2621_v54, %v8916_v19  ;;  %v3132_v49 = vcombine.high %v3130_v36, %v3130_v36  ;;  %v3146_v42 = vrot.slane %v3130_v36, %v7896_v20  ;;  %v3153_v58 = vrot.slane %v3131_v21, %v7896_v20  ;;  %4249 = vst.sshfl [vmem:[%s5408_s17 + $0x22] sm:$0x1 pattern:$0x73625140] %v3131_v21 }
 0x7df   : > { %v3161_v47 = vcombine.high %v3139_v29, %v3139_v29  ;;  %4250 = vst.sshfl [vmem:[%s5408_s17 + $0x28] sm:$0x1 pattern:$0x73625140] %v3130_v36  ;;  %v3179_v13 = vrot.slane %v3165_v45, %v7896_v20  ;;  %v3180_v51 = vcombine.high %v3172_v0, %v3172_v0  ;;  %v3188_v57 = vrot.slane %v3172_v0, %v7896_v20 }
 0x7e0   : > { %4252 = vst.sshfl [vmem:[%s5408_s17 + $0x30] sm:$0x1 pattern:$0x73625140] %v3172_v0  ;;  %v9270_v41 = vsub.f32 %v7787_v63, %v7790_v31  ;;  %v4733_v16 = vpop.f32.mrb[68].mxu0  ;;  %v3160_v10 = vrot.slane %v3132_v49, %v7896_v20  ;;  %v3162_v3 = vcombine.high %v3146_v42, %v3146_v42  ;;  %v3163_v50 = vcombine.high %v3153_v58, %v3153_v58 }
 0x7e1   : > { %3492 = vst [vmem:[%s5408_s17 + $0x24] sm:$0x1] %v3161_v47  ;;  %4251 = vst.sshfl [vmem:[%s5408_s17 + $0x2a] sm:$0x1 pattern:$0x73625140] %v3132_v49  ;;  %v9271_v18 = vsub.f32 %v7793_v12, %v7798_v61  ;;  %v3181_v36 = vcombine.high %v3179_v13, %v3179_v13  ;;  %v3195_v21 = vrot.slane %v3179_v13, %v7896_v20  ;;  %5023 = vtanh.f32 %v2859_v8 }
 0x7e2   : > { %v2671_v4 = vsub.f32 %v9270_v41, %v2663_v11  ;;  %v2811_v23 = vpop.f32.mrb[69].mxu0  ;;  %v3202_v63 = vrot.slane %v3180_v51, %v7896_v20  ;;  %v3210_v31 = vcombine.high %v3188_v57, %v3188_v57  ;;  %4253 = vst.sshfl [vmem:[%s5408_s17 + $0x32] sm:$0x1 pattern:$0x73625140] %v3180_v51  ;;  %v3164_v45 = vcombine.high %v3160_v10, %v3160_v10  ;;  %v9275_v57 = vld [vmem:[#allocation88_spill] sm:$0xff] }
 0x7e3   : > { %v2669_v54 = vsub.f32 %v9271_v18, %v2661_v28  ;;  %4254 = vst.sshfl [vmem:[%s5408_s17 + $0x38] sm:$0x1 pattern:$0x73625140] %v3179_v13  ;;  %v4734_v29 = vpop.f32.mrb[70].mxu0  ;;  %v2624_v61 = vmul.f32 %v4710_v27, %v2616_v7  ;;  %v3209_v28 = vrot.slane %v3181_v36, %v7896_v20  ;;  %v3211_v49 = vcombine.high %v3195_v21, %v3195_v21  ;;  %v7974_v7 = vpop.eup %5017  ;;  %v9273_v13 = vld [vmem:[#allocation45_spill] sm:$0xff] }
 0x7e4   : > { %3493 = vst [vmem:[%s5408_s17 + $0x26] sm:$0x1] %v3163_v50  ;;  %3496 = vst [vmem:[%s5408_s17 + $0x2c] sm:$0x1] %v3162_v3  ;;  %v2687_v0 = vadd.f32 %v7841_v53, %v2671_v4  ;;  %v2814_v11 = vpop.f32.mrb[71].mxu0  ;;  %v3212_v42 = vcombine.high %v3202_v63, %v3202_v63  ;;  %v2622_v58 = vmul.f32 %v2614_v39, %v2573_v17  ;;  %v9272_v17 = vld [vmem:[#allocation57_spill] sm:$0xff] }
 0x7e5   : > { %v2685_v12 = vadd.f32 %v7830_v35, %v2669_v54  ;;  %3500 = vst [vmem:[%s5408_s17 + $0x34] sm:$0x1] %v3210_v31  ;;  %4255 = vst.sshfl [vmem:[%s5408_s17 + $0x3a] sm:$0x1 pattern:$0x73625140] %v3181_v36  ;;  %v3018_v32 = vcombine.high %v7915_v9, %v7915_v9  ;;  %v3213_v27 = vcombine.high %v3209_v28, %v3209_v28 }
 0x7e6   : > { %3497 = vst [vmem:[%s5408_s17 + $0x2e] sm:$0x1] %v3164_v45  ;;  %v2703_v35 = vmul.f32 %v2687_v0, %v9217_v44  ;;  %3501 = vst [vmem:[%s5408_s17 + $0x36] sm:$0x1] %v3212_v42  ;;  %v2664_v30 = vmul.f32 %v2624_v61, %v8916_v19  ;;  %v2662_v39 = vmul.f32 %v2622_v58, %v8916_v19  ;;  %v9276_v41 = vld [vmem:[#allocation72_spill] sm:$0xff]  ;;  %v9278_v50 = vld [vmem:[#allocation73_spill] sm:$0xff] }
 0x7e7   : > { %v2701_v53 = vmul.f32 %v2685_v12, %v9221_v26  ;;  %3504 = vst [vmem:[%s5408_s17 + $0x3c] sm:$0x1] %v3211_v49  ;;  %v2735_v44 = vmul.f32 %v2687_v0, %v9234_v33  ;;  %3505 = vst [vmem:[%s5408_s17 + $0x3e] sm:$0x1] %v3213_v27  ;;  %v2733_v47 = vmul.f32 %v2685_v12, %v9272_v17  ;;  %v9280_v31 = vld [vmem:[#allocation60_spill] sm:$0xff]  ;;  %v9281_v45 = vld [vmem:[#allocation85_spill] sm:$0xff]  ;;  %v8035_v27 = vpop.eup %5019 }
 0x7e8   : > { %v7982_v1 = vadd.f32 %v2703_v35, %v7697_v56  ;;  %v9274_v51 = vsub.f32 %v7802_v48, %v9273_v13  ;;  %v9277_v4 = vsub.f32 %v9275_v57, %v9276_v41  ;;  %v2864_v10 = vadd.f32 %v7639_v38, %v4733_v16  ;;  %v9282_v12 = vld [vmem:[#allocation58_spill] sm:$0xff] }
 0x7e9   : > { %v7986_v26 = vadd.f32 %v2701_v53, %v7703_v5  ;;  %v7998_v33 = vadd.f32 %v7639_v38, %v2811_v23  ;;  %v8001_v5 = vadd.f32 %v7639_v38, %v4734_v29  ;;  %v3025_v8 = vrot.slane %v7915_v9, %v7896_v20  ;;  %v9283_v49 = vld [vmem:[#allocation102_spill] sm:$0xff] }
 0x7ea   : > { %v2672_v46 = vsub.f32 %v9274_v51, %v2664_v30  ;;  %v2670_v56 = vsub.f32 %v9277_v4, %v2662_v39  ;;  %v3032_v48 = vrot.slane %v3018_v32, %v7896_v20  ;;  %v3067_v54 = vcombine.high %v7926_v62, %v7926_v62  ;;  %v9284_v58 = vld [vmem:[#allocation46_spill] sm:$0xff]  ;;  %v8039_v51 = vpop.eup %5021  ;;  %v9285_v4 = vld [vmem:[#allocation83_spill] sm:$0xff] }
 0x7eb   : > { %v3074_v16 = vrot.slane %v7926_v62, %v7896_v20  ;;  %v8013_v23 = vadd.f32 %v7639_v38, %v2814_v11  ;;  %v3033_v36 = vcombine.high %v3025_v8, %v3025_v8  ;;  %v3041_v21 = vrot.slane %v3025_v8, %v7896_v20  ;;  %4240 = vst.sshfl [vmem:[%s5408_s17] sm:$0x1 pattern:$0x73625140] %v3025_v8  ;;  %v8048_v8 = vpop.eup %5023 }
 0x7ec   : > { %v2688_v3 = vadd.f32 %v7851_v60, %v2672_v46  ;;  %v2686_v18 = vadd.f32 %v9278_v50, %v2670_v56  ;;  %v3034_v9 = vcombine.high %v3032_v48, %v3032_v48  ;;  %4242 = vst.sshfl [vmem:[%s5408_s17 + $0x8] sm:$0x1 pattern:$0x73625140] %v3032_v48  ;;  %v9279_v60 = vld [vmem:[#allocation91_spill] sm:$0xff]  ;;  %v3048_v38 = vrot.slane %v3032_v48, %v7896_v20 }
 0x7ed   : > { %4244 = vst.sshfl [vmem:[%s5408_s17 + $0x10] sm:$0x1 pattern:$0x73625140] %v3074_v16  ;;  %v3055_v62 = vrot.slane %v3033_v36, %v7896_v20  ;;  %v3063_v28 = vcombine.high %v3041_v21, %v3041_v21  ;;  %v3081_v53 = vrot.slane %v3067_v54, %v7896_v20  ;;  %v3082_v32 = vcombine.high %v3074_v16, %v3074_v16 }
 0x7ee   : > { %v2704_v63 = vmul.f32 %v2688_v3, %v9279_v60  ;;  %v2736_v29 = vmul.f32 %v2688_v3, %v9280_v31  ;;  %v2702_v0 = vmul.f32 %v2686_v18, %v9281_v45  ;;  %v2734_v61 = vmul.f32 %v2686_v18, %v9282_v12  ;;  %4241 = vst.sshfl [vmem:[%s5408_s17 + $0x2] sm:$0x1 pattern:$0x73625140] %v3033_v36  ;;  %v9286_v3 = vld [vmem:[#allocation100_spill] sm:$0xff] }
 0x7ef   : > { %v3062_v11 = vrot.slane %v3034_v9, %v7896_v20  ;;  %4243 = vst.sshfl [vmem:[%s5408_s17 + $0xa] sm:$0x1 pattern:$0x73625140] %v3034_v9  ;;  %v3064_v30 = vcombine.high %v3048_v38, %v3048_v38  ;;  %v3065_v39 = vcombine.high %v3055_v62, %v3055_v62  ;;  %v3090_v13 = vrot.slane %v3074_v16, %v7896_v20  ;;  %v9287_v18 = vld [vmem:[#allocation96_spill] sm:$0xff]  ;;  %v9288_v16 = vld [vmem:[#allocation99_spill] sm:$0xff] }
 0x7f0   : > { %v8029_v42 = vadd.f32 %v2704_v63, %v9283_v49  ;;  %v8032_v35 = vadd.f32 %v2702_v0, %v9284_v58  ;;  %3476 = vst [vmem:[%s5408_s17 + $0x4] sm:$0x1] %v3063_v28  ;;  %v3083_v46 = vcombine.high %v3081_v53, %v3081_v53  ;;  %v3097_v57 = vrot.slane %v3081_v53, %v7896_v20  ;;  %v9289_v0 = vld [vmem:[#allocation74_spill] sm:$0xff]  ;;  %v9290_v38 = vld [vmem:[#allocation75_spill] sm:$0xff] }
 0x7f1   : > { %v3066_v17 = vcombine.high %v3062_v11, %v3062_v11  ;;  %v3104_v41 = vrot.slane %v3082_v32, %v7896_v20  ;;  %4245 = vst.sshfl [vmem:[%s5408_s17 + $0x12] sm:$0x1 pattern:$0x73625140] %v3082_v32  ;;  %v8046_v56 = vadd.f32 %v2733_v47, %v9285_v4  ;;  %v3112_v48 = vcombine.high %v3090_v13, %v3090_v13  ;;  %v9291_v11 = vld [vmem:[#allocation77_spill] sm:$0xff]  ;;  %v9292_v49 = vld [vmem:[#allocation71_spill] sm:$0xff] }
 0x7f2   : > { %4246 = vst.sshfl [vmem:[%s5408_s17 + $0x18] sm:$0x1 pattern:$0x73625140] %v3081_v53  ;;  %3477 = vst [vmem:[%s5408_s17 + $0x6] sm:$0x1] %v3065_v39  ;;  %v8054_v50 = vadd.f32 %v2734_v61, %v9286_v3  ;;  %v8057_v54 = vadd.f32 %v2735_v44, %v9287_v18  ;;  %v8060_v36 = vadd.f32 %v2736_v29, %v9288_v16  ;;  %5025 = vtanh.f32 %v2864_v10 }
 0x7f3   : > { %3480 = vst [vmem:[%s5408_s17 + $0xc] sm:$0x1] %v3064_v30  ;;  %3481 = vst [vmem:[%s5408_s17 + $0xe] sm:$0x1] %v3066_v17  ;;  %v3111_v47 = vrot.slane %v3083_v46, %v7896_v20  ;;  %v3113_v9 = vcombine.high %v3097_v57, %v3097_v57  ;;  %v3114_v21 = vcombine.high %v3104_v41, %v3104_v41  ;;  %v2902_v60 = vsub.f32 0.0, %v8046_v56  ;;  %v9293_v10 = vld [vmem:[#allocation67_spill] sm:$0xff] }
 0x7f4   : > { %4247 = vst.sshfl [vmem:[%s5408_s17 + $0x1a] sm:$0x1 pattern:$0x73625140] %v3083_v46  ;;  %3484 = vst [vmem:[%s5408_s17 + $0x14] sm:$0x1] %v3112_v48  ;;  %v2759_v63 = vpack.c.bf16 %v8054_v50, %v8046_v56  ;;  %v2760_v44 = vpack.c.bf16 %v8060_v36, %v8057_v54  ;;  %5027 = vtanh.f32 %v7998_v33  ;;  %v8081_v58 = vmul.f32 %v7974_v7, %v9292_v49 }
 0x7f5   : > { %v2903_v31 = vsub.f32 0.0, %v8054_v50  ;;  %v2904_v29 = vsub.f32 0.0, %v8057_v54  ;;  %v3115_v45 = vcombine.high %v3111_v47, %v3111_v47  ;;  %3485 = vst [vmem:[%s5408_s17 + $0x16] sm:$0x1] %v3114_v21  ;;  %3488 = vst [vmem:[%s5408_s17 + $0x1c] sm:$0x1] %v3113_v9  ;;  %v2966_v12 = vmul.f32 %v2902_v60, %v9289_v0 }
 0x7f6   : > { %v2905_v61 = vsub.f32 0.0, %v8060_v36  ;;  %4739 = vmatprep.mubr.bf16.mxu1 %v2759_v63  ;;  %5029 = vtanh.f32 %v8001_v5  ;;  %v9294_v32 = vld [vmem:[#allocation78_spill] sm:$0xff]  ;;  %v8089_v33 = vmul.f32 %v8035_v27, %v9292_v49  ;;  %v9295_v39 = vld [vmem:[#allocation93_spill] sm:$0xff]  ;;  %v9296_v13 = vld [vmem:[#allocation39_spill] sm:$0xff]  ;;  %v2924_v5 = vsub.f32 %v8081_v58, %v7908_v2 }
 0x7f7   : > { %v2967_v62 = vmul.f32 %v2903_v31, %v9290_v38  ;;  %v2968_v28 = vmul.f32 %v2904_v29, %v9291_v11  ;;  %3489 = vst [vmem:[%s5408_s17 + $0x1e] sm:$0x1] %v3115_v45  ;;  %v2982_v53 = vadd.f32 %v2966_v12, %v9293_v10  ;;  %4740 = vmatmul.mubr.bf16.gmra.mrb[68].mxu1 %v2760_v44  ;;  %5031 = vtanh.f32 %v8013_v23  ;;  %v9297_v4 = vld [vmem:[#allocation43_spill] sm:$0xff]  ;;  %v9301_v58 = vld [vmem:[#allocation50_spill] sm:$0xff] }
 0x7f8   : > { %v2969_v30 = vmul.f32 %v2905_v61, %v9294_v32  ;;  %v2922_v3 = vsub.f32 %v8089_v33, %v7918_v25 }
 0x7f9   : > { %v2983_v17 = vadd.f32 %v2967_v62, %v9295_v39  ;;  %v2984_v46 = vadd.f32 %v2968_v28, %v9296_v13  ;;  %2998 = vst [vmem:[#allocation2 + $0x20] sm:$0xff] %v2982_v53  ;;  %v3214_v57 = vcombine.high %v2982_v53, %v2982_v53  ;;  %v3221_v41 = vrot.slane %v2982_v53, %v7896_v20 }
 0x7fa   : > { %v2985_v48 = vadd.f32 %v2969_v30, %v9297_v4 }
 0x7fb   : > { %2999 = vst [vmem:[#allocation2 + $0x28] sm:$0xff] %v2983_v17  ;;  %v3263_v23 = vcombine.high %v2983_v17, %v2983_v17  ;;  %v3270_v18 = vrot.slane %v2983_v17, %v7896_v20  ;;  %3000 = vst [vmem:[#allocation2 + $0x30] sm:$0xff] %v2984_v46  ;;  %v3312_v16 = vcombine.high %v2984_v46, %v2984_v46 }
 0x7fc   : > { %v3319_v47 = vrot.slane %v2984_v46, %v7896_v20  ;;  %v3228_v9 = vrot.slane %v3214_v57, %v7896_v20  ;;  %v3229_v21 = vcombine.high %v3221_v41, %v3221_v41  ;;  %v3237_v60 = vrot.slane %v3221_v41, %v7896_v20  ;;  %4256 = vst.sshfl [vmem:[%s5408_s17 + $0x40] sm:$0x1 pattern:$0x73625140] %v3221_v41  ;;  %v8119_v17 = vpop.eup %5025 }
 0x7fd   : > { %3001 = vst [vmem:[#allocation2 + $0x38] sm:$0xff] %v2985_v48  ;;  %v3361_v63 = vcombine.high %v2985_v48, %v2985_v48  ;;  %v3277_v31 = vrot.slane %v3263_v23, %v7896_v20  ;;  %v3278_v44 = vcombine.high %v3270_v18, %v3270_v18  ;;  %v3286_v29 = vrot.slane %v3270_v18, %v7896_v20 }
 0x7fe   : > { %4260 = vst.sshfl [vmem:[%s5408_s17 + $0x50] sm:$0x1 pattern:$0x73625140] %v3270_v18  ;;  %v3326_v45 = vrot.slane %v3312_v16, %v7896_v20  ;;  %v3230_v12 = vcombine.high %v3228_v9, %v3228_v9  ;;  %v3244_v61 = vrot.slane %v3228_v9, %v7896_v20  ;;  %v3251_v62 = vrot.slane %v3229_v21, %v7896_v20  ;;  %v8124_v4 = vpop.eup %5027 }
 0x7ff   : > { %4264 = vst.sshfl [vmem:[%s5408_s17 + $0x60] sm:$0x1 pattern:$0x73625140] %v3319_v47  ;;  %v3259_v28 = vcombine.high %v3237_v60, %v3237_v60  ;;  %v3279_v10 = vcombine.high %v3277_v31, %v3277_v31  ;;  %v3293_v53 = vrot.slane %v3277_v31, %v7896_v20  ;;  %v3300_v30 = vrot.slane %v3278_v44, %v7896_v20 }
 0x800   : > { %4257 = vst.sshfl [vmem:[%s5408_s17 + $0x42] sm:$0x1 pattern:$0x73625140] %v3229_v21  ;;  %v3308_v39 = vcombine.high %v3286_v29, %v3286_v29  ;;  %v3258_v13 = vrot.slane %v3230_v12, %v7896_v20  ;;  %v3260_v46 = vcombine.high %v3244_v61, %v3244_v61  ;;  %v3261_v57 = vcombine.high %v3251_v62, %v3251_v62  ;;  %v8129_v21 = vpop.eup %5029 }
 0x801   : > { %4258 = vst.sshfl [vmem:[%s5408_s17 + $0x48] sm:$0x1 pattern:$0x73625140] %v3228_v9  ;;  %3508 = vst [vmem:[%s5408_s17 + $0x44] sm:$0x1] %v3259_v28  ;;  %v3327_v41 = vcombine.high %v3319_v47, %v3319_v47  ;;  %v3307_v23 = vrot.slane %v3279_v10, %v7896_v20  ;;  %v3309_v18 = vcombine.high %v3293_v53, %v3293_v53 }
 0x802   : > { %4261 = vst.sshfl [vmem:[%s5408_s17 + $0x52] sm:$0x1 pattern:$0x73625140] %v3278_v44  ;;  %v3310_v16 = vcombine.high %v3300_v30, %v3300_v30  ;;  %3516 = vst [vmem:[%s5408_s17 + $0x54] sm:$0x1] %v3308_v39  ;;  %v3328_v9 = vcombine.high %v3326_v45, %v3326_v45  ;;  %v3262_v60 = vcombine.high %v3258_v13, %v3258_v13 }
 0x803   : > { %4262 = vst.sshfl [vmem:[%s5408_s17 + $0x58] sm:$0x1 pattern:$0x73625140] %v3277_v31  ;;  %3509 = vst [vmem:[%s5408_s17 + $0x46] sm:$0x1] %v3261_v57  ;;  %v3335_v31 = vrot.slane %v3319_v47, %v7896_v20  ;;  %v3342_v44 = vrot.slane %v3326_v45, %v7896_v20  ;;  %v3349_v29 = vrot.slane %v3327_v41, %v7896_v20 }
 0x804   : > { %4266 = vst.sshfl [vmem:[%s5408_s17 + $0x68] sm:$0x1 pattern:$0x73625140] %v3326_v45  ;;  %3512 = vst [vmem:[%s5408_s17 + $0x4c] sm:$0x1] %v3260_v46  ;;  %v3311_v61 = vcombine.high %v3307_v23, %v3307_v23  ;;  %v3356_v62 = vrot.slane %v3328_v9, %v7896_v20  ;;  %v3368_v28 = vrot.slane %v2985_v48, %v7896_v20 }
 0x805   : > { %4259 = vst.sshfl [vmem:[%s5408_s17 + $0x4a] sm:$0x1 pattern:$0x73625140] %v3230_v12  ;;  %v8137_v12 = vpop.eup %5031  ;;  %3517 = vst [vmem:[%s5408_s17 + $0x56] sm:$0x1] %v3310_v16  ;;  %v3375_v47 = vrot.slane %v3361_v63, %v7896_v20  ;;  %v3357_v45 = vcombine.high %v3335_v31, %v3335_v31  ;;  %v3359_v53 = vcombine.high %v3349_v29, %v3349_v29 }
 0x806   : > { %4263 = vst.sshfl [vmem:[%s5408_s17 + $0x5a] sm:$0x1 pattern:$0x73625140] %v3279_v10  ;;  %3520 = vst [vmem:[%s5408_s17 + $0x5c] sm:$0x1] %v3309_v18  ;;  %v3358_v10 = vcombine.high %v3342_v44, %v3342_v44  ;;  %v3360_v30 = vcombine.high %v3356_v62, %v3356_v62  ;;  %v3376_v39 = vcombine.high %v3368_v28, %v3368_v28 }
 0x807   : > { %4265 = vst.sshfl [vmem:[%s5408_s17 + $0x62] sm:$0x1 pattern:$0x73625140] %v3327_v41  ;;  %3513 = vst [vmem:[%s5408_s17 + $0x4e] sm:$0x1] %v3262_v60  ;;  %v3377_v13 = vcombine.high %v3375_v47, %v3375_v47  ;;  %v3384_v46 = vrot.slane %v3368_v28, %v7896_v20  ;;  %v3391_v48 = vrot.slane %v3375_v47, %v7896_v20 }
 0x808   : > { %4267 = vst.sshfl [vmem:[%s5408_s17 + $0x6a] sm:$0x1 pattern:$0x73625140] %v3328_v9  ;;  %3521 = vst [vmem:[%s5408_s17 + $0x5e] sm:$0x1] %v3311_v61  ;;  %v2909_v63 = vmul.f32 %v8039_v51, %v9292_v49  ;;  %v2917_v57 = vmul.f32 %v7882_v6, %v9238_v43  ;;  %v3398_v41 = vrot.slane %v3376_v39, %v7896_v20 }
 0x809   : > { %4268 = vst.sshfl [vmem:[%s5408_s17 + $0x70] sm:$0x1 pattern:$0x73625140] %v3368_v28  ;;  %3524 = vst [vmem:[%s5408_s17 + $0x64] sm:$0x1] %v3357_v45  ;;  %v3405_v23 = vrot.slane %v3377_v13, %v7896_v20  ;;  %v3406_v18 = vcombine.high %v3384_v46, %v3384_v46  ;;  %v3407_v16 = vcombine.high %v3391_v48, %v3391_v48 }
 0x80a   : > { %4270 = vst.sshfl [vmem:[%s5408_s17 + $0x78] sm:$0x1 pattern:$0x73625140] %v3375_v47  ;;  %3525 = vst [vmem:[%s5408_s17 + $0x66] sm:$0x1] %v3359_v53  ;;  %v2925_v9 = vsub.f32 %v2909_v63, %v2917_v57  ;;  %v2907_v60 = vmul.f32 %v8048_v8, %v9292_v49  ;;  %v2915_v31 = vmul.f32 %v7893_v24, %v9238_v43 }
 0x80b   : > { %3528 = vst [vmem:[%s5408_s17 + $0x6c] sm:$0x1] %v3358_v10  ;;  %3529 = vst [vmem:[%s5408_s17 + $0x6e] sm:$0x1] %v3360_v30  ;;  %v3408_v44 = vcombine.high %v3398_v41, %v3398_v41  ;;  %v3409_v6 = vcombine.high %v3405_v23, %v3405_v23  ;;  %v8171_v61 = vmul.f32 %v8119_v17, %v9292_v49 }
 0x80c   : > { %4269 = vst.sshfl [vmem:[%s5408_s17 + $0x72] sm:$0x1 pattern:$0x73625140] %v3376_v39  ;;  %3532 = vst [vmem:[%s5408_s17 + $0x74] sm:$0x1] %v3406_v18  ;;  %v2923_v29 = vsub.f32 %v2907_v60, %v2915_v31  ;;  %v8175_v62 = vmul.f32 %v8057_v54, %v9238_v43  ;;  %v8181_v28 = vmul.f32 %v8124_v4, %v9292_v49 }
 0x80d   : > { %4271 = vst.sshfl [vmem:[%s5408_s17 + $0x7a] sm:$0x1 pattern:$0x73625140] %v3377_v13  ;;  %3536 = vst [vmem:[%s5408_s17 + $0x7c] sm:$0x1] %v3407_v16  ;;  %v8185_v24 = vmul.f32 %v8046_v56, %v9238_v43  ;;  %v8191_v45 = vmul.f32 %v8129_v21, %v9292_v49  ;;  %v8195_v54 = vmul.f32 %v8060_v36, %v9238_v43 }
 0x80e   : > { %3533 = vst [vmem:[%s5408_s17 + $0x76] sm:$0x1] %v3408_v44  ;;  %3537 = vst [vmem:[%s5408_s17 + $0x7e] sm:$0x1] %v3409_v6  ;;  %v2928_v47 = vsub.f32 %v8171_v61, %v8175_v62  ;;  %v8201_v53 = vmul.f32 %v8137_v12, %v9292_v49  ;;  %v8207_v30 = vmul.f32 %v8054_v50, %v9238_v43  ;;  %v9305_v62 = vld [vmem:[#allocation44_spill] sm:$0xff] }
 0x80f   : > { %v2926_v10 = vsub.f32 %v8181_v28, %v8185_v24  ;;  %v2929_v56 = vsub.f32 %v8191_v45, %v8195_v54  ;;  %v2876_v36 = vmul.f32 %v7974_v7, %v7974_v7  ;;  %v2874_v13 = vmul.f32 %v8035_v27, %v8035_v27 }
 0x810   : > { %v2927_v39 = vsub.f32 %v8201_v53, %v8207_v30  ;;  %v2877_v49 = vmul.f32 %v8039_v51, %v8039_v51  ;;  %v2875_v46 = vmul.f32 %v8048_v8, %v8048_v8  ;;  %v9298_v8 = vld [vmem:[#allocation52_spill] sm:$0xff] }
 0x811   : > { %v2884_v48 = vsub.f32 1.0, %v2876_v36  ;;  %v2882_v57 = vsub.f32 1.0, %v2874_v13  ;;  %v2948_v6 = vmul.f32 %v9298_v8, %v9160_v22  ;;  %v9299_v13 = vld [vmem:[#allocation18_spill] sm:$0xff] }
 0x812   : > { %v2885_v41 = vsub.f32 1.0, %v2877_v49  ;;  %v2883_v16 = vsub.f32 1.0, %v2875_v46  ;;  %v2946_v49 = vmul.f32 %v9299_v13, %v9160_v22 }
 0x8ad   : > { %v4737_v63 = vpop.f32.mrb[64].mxu1 }
 0x8ae   : > { %v2892_v43 = vmul.f32 %v4737_v63, %v2884_v48  ;;  %v2827_v50 = vpop.f32.mrb[65].mxu1 }
 0x8af   : > { %v2890_v23 = vmul.f32 %v2882_v57, %v2827_v50  ;;  %v4738_v18 = vpop.f32.mrb[66].mxu1 }
 0x8b0   : > { %v2932_v7 = vmul.f32 %v2892_v43, %v8916_v19  ;;  %v2893_v60 = vmul.f32 %v4738_v18, %v2885_v41  ;;  %v2830_v31 = vpop.f32.mrb[67].mxu1  ;;  %v9300_v43 = vld [vmem:[#allocation94_spill] sm:$0xff] }
 0x8b1   : > { %v2930_v27 = vmul.f32 %v2890_v23, %v8916_v19  ;;  %v2891_v44 = vmul.f32 %v2883_v16, %v2830_v31  ;;  %v2949_v2 = vmul.f32 %v9300_v43, %v9160_v22 }
 0x8b2   : > { %v2940_v51 = vsub.f32 %v2924_v5, %v2932_v7  ;;  %v2933_v36 = vmul.f32 %v2893_v60, %v8916_v19  ;;  %v2947_v5 = vmul.f32 %v9301_v58, %v9160_v22 }
 0x8b3   : > { %v2938_v46 = vsub.f32 %v2922_v3, %v2930_v27  ;;  %v2931_v48 = vmul.f32 %v2891_v44, %v8916_v19 }
 0x8b4   : > { %v2956_v63 = vadd.f32 %v2948_v6, %v2940_v51  ;;  %v2941_v57 = vsub.f32 %v2925_v9, %v2933_v36 }
 0x8b5   : > { %v2954_v50 = vadd.f32 %v2946_v49, %v2938_v46  ;;  %v2939_v41 = vsub.f32 %v2923_v29, %v2931_v48 }
 0x8b6   : > { %v2972_v23 = vmul.f32 %v2956_v63, %v9265_v37  ;;  %v2957_v18 = vadd.f32 %v2949_v2, %v2941_v57  ;;  %v8247_v37 = vmul.f32 %v8119_v17, %v8119_v17 }
 0x8b7   : > { %v2970_v16 = vmul.f32 %v2954_v50, %v9266_v59  ;;  %v2955_v7 = vadd.f32 %v2947_v5, %v2939_v41 }
 0x8b8   : > { %v2988_v25 = vadd.f32 %v2972_v23, %v7867_v14  ;;  %v2973_v33 = vmul.f32 %v2957_v18, %v9267_v40 }
 0x8b9   : > { %v2986_v3 = vadd.f32 %v2970_v16, %v7873_v55  ;;  %v2971_v9 = vmul.f32 %v2955_v7, %v9268_v34  ;;  %v8253_v55 = vmul.f32 %v8124_v4, %v8124_v4 }
 0x8ba   : > { %3004 = vst [vmem:[#allocation2 + $0x50] sm:$0xff] %v2988_v25  ;;  %v3644_v60 = vcombine.high %v2988_v25, %v2988_v25  ;;  %v3651_v31 = vrot.slane %v2988_v25, %v7896_v20  ;;  %v2989_v29 = vadd.f32 %v2973_v33, %v7879_v15 }
 0x8bb   : > { %3002 = vst [vmem:[#allocation2 + $0x40] sm:$0xff] %v2986_v3  ;;  %v3546_v14 = vcombine.high %v2986_v3, %v2986_v3  ;;  %v3553_v59 = vrot.slane %v2986_v3, %v7896_v20  ;;  %v2987_v40 = vadd.f32 %v2971_v9, %v7889_v52 }
 0x8bc   : > { %v3658_v34 = vrot.slane %v3644_v60, %v7896_v20  ;;  %v3659_v27 = vcombine.high %v3651_v31, %v3651_v31  ;;  %v3667_v15 = vrot.slane %v3651_v31, %v7896_v20  ;;  %4280 = vst.sshfl [vmem:[%s5408_s17 + $0x21] sm:$0x1 pattern:$0x73625140] %v3651_v31  ;;  %3005 = vst [vmem:[#allocation2 + $0x58] sm:$0xff] %v2989_v29 }
 0x8bd   : > { %v3693_v17 = vcombine.high %v2989_v29, %v2989_v29  ;;  %v3560_v44 = vrot.slane %v3546_v14, %v7896_v20  ;;  %v3561_v51 = vcombine.high %v3553_v59, %v3553_v59  ;;  %v3569_v52 = vrot.slane %v3553_v59, %v7896_v20  ;;  %4272 = vst.sshfl [vmem:[%s5408_s17 + $0x1] sm:$0x1 pattern:$0x73625140] %v3553_v59 }
 0x8be   : > { %v3700_v4 = vrot.slane %v2989_v29, %v7896_v20  ;;  %3003 = vst [vmem:[#allocation2 + $0x48] sm:$0xff] %v2987_v40  ;;  %v3660_v8 = vcombine.high %v3658_v34, %v3658_v34  ;;  %v3674_v6 = vrot.slane %v3658_v34, %v7896_v20  ;;  %v3681_v36 = vrot.slane %v3659_v27, %v7896_v20 }
 0x8bf   : > { %v3689_v13 = vcombine.high %v3667_v15, %v3667_v15  ;;  %4281 = vst.sshfl [vmem:[%s5408_s17 + $0x23] sm:$0x1 pattern:$0x73625140] %v3659_v27  ;;  %v3562_v49 = vcombine.high %v3560_v44, %v3560_v44  ;;  %v3576_v46 = vrot.slane %v3560_v44, %v7896_v20  ;;  %v3583_v48 = vrot.slane %v3561_v51, %v7896_v20 }
 0x8c0   : > { %4282 = vst.sshfl [vmem:[%s5408_s17 + $0x29] sm:$0x1 pattern:$0x73625140] %v3658_v34  ;;  %v3591_v63 = vcombine.high %v3569_v52, %v3569_v52  ;;  %v3688_v57 = vrot.slane %v3660_v8, %v7896_v20  ;;  %v3690_v43 = vcombine.high %v3674_v6, %v3674_v6  ;;  %v3691_v2 = vcombine.high %v3681_v36, %v3681_v36 }
 0x8c1   : > { %4273 = vst.sshfl [vmem:[%s5408_s17 + $0x3] sm:$0x1 pattern:$0x73625140] %v3561_v51  ;;  %4020 = vst [vmem:[%s5408_s17 + $0x25] sm:$0x1] %v3689_v13  ;;  %v3707_v58 = vrot.slane %v3693_v17, %v7896_v20  ;;  %v3590_v5 = vrot.slane %v3562_v49, %v7896_v20  ;;  %v3592_v50 = vcombine.high %v3576_v46, %v3576_v46 }
 0x8c2   : > { %4274 = vst.sshfl [vmem:[%s5408_s17 + $0x9] sm:$0x1 pattern:$0x73625140] %v3560_v44  ;;  %v3593_v41 = vcombine.high %v3583_v48, %v3583_v48  ;;  %4004 = vst [vmem:[%s5408_s17 + $0x5] sm:$0x1] %v3591_v63  ;;  %v3708_v23 = vcombine.high %v3700_v4, %v3700_v4  ;;  %v3692_v18 = vcombine.high %v3688_v57, %v3688_v57 }
 0x8c3   : > { %4284 = vst.sshfl [vmem:[%s5408_s17 + $0x31] sm:$0x1 pattern:$0x73625140] %v3700_v4  ;;  %4021 = vst [vmem:[%s5408_s17 + $0x27] sm:$0x1] %v3691_v2  ;;  %v3709_v16 = vcombine.high %v3707_v58, %v3707_v58  ;;  %v3716_v7 = vrot.slane %v3700_v4, %v7896_v20  ;;  %v3723_v25 = vrot.slane %v3707_v58, %v7896_v20 }
 0x8c4   : > { %4283 = vst.sshfl [vmem:[%s5408_s17 + $0x2b] sm:$0x1 pattern:$0x73625140] %v3660_v8  ;;  %4024 = vst [vmem:[%s5408_s17 + $0x2d] sm:$0x1] %v3690_v43  ;;  %v3594_v33 = vcombine.high %v3590_v5, %v3590_v5  ;;  %v3730_v3 = vrot.slane %v3708_v23, %v7896_v20  ;;  %v3595_v9 = vcombine.high %v2987_v40, %v2987_v40 }
 0x8c5   : > { %4275 = vst.sshfl [vmem:[%s5408_s17 + $0xb] sm:$0x1 pattern:$0x73625140] %v3562_v49  ;;  %4005 = vst [vmem:[%s5408_s17 + $0x7] sm:$0x1] %v3593_v41  ;;  %v3602_v60 = vrot.slane %v2987_v40, %v7896_v20  ;;  %v3737_v31 = vrot.slane %v3709_v16, %v7896_v20  ;;  %v3738_v29 = vcombine.high %v3716_v7, %v3716_v7 }
 0x8c6   : > { %4286 = vst.sshfl [vmem:[%s5408_s17 + $0x39] sm:$0x1 pattern:$0x73625140] %v3707_v58  ;;  %4008 = vst [vmem:[%s5408_s17 + $0xd] sm:$0x1] %v3592_v50  ;;  %v3739_v14 = vcombine.high %v3723_v25, %v3723_v25  ;;  %v2881_v59 = vmul.f32 %v8129_v21, %v8129_v21  ;;  %v3740_v34 = vcombine.high %v3730_v3, %v3730_v3 }
 0x8c7   : > { %4285 = vst.sshfl [vmem:[%s5408_s17 + $0x33] sm:$0x1 pattern:$0x73625140] %v3708_v23  ;;  %4025 = vst [vmem:[%s5408_s17 + $0x2f] sm:$0x1] %v3692_v18  ;;  %v3609_v27 = vrot.slane %v3595_v9, %v7896_v20  ;;  %v3610_v15 = vcombine.high %v3602_v60, %v3602_v60  ;;  %v3618_v40 = vrot.slane %v3602_v60, %v7896_v20 }
 0x8c8   : > { %4287 = vst.sshfl [vmem:[%s5408_s17 + $0x3b] sm:$0x1 pattern:$0x73625140] %v3709_v16  ;;  %4009 = vst [vmem:[%s5408_s17 + $0xf] sm:$0x1] %v3594_v33  ;;  %v3741_v17 = vcombine.high %v3737_v31, %v3737_v31  ;;  %v2879_v21 = vmul.f32 %v8137_v12, %v8137_v12 }
 0x8c9   : > { %4276 = vst.sshfl [vmem:[%s5408_s17 + $0x11] sm:$0x1 pattern:$0x73625140] %v3602_v60  ;;  %4028 = vst [vmem:[%s5408_s17 + $0x35] sm:$0x1] %v3738_v29  ;;  %v3611_v51 = vcombine.high %v3609_v27, %v3609_v27  ;;  %v3625_v52 = vrot.slane %v3609_v27, %v7896_v20  ;;  %v3632_v4 = vrot.slane %v3610_v15, %v7896_v20 }
 0x8ca   : > { %4032 = vst [vmem:[%s5408_s17 + $0x3d] sm:$0x1] %v3739_v14  ;;  %v2888_v44 = vsub.f32 1.0, %v8247_v37  ;;  %4029 = vst [vmem:[%s5408_s17 + $0x37] sm:$0x1] %v3740_v34  ;;  %v3640_v8 = vcombine.high %v3618_v40, %v3618_v40  ;;  %v4741_v6 = vpop.f32.mrb[68].mxu1 }
 0x8cb   : > { %4277 = vst.sshfl [vmem:[%s5408_s17 + $0x13] sm:$0x1 pattern:$0x73625140] %v3610_v15  ;;  %4033 = vst [vmem:[%s5408_s17 + $0x3f] sm:$0x1] %v3741_v17  ;;  %v3639_v13 = vrot.slane %v3611_v51, %v7896_v20  ;;  %v3641_v12 = vcombine.high %v3625_v52, %v3625_v52  ;;  %v3642_v49 = vcombine.high %v3632_v4, %v3632_v4 }
 0x8cc   : > { %4278 = vst.sshfl [vmem:[%s5408_s17 + $0x19] sm:$0x1 pattern:$0x73625140] %v3609_v27  ;;  %v2886_v37 = vsub.f32 1.0, %v8253_v55  ;;  %v2889_v36 = vsub.f32 1.0, %v2881_v59  ;;  %v2896_v46 = vmul.f32 %v4741_v6, %v2888_v44 }
 0x8cd   : > { %4012 = vst [vmem:[%s5408_s17 + $0x15] sm:$0x1] %v3640_v8  ;;  %4279 = vst.sshfl [vmem:[%s5408_s17 + $0x1b] sm:$0x1 pattern:$0x73625140] %v3611_v51  ;;  %v3643_v2 = vcombine.high %v3639_v13, %v3639_v13 }
 0x8ce   : > { %v2843_v48 = vpop.f32.mrb[69].mxu1  ;;  %v2887_v43 = vsub.f32 1.0, %v2879_v21  ;;  %4013 = vst [vmem:[%s5408_s17 + $0x17] sm:$0x1] %v3642_v49  ;;  %4016 = vst [vmem:[%s5408_s17 + $0x1d] sm:$0x1] %v3641_v12  ;;  %v2936_v58 = vmul.f32 %v2896_v46, %v8916_v19 }
 0x8cf   : > { %v2894_v63 = vmul.f32 %v2886_v37, %v2843_v48  ;;  %v4742_v57 = vpop.f32.mrb[70].mxu1  ;;  %v9302_v23 = vld [vmem:[#allocation42_spill] sm:$0xff]  ;;  %4017 = vst [vmem:[%s5408_s17 + $0x1f] sm:$0x1] %v3643_v2  ;;  %v9303_v25 = vld [vmem:[#allocation89_spill] sm:$0xff]  ;;  %v9304_v60 = vld [vmem:[#allocation40_spill] sm:$0xff] }
 0x8d0   : > { %v2897_v5 = vmul.f32 %v4742_v57, %v2889_v36  ;;  %v2846_v55 = vpop.f32.mrb[71].mxu1  ;;  %v2952_v18 = vmul.f32 %v9302_v23, %v9160_v22  ;;  %v2944_v16 = vsub.f32 %v2928_v47, %v2936_v58  ;;  %v2950_v33 = vmul.f32 %v9303_v25, %v9160_v22 }
 0x8d1   : > { %v2934_v50 = vmul.f32 %v2894_v63, %v8916_v19  ;;  %v2895_v41 = vmul.f32 %v2887_v43, %v2846_v55  ;;  %v2953_v31 = vmul.f32 %v9304_v60, %v9160_v22  ;;  %v2951_v47 = vmul.f32 %v9305_v62, %v9160_v22 }
 0x8d2   : > { %v2937_v7 = vmul.f32 %v2897_v5, %v8916_v19  ;;  %v2960_v29 = vadd.f32 %v2952_v18, %v2944_v16 }
 0x8d3   : > { %v2942_v3 = vsub.f32 %v2926_v10, %v2934_v50  ;;  %v2935_v9 = vmul.f32 %v2895_v41, %v8916_v19 }
 0x8d4   : > { %v2945_v61 = vsub.f32 %v2929_v56, %v2937_v7  ;;  %v2976_v28 = vmul.f32 %v2960_v29, %v9291_v11 }
 0x8d5   : > { %v2958_v14 = vadd.f32 %v2950_v33, %v2942_v3  ;;  %v2943_v59 = vsub.f32 %v2927_v39, %v2935_v9 }
 0x8d6   : > { %v2961_v24 = vadd.f32 %v2953_v31, %v2945_v61  ;;  %v2992_v34 = vadd.f32 %v2976_v28, %v7982_v1 }
 0x8d7   : > { %v2974_v19 = vmul.f32 %v2958_v14, %v9289_v0  ;;  %v2959_v10 = vadd.f32 %v2951_v47, %v2943_v59 }
 0x8d8   : > { %v2977_v45 = vmul.f32 %v2961_v24, %v9294_v32  ;;  %3008 = vst [vmem:[#allocation2 + $0x70] sm:$0xff] %v2992_v34  ;;  %v3840_v56 = vcombine.high %v2992_v34, %v2992_v34  ;;  %v3847_v53 = vrot.slane %v2992_v34, %v7896_v20 }
 0x8d9   : > { %v2990_v54 = vadd.f32 %v2974_v19, %v7986_v26  ;;  %v2975_v22 = vmul.f32 %v2959_v10, %v9290_v38 }
 0x8da   : > { %v2993_v11 = vadd.f32 %v2977_v45, %v8029_v42  ;;  %v3854_v1 = vrot.slane %v3840_v56, %v7896_v20  ;;  %v3855_v32 = vcombine.high %v3847_v53, %v3847_v53  ;;  %v3863_v26 = vrot.slane %v3847_v53, %v7896_v20  ;;  %4296 = vst.sshfl [vmem:[%s5408_s17 + $0x61] sm:$0x1 pattern:$0x73625140] %v3847_v53 }
 0x8db   : > { %3006 = vst [vmem:[#allocation2 + $0x60] sm:$0xff] %v2990_v54  ;;  %v3742_v30 = vcombine.high %v2990_v54, %v2990_v54  ;;  %v3749_v0 = vrot.slane %v2990_v54, %v7896_v20  ;;  %v2991_v39 = vadd.f32 %v2975_v22, %v8032_v35 }
 0x8dc   : > { %3009 = vst [vmem:[#allocation2 + $0x78] sm:$0xff] %v2993_v11  ;;  %v3889_v38 = vcombine.high %v2993_v11, %v2993_v11  ;;  %v3896_v35 = vrot.slane %v2993_v11, %v7896_v20  ;;  %v3856_v40 = vcombine.high %v3854_v1, %v3854_v1  ;;  %v3870_v17 = vrot.slane %v3854_v1, %v7896_v20 }
 0x8dd   : > { %v3756_v27 = vrot.slane %v3742_v30, %v7896_v20  ;;  %v3757_v42 = vcombine.high %v3749_v0, %v3749_v0  ;;  %v3765_v15 = vrot.slane %v3749_v0, %v7896_v20  ;;  %4288 = vst.sshfl [vmem:[%s5408_s17 + $0x41] sm:$0x1 pattern:$0x73625140] %v3749_v0  ;;  %3007 = vst [vmem:[#allocation2 + $0x68] sm:$0xff] %v2991_v39 }
 0x8de   : > { %v3877_v44 = vrot.slane %v3855_v32, %v7896_v20  ;;  %v3885_v21 = vcombine.high %v3863_v26, %v3863_v26  ;;  %4297 = vst.sshfl [vmem:[%s5408_s17 + $0x63] sm:$0x1 pattern:$0x73625140] %v3855_v32  ;;  %v3884_v6 = vrot.slane %v3856_v40, %v7896_v20  ;;  %v3886_v37 = vcombine.high %v3870_v17, %v3870_v17 }
 0x8df   : > { %4298 = vst.sshfl [vmem:[%s5408_s17 + $0x69] sm:$0x1 pattern:$0x73625140] %v3854_v1  ;;  %v3758_v51 = vcombine.high %v3756_v27, %v3756_v27  ;;  %v3772_v52 = vrot.slane %v3756_v27, %v7896_v20  ;;  %v3779_v4 = vrot.slane %v3757_v42, %v7896_v20  ;;  %v3787_v8 = vcombine.high %v3765_v15, %v3765_v15 }
 0x8e0   : > { %4289 = vst.sshfl [vmem:[%s5408_s17 + $0x43] sm:$0x1 pattern:$0x73625140] %v3757_v42  ;;  %v3887_v36 = vcombine.high %v3877_v44, %v3877_v44  ;;  %4052 = vst [vmem:[%s5408_s17 + $0x65] sm:$0x1] %v3885_v21  ;;  %v3903_v13 = vrot.slane %v3889_v38, %v7896_v20  ;;  %v3904_v48 = vcombine.high %v3896_v35, %v3896_v35 }
 0x8e1   : > { %4290 = vst.sshfl [vmem:[%s5408_s17 + $0x49] sm:$0x1 pattern:$0x73625140] %v3756_v27  ;;  %v3786_v12 = vrot.slane %v3758_v51, %v7896_v20  ;;  %v3788_v49 = vcombine.high %v3772_v52, %v3772_v52  ;;  %v3789_v46 = vcombine.high %v3779_v4, %v3779_v4  ;;  %4036 = vst [vmem:[%s5408_s17 + $0x45] sm:$0x1] %v3787_v8 }
 0x8e2   : > { %4300 = vst.sshfl [vmem:[%s5408_s17 + $0x71] sm:$0x1 pattern:$0x73625140] %v3896_v35  ;;  %v3888_v63 = vcombine.high %v3884_v6, %v3884_v6  ;;  %4053 = vst [vmem:[%s5408_s17 + $0x67] sm:$0x1] %v3887_v36  ;;  %v3905_v57 = vcombine.high %v3903_v13, %v3903_v13  ;;  %v3912_v43 = vrot.slane %v3896_v35, %v7896_v20 }
 0x8e3   : > { %4299 = vst.sshfl [vmem:[%s5408_s17 + $0x6b] sm:$0x1 pattern:$0x73625140] %v3856_v40  ;;  %4056 = vst [vmem:[%s5408_s17 + $0x6d] sm:$0x1] %v3886_v37  ;;  %v3919_v2 = vrot.slane %v3903_v13, %v7896_v20  ;;  %v3790_v58 = vcombine.high %v3786_v12, %v3786_v12  ;;  %v3926_v5 = vrot.slane %v3904_v48, %v7896_v20 }
 0x8e4   : > { %4291 = vst.sshfl [vmem:[%s5408_s17 + $0x4b] sm:$0x1 pattern:$0x73625140] %v3758_v51  ;;  %4037 = vst [vmem:[%s5408_s17 + $0x47] sm:$0x1] %v3789_v46  ;;  %v3791_v55 = vcombine.high %v2991_v39, %v2991_v39  ;;  %v3798_v50 = vrot.slane %v2991_v39, %v7896_v20  ;;  %v3933_v41 = vrot.slane %v3905_v57, %v7896_v20 }
 0x8e5   : > { %4302 = vst.sshfl [vmem:[%s5408_s17 + $0x79] sm:$0x1 pattern:$0x73625140] %v3903_v13  ;;  %4040 = vst [vmem:[%s5408_s17 + $0x4d] sm:$0x1] %v3788_v49  ;;  %v3934_v23 = vcombine.high %v3912_v43, %v3912_v43  ;;  %v3935_v18 = vcombine.high %v3919_v2, %v3919_v2  ;;  %v3936_v16 = vcombine.high %v3926_v5, %v3926_v5 }
 0x8e6   : > { %4301 = vst.sshfl [vmem:[%s5408_s17 + $0x73] sm:$0x1 pattern:$0x73625140] %v3904_v48  ;;  %4057 = vst [vmem:[%s5408_s17 + $0x6f] sm:$0x1] %v3888_v63  ;;  %v3805_v7 = vrot.slane %v3791_v55, %v7896_v20  ;;  %v3806_v25 = vcombine.high %v3798_v50, %v3798_v50  ;;  %v3814_v33 = vrot.slane %v3798_v50, %v7896_v20 }
 0x8e7   : > { %4303 = vst.sshfl [vmem:[%s5408_s17 + $0x7b] sm:$0x1 pattern:$0x73625140] %v3905_v57  ;;  %4041 = vst [vmem:[%s5408_s17 + $0x4f] sm:$0x1] %v3790_v58  ;;  %v3937_v3 = vcombine.high %v3933_v41, %v3933_v41 }
 0x8e8   : > { %4292 = vst.sshfl [vmem:[%s5408_s17 + $0x51] sm:$0x1 pattern:$0x73625140] %v3798_v50  ;;  %4060 = vst [vmem:[%s5408_s17 + $0x75] sm:$0x1] %v3934_v23  ;;  %v3807_v9 = vcombine.high %v3805_v7, %v3805_v7  ;;  %v3821_v60 = vrot.slane %v3805_v7, %v7896_v20  ;;  %v3828_v31 = vrot.slane %v3806_v25, %v7896_v20 }
 0x8e9   : > { %4064 = vst [vmem:[%s5408_s17 + $0x7d] sm:$0x1] %v3935_v18  ;;  %4061 = vst [vmem:[%s5408_s17 + $0x77] sm:$0x1] %v3936_v16  ;;  %v3836_v29 = vcombine.high %v3814_v33, %v3814_v33 }
 0x8ea   : > { %4293 = vst.sshfl [vmem:[%s5408_s17 + $0x53] sm:$0x1 pattern:$0x73625140] %v3806_v25  ;;  %4065 = vst [vmem:[%s5408_s17 + $0x7f] sm:$0x1] %v3937_v3  ;;  %v3835_v61 = vrot.slane %v3807_v9, %v7896_v20  ;;  %v3837_v62 = vcombine.high %v3821_v60, %v3821_v60  ;;  %v3838_v47 = vcombine.high %v3828_v31, %v3828_v31 }
 0x8eb   : > { %4294 = vst.sshfl [vmem:[%s5408_s17 + $0x59] sm:$0x1 pattern:$0x73625140] %v3805_v7  ;;  %4044 = vst [vmem:[%s5408_s17 + $0x55] sm:$0x1] %v3836_v29 }
 0x8ec   : > { %4295 = vst.sshfl [vmem:[%s5408_s17 + $0x5b] sm:$0x1 pattern:$0x73625140] %v3807_v9  ;;  %v3839_v14 = vcombine.high %v3835_v61, %v3835_v61  ;;  %4045 = vst [vmem:[%s5408_s17 + $0x57] sm:$0x1] %v3838_v47 }
 0x8ed   : > { %4048 = vst [vmem:[%s5408_s17 + $0x5d] sm:$0x1] %v3837_v62 }
 0x8ee   : > { %4049 = vst [vmem:[%s5408_s17 + $0x5f] sm:$0x1] %v3839_v14 }
 0x8ef   : > { %5109 = shalt.err (!%p5106_p4)
}
 0x8f0   : > { %s5110_s17 = scalar_lea.hbm %s8410_s21, 2048  ;;  %s5114_s19 = scalar_lea.hbm %s9307_s30, 20480 }
 0x8f1   : > { %p5111_p6 = scmp.ne.s32.totalorder %s8410_s21, %s5110_s17  ;;  %p5115_p3 = scmp.lt.u32.totalorder %s8410_s21, %s9307_s30 }
 0x8f2   : > { %p5116_p0 = scmp.lt.u32.totalorder %s5114_s19, %s5110_s17  ;;  %p5118_p11 = scmp.lt.u32.totalorder %s5110_s17, %s8410_s21 }
 0x8f3   : > { %p5112_p12 = pnand %p5111_p6, %p9308_p5 }
 0x8f4   : > { %p5117_p10 = por %p5116_p0, %p5115_p3 }
 0x8f5   : > { %p5113_p1 = pneg %p5112_p12 }
 0x8f6   : > { %p5119_p7 = por %p5118_p11, %p5117_p10 }
 0x8f8   : > { %p5120_p8 = pnand %p5119_p7, %p5113_p1 }
 0x8fa   : > { %5123 = shalt.err (!%p5120_p8)
}
 0x8fb   : > { %s5208_s7 = smov 32   ;;  %s5209_s24 = smov 2  }
 0x8fc   : > { %4765 = dma.vmem_to_hbm [thread:$0]  (%p9308_p5), %s8403_s25, 2048, %s8410_s21, %s4067_s9, %s5208_s7, %s5208_s7, %s5209_s24  }
 0x8fd PF: > { %s9309_s10 = sld [smem:[#allocation14_spill]]  ;;  %s9310_s15 = sld [smem:[#allocation12_spill]] }
 0x8fe   : > { %s9311_s16 = sld [smem:[#allocation16_spill]] }
 0x903   : > { %p4782_p9 = scmp.ge.s32.totalorder %s9309_s10, 2  ;;  %s4097_s28 = sand.u32 1, %s9310_s15  }
 0x904   : > { %p9312_p13 = scmp.ne.s32.totalorder %s9311_s16, 0  ;;  %s4098_s29 = scalar_lea.sflag [#allocation5], %s4097_s28 }
 0x906   : > { %p4776_p2 = pnand %p4782_p9, %p9312_p13 }
 0x908   : > { %5165 = dma.done.wait (!%p4776_p2), %s4098_s29, 2048  }
 0x909   : > { %5167 = vsyncadd (!%p4776_p2), %s4098_s29, 4294965248  ;;  %s23_s28 = sadd.s32 1, %s9309_s10   ;;  %s9313_s24 = sld [smem:[#allocation13_spill]] }
 0x90a   : > { %p20_p4 = scmp.ge.s32.totalorder %s23_s28, 12   ;;  %s9314_s13 = sld [smem:[#allocation17_spill]] }
 0x90b   : > { %s9315_s21 = smov %s5174_s22  ;;  %s9316_s22 = smov %s5178_s23 }
 0x90c   : > { %s9317_s23 = smov %s5353_s26  ;;  %s9318_s25 = smov %s5194_s27 }
 0x90d   : > { %s9320_s27 = smov %s9326_s20  ;;  %22 = sbr.rel (!%p20_p4) target bundleno = 11 (0xb), region = 101 }
 0x910   : > { %s9319_s26 = smov %s9314_s13 }
 0x914   :  { %4103 = vsyncpa [#allocation4], 1 }
 0x915   :  { %4105 = vsyncpa [#allocation4 + $0x1], 1 }
 0x916   :  { %4106 = vsyncpa [#allocation5], 1 }
 0x917   :  { %4108 = vsyncpa [#allocation5 + $0x1], 1 }
 0x918   :  { %4109 = vsyncpa [#allocation6], 1 }
 0x919   :  { %4111 = vsyncpa [#allocation6 + $0x1], 1 }

</bundles_post_ra>
